<compile_context>
chip_gen: v5e
topology: v5e:2x2
jax: 0.10.0
libtpu: 0.0.40
codegen_flags: <defaults>
</compile_context>

<pallas_src>
import math
from functools import partial

import jax
import jax.numpy as jnp
from jax.experimental import pallas as pl
from jax.experimental.pallas import tpu as pltpu


# ----------------------------------------------------------------------------
# Small helpers
# ----------------------------------------------------------------------------
def _tile_and_pad(length, max_tile, align):
    """Pick (tile, padded_length): tile == full length, or an `align`-multiple
    tile <= max_tile that divides the (align-rounded) padded length."""
    if length <= max_tile:
        return length, length
    padded = pl.cdiv(length, align) * align
    tile = align
    for t in range(align, max_tile + 1, align):
        if padded % t == 0:
            tile = t
    return tile, padded


def _pad_dim(x, axis, new_len):
    if x.shape[axis] == new_len:
        return x
    pads = [(0, 0)] * x.ndim
    pads[axis] = (0, new_len - x.shape[axis])
    return jnp.pad(x, pads)


def _vmem_limit_bytes():
    """Per-generation scoped-VMEM budget (v5e/v6e: 128 MiB phys, v7x: 64 MiB)."""
    cap = None
    try:
        info = pltpu.get_tpu_info()
        cap = int(getattr(info, "vmem_capacity_bytes", 0)) or None
    except Exception:
        cap = None
    if cap is None:
        cap = 64 * 1024 * 1024          # conservative (v7x-sized) fallback
    return int(min(cap * 0.85, 100 * 1024 * 1024))


# --- optional single-buffering of grid-invariant operands ---------------------
_BUFFERED_OK = None


def _single_buffering_supported():
    """Probe whether BlockSpec(pipeline_mode=pl.Buffered(1)) works here."""
    global _BUFFERED_OK
    if _BUFFERED_OK is not None:
        return _BUFFERED_OK

    def _probe():
        def k(w_ref, x_ref, o_ref):
            o_ref[...] = x_ref[...] + w_ref[...]

        x = jnp.arange(16 * 128, dtype=jnp.float32).reshape(16, 128)
        w = jnp.ones((8, 128), jnp.float32)
        out = pl.pallas_call(
            k,
            out_shape=jax.ShapeDtypeStruct((16, 128), jnp.float32),
            grid=(2,),
            in_specs=[pl.BlockSpec((8, 128), lambda i: (0, 0),
                                   pipeline_mode=pl.Buffered(1)),
                      pl.BlockSpec((8, 128), lambda i: (i, 0))],
            out_specs=pl.BlockSpec((8, 128), lambda i: (i, 0)),
        )(w, x)
        return bool(jnp.allclose(jax.block_until_ready(out), x + 1.0))

    try:
        _BUFFERED_OK = _probe()
    except Exception:
        _BUFFERED_OK = False
    return _BUFFERED_OK


def _invariant_spec(block_shape, index_map):
    """Spec for grid-invariant operands (weights/biases): single-buffered when
    supported, halving their VMEM reservation."""
    if _single_buffering_supported():
        return pl.BlockSpec(block_shape, index_map, pipeline_mode=pl.Buffered(1))
    return pl.BlockSpec(block_shape, index_map)


# ----------------------------------------------------------------------------
# Attention kernel: flash-style online softmax over KV tiles, fused
# residual-add + LayerNorm epilogue.  Grid = (batch, q-tiles, kv-tiles).
# ----------------------------------------------------------------------------
def _mha_flash_body(q_ref, k_ref, v_ref, m_ref,
                    wq_ref, wk_ref, wv_ref, wo_ref, bo_ref, g_ref, b_ref,
                    o_ref, qp_sc, m_sc, l_sc, acc_sc,
                    *, heads, head_dim, scale):
    f32 = jnp.float32
    cdt = wq_ref.dtype                      # matmul operand dtype
    kv_step = pl.program_id(2)

    @pl.when(kv_step == 0)
    def _init():
        m_sc[...] = jnp.full_like(m_sc, -jnp.inf)
        l_sc[...] = jnp.zeros_like(l_sc)
        acc_sc[...] = jnp.zeros_like(acc_sc)
        # Project (and pre-scale by 1/sqrt(E)) the queries once per q-tile;
        # reused for every KV step.  Per-head (hd, hd) weights: no redundant
        # block-diagonal FLOPs, tiny weight blocks.
        q = q_ref[...].astype(cdt)
        for h in range(heads):
            sl = slice(h * head_dim, (h + 1) * head_dim)
            qp = jnp.dot(q[:, sl], wq_ref[...], preferred_element_type=f32)
            qp_sc[:, sl] = (qp * scale).astype(cdt)

    k = k_ref[...].astype(cdt)
    v = k if v_ref is k_ref else v_ref[...].astype(cdt)     # shared-KV de-dup

    # int8 mask -> additive bias, computed once per (q-tile, kv-tile).
    valid = m_ref[...].astype(jnp.int32) != 0
    bias = jnp.where(valid, 0.0, -1e20).astype(f32)          # (TQ, TK)

    # Online-softmax update, one head at a time (score/PV tiles stay small).
    # TODO(synk): for production head_dim < 128 these lane slices are masked
    # sub-128-lane stores; a lane-dense per-head scratch layout would be better.
    for h in range(heads):
        sl = slice(h * head_dim, (h + 1) * head_dim)
        kp = jnp.dot(k[:, sl], wk_ref[...], preferred_element_type=f32).astype(cdt)
        vp = jnp.dot(v[:, sl], wv_ref[...], preferred_element_type=f32).astype(cdt)
        s = jax.lax.dot_general(qp_sc[:, sl], kp, (((1,), (1,)), ((), ())),
                                preferred_element_type=f32) + bias       # (TQ, TK)
        m_prev = m_sc[:, h:h + 1]
        m_new = jnp.maximum(m_prev, jnp.max(s, axis=-1, keepdims=True))
        alpha = jnp.exp(m_prev - m_new)
        p = jnp.exp(s - m_new)
        l_sc[:, h:h + 1] = alpha * l_sc[:, h:h + 1] + jnp.sum(p, axis=-1, keepdims=True)
        acc_sc[:, sl] = alpha * acc_sc[:, sl] + jnp.dot(
            p.astype(cdt), vp, preferred_element_type=f32)
        m_sc[:, h:h + 1] = m_new

    @pl.when(kv_step == pl.num_programs(2) - 1)
    def _finalize():
        # Per-head softmax normalisation (EUP reciprocal -> near-free slot).
        inv_l = pl.reciprocal(l_sc[...], approx=True)                   # (TQ, heads)
        for h in range(heads):
            sl = slice(h * head_dim, (h + 1) * head_dim)
            acc_sc[:, sl] = acc_sc[:, sl] * inv_l[:, h:h + 1]
        # Output projection + fused residual-add + LayerNorm (f32 math).
        out = jnp.dot(acc_sc[...].astype(cdt), wo_ref[...],
                      preferred_element_type=f32) + bo_ref[...]
        x = out + q_ref[...].astype(jnp.float32)       # residual == the q operand
        mu = jnp.mean(x, axis=-1, keepdims=True)
        xc = x - mu
        var = jnp.mean(xc * xc, axis=-1, keepdims=True)
        y = xc * jax.lax.rsqrt(var + 1e-5)
        o_ref[...] = (y * g_ref[...] + b_ref[...]).astype(o_ref.dtype)


def _mha_flash_kernel(q_ref, k_ref, v_ref, m_ref, *rest, heads, head_dim, scale):
    _mha_flash_body(q_ref, k_ref, v_ref, m_ref, *rest,
                    heads=heads, head_dim=head_dim, scale=scale)


def _mha_flash_kernel_shared_kv(q_ref, kv_ref, m_ref, *rest, heads, head_dim, scale):
    # keys and values come from the same array: one DMA stream feeds both.
    _mha_flash_body(q_ref, kv_ref, kv_ref, m_ref, *rest,
                    heads=heads, head_dim=head_dim, scale=scale)


def attention_add_layernorm(values, keys, query, mask, sa, ln, *,
                            heads, head_dim, compute_dtype, out_dtype,
                            max_tq=256, max_tk=512):
    """LayerNorm(SelfAttention(values, keys, query, mask) + query).

    The residual is always the `query` operand (true for both uses inside
    DecoderBlock), so no separate residual stream is DMA'd.
    """
    N, Lq, E = query.shape
    Lk = keys.shape[1]
    scale = 1.0 / math.sqrt(E)              # module scales by 1/sqrt(embed_size)
    cdt = compute_dtype

    shared_kv = values is keys
    self_attn = shared_kv and (keys is query)

    TQ, Lq_p = _tile_and_pad(Lq, max_tq, 8)
    TK, Lk_p = _tile_and_pad(Lk, max_tk, 128)

    # int8 mask stream; padded key positions are masked out (pad value 0).
    mask_i8 = _pad_dim(_pad_dim(mask.astype(jnp.int8), 1, Lq_p), 2, Lk_p)

    if self_attn:
        q_in = _pad_dim(query, 1, max(Lq_p, Lk_p))
        kv_in = q_in
        k_in = v_in = None
    elif shared_kv:
        q_in = _pad_dim(query, 1, Lq_p)
        kv_in = _pad_dim(keys, 1, Lk_p)
        k_in = v_in = None
    else:
        q_in = _pad_dim(query, 1, Lq_p)
        k_in = _pad_dim(keys, 1, Lk_p)
        v_in = _pad_dim(values, 1, Lk_p)
        kv_in = None

    q_spec = pl.BlockSpec((None, TQ, E), lambda n, tq, tk: (n, tq, 0))
    kv_spec = pl.BlockSpec((None, TK, E), lambda n, tq, tk: (n, tk, 0))
    m_spec = pl.BlockSpec((None, TQ, TK), lambda n, tq, tk: (n, tq, tk))
    hd_spec = _invariant_spec((head_dim, head_dim), lambda n, tq, tk: (0, 0))
    ee_spec = _invariant_spec((E, E), lambda n, tq, tk: (0, 0))
    row_spec = _invariant_spec((1, E), lambda n, tq, tk: (0, 0))

    weights = (sa["wq"].T.astype(cdt), sa["wk"].T.astype(cdt),
               sa["wv"].T.astype(cdt), sa["wo"].T.astype(cdt),
               sa["bo"].astype(jnp.float32),
               ln["gamma"].astype(jnp.float32), ln["beta"].astype(jnp.float32))
    weight_specs = [hd_spec, hd_spec, hd_spec, ee_spec, row_spec, row_spec, row_spec]

    if shared_kv:
        kernel = partial(_mha_flash_kernel_shared_kv,
                         heads=heads, head_dim=head_dim, scale=scale)
        inputs = (q_in, kv_in, mask_i8) + weights
        act_specs = [q_spec, kv_spec, m_spec]
    else:
        kernel = partial(_mha_flash_kernel,
                         heads=heads, head_dim=head_dim, scale=scale)
        inputs = (q_in, k_in, v_in, mask_i8) + weights
        act_specs = [q_spec, kv_spec, kv_spec, m_spec]

    grid = (N, Lq_p // TQ, Lk_p // TK)
    out = pl.pallas_call(
        kernel,
        out_shape=jax.ShapeDtypeStruct((N, Lq_p, E), out_dtype),
        grid=grid,
        in_specs=act_specs + weight_specs,
        out_specs=pl.BlockSpec((None, TQ, E), lambda n, tq, tk: (n, tq, 0)),
        scratch_shapes=[
            pltpu.VMEM((TQ, E), cdt),               # projected, pre-scaled queries
            pltpu.VMEM((TQ, heads), jnp.float32),   # running max (per head)
            pltpu.VMEM((TQ, heads), jnp.float32),   # running denominator
            pltpu.VMEM((TQ, E), jnp.float32),       # running context (f32 acc)
        ],
        compiler_params=pltpu.CompilerParams(
            dimension_semantics=("parallel", "parallel", "arbitrary"),
            vmem_limit_bytes=_vmem_limit_bytes()),
    )(*inputs)
    return out[:, :Lq, :] if Lq_p != Lq else out


# ----------------------------------------------------------------------------
# FFN kernel: hidden dim F tiled over an "arbitrary" grid axis with a VMEM
# accumulator; fused residual-add + LayerNorm epilogue.
# ----------------------------------------------------------------------------
def _ffn_add_ln_kernel(x_ref, w1_ref, b1_ref, w2_ref, b2_ref, g_ref, b_ref,
                       o_ref, acc_ref):
    f32 = jnp.float32
    cdt = w1_ref.dtype
    fstep = pl.program_id(2)

    @pl.when(fstep == 0)
    def _init():
        acc_ref[...] = jnp.zeros_like(acc_ref)

    x = x_ref[...]
    h = jnp.dot(x.astype(cdt), w1_ref[...], preferred_element_type=f32) + b1_ref[...]
    h = jnp.maximum(h, 0.0)
    acc_ref[...] += jnp.dot(h.astype(cdt), w2_ref[...], preferred_element_type=f32)

    @pl.when(fstep == pl.num_programs(2) - 1)
    def _finalize():
        z = acc_ref[...] + b2_ref[...] + x.astype(f32)       # residual == own input
        mu = jnp.mean(z, axis=-1, keepdims=True)
        zc = z - mu
        var = jnp.mean(zc * zc, axis=-1, keepdims=True)
        o_ref[...] = (zc * jax.lax.rsqrt(var + 1e-5) * g_ref[...]
                      + b_ref[...]).astype(o_ref.dtype)


def ffn_add_layernorm(x, ff, ln, *, compute_dtype, out_dtype=jnp.float32,
                      max_tl=256, max_tf=512):
    """LayerNorm(FFN(x) + x)."""
    N, L, E = x.shape
    F = ff["w1"].shape[0]
    cdt = compute_dtype

    TL, L_p = _tile_and_pad(L, max_tl, 8)
    TF, F_p = _tile_and_pad(F, max_tf, 128)

    x_in = _pad_dim(x, 1, L_p)
    # Zero-padding the hidden dim of W1/b1/W2 is exact: padded hidden units
    # contribute relu(0) @ 0 == 0.
    w1_t = _pad_dim(ff["w1"].T.astype(cdt), 1, F_p)          # (E, F_p)
    b1 = _pad_dim(ff["b1"].astype(jnp.float32), 1, F_p)      # (1, F_p)
    w2_t = _pad_dim(ff["w2"].T.astype(cdt), 0, F_p)          # (F_p, E)

    grid = (N, L_p // TL, F_p // TF)
    out = pl.pallas_call(
        _ffn_add_ln_kernel,
        out_shape=jax.ShapeDtypeStruct((N, L_p, E), out_dtype),
        grid=grid,
        in_specs=[
            pl.BlockSpec((None, TL, E), lambda n, t, f: (n, t, 0)),
            pl.BlockSpec((E, TF), lambda n, t, f: (0, f)),
            pl.BlockSpec((1, TF), lambda n, t, f: (0, f)),
            pl.BlockSpec((TF, E), lambda n, t, f: (f, 0)),
            _invariant_spec((1, E), lambda n, t, f: (0, 0)),
            _invariant_spec((1, E), lambda n, t, f: (0, 0)),
            _invariant_spec((1, E), lambda n, t, f: (0, 0)),
        ],
        out_specs=pl.BlockSpec((None, TL, E), lambda n, t, f: (n, t, 0)),
        scratch_shapes=[pltpu.VMEM((TL, E), jnp.float32)],   # FFN accumulator
        compiler_params=pltpu.CompilerParams(
            dimension_semantics=("parallel", "parallel", "arbitrary"),
            vmem_limit_bytes=_vmem_limit_bytes()),
    )(x_in, w1_t, b1, w2_t, ff["b2"].astype(jnp.float32),
      ln["gamma"].astype(jnp.float32), ln["beta"].astype(jnp.float32))
    return out[:, :L, :] if L_p != L else out


# ----------------------------------------------------------------------------
# DecoderBlock forward (dropout == identity in eval mode)
# ----------------------------------------------------------------------------
def decoder_block_forward(x, value, key, src_mask, trg_mask, params, *,
                          heads, head_dim, compute_dtype=jnp.float32):
    # query = LayerNorm(SelfAttention(x, x, x, trg_mask) + x)   (shared-KV path)
    query = attention_add_layernorm(
        x, x, x, trg_mask, params["sa"], params["norm"],
        heads=heads, head_dim=head_dim,
        compute_dtype=compute_dtype, out_dtype=compute_dtype)
    # TransformerBlock(value, key, query, src_mask)
    x2 = attention_add_layernorm(
        value, key, query, src_mask, params["tb_sa"], params["tb_norm1"],
        heads=heads, head_dim=head_dim,
        compute_dtype=compute_dtype, out_dtype=compute_dtype)
    out = ffn_add_layernorm(x2, params["tb_ff"], params["tb_norm2"],
                            compute_dtype=compute_dtype)
    return out


# ----------------------------------------------------------------------------
# Pure-JAX reference (mirrors the PyTorch module, eval mode)
# ----------------------------------------------------------------------------
def _ref_self_attention(v, k, q, mask, p, heads, head_dim):
    N, Lq, E = q.shape
    Lk = k.shape[1]
    vr = v.reshape(N, Lk, heads, head_dim) @ p["wv"].T
    kr = k.reshape(N, Lk, heads, head_dim) @ p["wk"].T
    qr = q.reshape(N, Lq, heads, head_dim) @ p["wq"].T
    energy = jnp.einsum("nqhd,nkhd->nhqk", qr, kr)
    energy = jnp.where(mask[:, None, :, :] == 0, -1e20, energy)
    attn = jax.nn.softmax(energy / math.sqrt(E), axis=3)
    out = jnp.einsum("nhql,nlhd->nqhd", attn, vr).reshape(N, Lq, E)
    return out @ p["wo"].T + p["bo"][0]


def _ref_layernorm(x, p):
    mu = jnp.mean(x, axis=-1, keepdims=True)
    var = jnp.mean((x - mu) ** 2, axis=-1, keepdims=True)
    return (x - mu) / jnp.sqrt(var + 1e-5) * p["gamma"][0] + p["beta"][0]


def _ref_decoder_block(x, value, key, src_mask, trg_mask, params, heads, head_dim):
    att = _ref_self_attention(x, x, x, trg_mask, params["sa"], heads, head_dim)
    query = _ref_layernorm(att + x, params["norm"])
    att2 = _ref_self_attention(value, key, query, src_mask, params["tb_sa"],
                               heads, head_dim)
    x2 = _ref_layernorm(att2 + query, params["tb_norm1"])
    p = params["tb_ff"]
    ff = jnp.maximum(x2 @ p["w1"].T + p["b1"][0], 0.0) @ p["w2"].T + p["b2"][0]
    return _ref_layernorm(ff + x2, params["tb_norm2"])


# ----------------------------------------------------------------------------
# Parameter init (deterministic, PyTorch shapes)
# ----------------------------------------------------------------------------
def init_params(key, embed_size, heads, forward_expansion):
    head_dim = embed_size // heads
    hidden = forward_expansion * embed_size
    ks = iter(jax.random.split(key, 16))

    def lin(k, shape, scale=0.05):
        return (scale * jax.random.normal(k, shape)).astype(jnp.float32)

    def sa_params():
        return {
            "wv": lin(next(ks), (head_dim, head_dim)),
            "wk": lin(next(ks), (head_dim, head_dim)),
            "wq": lin(next(ks), (head_dim, head_dim)),
            "wo": lin(next(ks), (embed_size, embed_size)),
            "bo": lin(next(ks), (1, embed_size)),
        }

    def ln_params():
        return {"gamma": jnp.ones((1, embed_size), jnp.float32),
                "beta": jnp.zeros((1, embed_size), jnp.float32)}

    return {
        "sa": sa_params(),
        "norm": ln_params(),
        "tb_sa": sa_params(),
        "tb_norm1": ln_params(),
        "tb_norm2": ln_params(),
        "tb_ff": {
            "w1": lin(next(ks), (hidden, embed_size)),
            "b1": lin(next(ks), (1, hidden)),
            "w2": lin(next(ks), (embed_size, hidden)),
            "b2": lin(next(ks), (1, embed_size)),
        },
    }


# ----------------------------------------------------------------------------
if __name__ == "__main__":
    N, L, E, HEADS, FWD = 2, 8, 32, 4, 4
    HD = E // HEADS

    root = jax.random.PRNGKey(0)
    kx, kv, kk, kp = jax.random.split(root, 4)

    x = jax.random.normal(kx, (N, L, E), jnp.float32)        # decoder input
    value = jax.random.normal(kv, (N, L, E), jnp.float32)    # encoder output (V)
    key_t = jax.random.normal(kk, (N, L, E), jnp.float32)    # encoder output (K)

    # trg_mask: causal (lower triangular); src_mask: all valid
    trg_mask = jnp.tril(jnp.ones((L, L), jnp.float32))[None].repeat(N, axis=0)
    src_mask = jnp.ones((N, L, L), jnp.float32)

    params = init_params(kp, E, HEADS, FWD)

    _single_buffering_supported()            # run the pl.Buffered(1) probe once

    ref = _ref_decoder_block(x, value, key_t, src_mask, trg_mask, params, HEADS, HD)

    # f32 matmul operands: tight check against the reference.
    fwd_f32 = jax.jit(partial(decoder_block_forward, heads=HEADS, head_dim=HD,
                              compute_dtype=jnp.float32))
    out = jax.block_until_ready(fwd_f32(x, value, key_t, src_mask, trg_mask, params))
    assert out.shape == (N, L, E)
    assert jnp.allclose(out, ref, atol=5e-3, rtol=5e-3), "f32 mismatch vs reference"

    # bf16 matmul operands (production mode): looser sanity check.
    fwd_bf16 = jax.jit(partial(decoder_block_forward, heads=HEADS, head_dim=HD,
                               compute_dtype=jnp.bfloat16))
    out16 = jax.block_until_ready(
        fwd_bf16(x, value, key_t, src_mask, trg_mask, params)).astype(jnp.float32)
    assert out16.shape == (N, L, E)
    assert jnp.allclose(out16, ref, atol=1e-1, rtol=1e-1), "bf16 mismatch vs reference"

    print("KERNEL_OK")
</pallas_src>

<mosaic_0001>
module attributes {stable_mosaic.version = 11 : i64} {
  func.func @k(%arg0: i32, %arg1: memref<8x128xf32, #tpu.memory_space<vmem>>, %arg2: memref<8x128xf32, #tpu.memory_space<vmem>>, %arg3: memref<8x128xf32, #tpu.memory_space<vmem>>) attributes {dimension_semantics = [#tpu.dimension_semantics<arbitrary>], iteration_bounds = array<i64: 2>, scalar_prefetch = 0 : i64, scratch_operands = 0 : i64, tpu.core_type = #tpu.core_type<tc>, window_params = [{pipeline_mode = #tpu.pipeline_mode<synchronous>, transform_indices = @transform_0, window_bounds = array<i64: 8, 128>}, {transform_indices = @transform_1, window_bounds = array<i64: 8, 128>}, {transform_indices = @transform_2, window_bounds = array<i64: 8, 128>}]} {
    %c0 = arith.constant 0 : index
    %c0_0 = arith.constant 0 : index
    %0 = vector.load %arg2[%c0, %c0_0] : memref<8x128xf32, #tpu.memory_space<vmem>>, vector<8x128xf32>
    %c0_1 = arith.constant 0 : index
    %c0_2 = arith.constant 0 : index
    %1 = vector.load %arg1[%c0_1, %c0_2] : memref<8x128xf32, #tpu.memory_space<vmem>>, vector<8x128xf32>
    %2 = arith.addf %0, %1 : vector<8x128xf32>
    %c0_3 = arith.constant 0 : index
    %c0_4 = arith.constant 0 : index
    %3 = vector.load %arg3[%c0_3, %c0_4] : memref<8x128xf32, #tpu.memory_space<vmem>>, vector<8x128xf32>
    tpu.vector_store %arg3[%c0_3, %c0_4], %2 {strides = array<i32>} : memref<8x128xf32, #tpu.memory_space<vmem>>, vector<8x128xf32>,
    return
  }
  func.func @transform_0(%arg0: i32) -> (i32, i32) {
    %c0_i32 = arith.constant 0 : i32
    %c0_i32_0 = arith.constant 0 : i32
    %c0_i32_1 = arith.constant 0 : i32
    return %c0_i32, %c0_i32_0 : i32, i32
  }
  func.func @transform_1(%arg0: i32) -> (i32, i32) {
    %c0_i32 = arith.constant 0 : i32
    %c0_i32_0 = arith.constant 0 : i32
    return %arg0, %c0_i32 : i32, i32
  }
  func.func @transform_2(%arg0: i32) -> (i32, i32) {
    %c0_i32 = arith.constant 0 : i32
    %c0_i32_0 = arith.constant 0 : i32
    return %arg0, %c0_i32 : i32, i32
  }
}

module attributes {stable_mosaic.version = 11 : i64} {
  func.func @_mha_flash_kernel(%arg0: i32, %arg1: i32, %arg2: i32, %arg3: memref<1x8x32xf32, #tpu.memory_space<vmem>>, %arg4: memref<1x8x32xf32, #tpu.memory_space<vmem>>, %arg5: memref<1x8x32xf32, #tpu.memory_space<vmem>>, %arg6: memref<1x8x8xi8, #tpu.memory_space<vmem>>, %arg7: memref<8x8xf32, #tpu.memory_space<vmem>>, %arg8: memref<8x8xf32, #tpu.memory_space<vmem>>, %arg9: memref<8x8xf32, #tpu.memory_space<vmem>>, %arg10: memref<32x32xf32, #tpu.memory_space<vmem>>, %arg11: memref<1x32xf32, #tpu.memory_space<vmem>>, %arg12: memref<1x32xf32, #tpu.memory_space<vmem>>, %arg13: memref<1x32xf32, #tpu.memory_space<vmem>>, %arg14: memref<1x8x32xf32, #tpu.memory_space<vmem>>, %arg15: memref<8x32xf32, #tpu.memory_space<vmem>>, %arg16: memref<8x4xf32, #tpu.memory_space<vmem>>, %arg17: memref<8x4xf32, #tpu.memory_space<vmem>>, %arg18: memref<8x32xf32, #tpu.memory_space<vmem>>) attributes {dimension_semantics = [#tpu.dimension_semantics<parallel>, #tpu.dimension_semantics<parallel>, #tpu.dimension_semantics<arbitrary>], iteration_bounds = array<i64: 2, 1, 1>, scalar_prefetch = 0 : i64, scratch_operands = 4 : i64, tpu.core_type = #tpu.core_type<tc>, window_params = [{transform_indices = @transform_0, window_bounds = array<i64: 1, 8, 32>}, {transform_indices = @transform_1, window_bounds = array<i64: 1, 8, 32>}, {transform_indices = @transform_2, window_bounds = array<i64: 1, 8, 32>}, {transform_indices = @transform_3, window_bounds = array<i64: 1, 8, 8>}, {pipeline_mode = #tpu.pipeline_mode<synchronous>, transform_indices = @transform_4, window_bounds = array<i64: 8, 8>}, {pipeline_mode = #tpu.pipeline_mode<synchronous>, transform_indices = @transform_5, window_bounds = array<i64: 8, 8>}, {pipeline_mode = #tpu.pipeline_mode<synchronous>, transform_indices = @transform_6, window_bounds = array<i64: 8, 8>}, {pipeline_mode = #tpu.pipeline_mode<synchronous>, transform_indices = @transform_7, window_bounds = array<i64: 32, 32>}, {pipeline_mode = #tpu.pipeline_mode<synchronous>, transform_indices = @transform_8, window_bounds = array<i64: 1, 32>}, {pipeline_mode = #tpu.pipeline_mode<synchronous>, transform_indices = @transform_9, window_bounds = array<i64: 1, 32>}, {pipeline_mode = #tpu.pipeline_mode<synchronous>, transform_indices = @transform_10, window_bounds = array<i64: 1, 32>}, {transform_indices = @transform_11, window_bounds = array<i64: 1, 8, 32>}]} {
    %c0_i32 = arith.constant 0 : i32
    %0 = arith.cmpi eq, %arg2, %c0_i32 : i32
    %1 = arith.extui %0 : i1 to i32
    %c0_i32_0 = arith.constant 0 : i32
    %2 = arith.cmpi ne, %1, %c0_i32_0 : i32
    scf.if %2 {
      %cst_103 = arith.constant 0xFF800000 : f32
      %142 = vector.broadcast %cst_103 : f32 to vector<8x4xf32>
      %c0_104 = arith.constant 0 : index
      %c0_105 = arith.constant 0 : index
      %143 = vector.load %arg16[%c0_104, %c0_105] : memref<8x4xf32, #tpu.memory_space<vmem>>, vector<8x4xf32>
      tpu.vector_store %arg16[%c0_104, %c0_105], %142 {strides = array<i32>} : memref<8x4xf32, #tpu.memory_space<vmem>>, vector<8x4xf32>,
      %cst_106 = arith.constant 0.000000e+00 : f32
      %144 = vector.broadcast %cst_106 : f32 to vector<8x4xf32>
      %c0_107 = arith.constant 0 : index
      %c0_108 = arith.constant 0 : index
      %145 = vector.load %arg17[%c0_107, %c0_108] : memref<8x4xf32, #tpu.memory_space<vmem>>, vector<8x4xf32>
      tpu.vector_store %arg17[%c0_107, %c0_108], %144 {strides = array<i32>} : memref<8x4xf32, #tpu.memory_space<vmem>>, vector<8x4xf32>,
      %cst_109 = arith.constant 0.000000e+00 : f32
      %146 = vector.broadcast %cst_109 : f32 to vector<8x32xf32>
      %c0_110 = arith.constant 0 : index
      %c0_111 = arith.constant 0 : index
      %147 = vector.load %arg18[%c0_110, %c0_111] : memref<8x32xf32, #tpu.memory_space<vmem>>, vector<8x32xf32>
      tpu.vector_store %arg18[%c0_110, %c0_111], %146 {strides = array<i32>} : memref<8x32xf32, #tpu.memory_space<vmem>>, vector<8x32xf32>,
      %c0_112 = arith.constant 0 : index
      %c0_113 = arith.constant 0 : index
      %c0_114 = arith.constant 0 : index
      %148 = vector.load %arg3[%c0_112, %c0_113, %c0_114] : memref<1x8x32xf32, #tpu.memory_space<vmem>>, vector<1x8x32xf32>
      %149 = vector.shape_cast %148 : vector<1x8x32xf32> to vector<8x32xf32>
      %150 = vector.extract_strided_slice %149 {offsets = [0, 0], sizes = [8, 8], strides = [1, 1]} : vector<8x32xf32> to vector<8x8xf32>
      %c0_115 = arith.constant 0 : index
      %c0_116 = arith.constant 0 : index
      %151 = vector.load %arg7[%c0_115, %c0_116] : memref<8x8xf32, #tpu.memory_space<vmem>>, vector<8x8xf32>
      %cst_117 = arith.constant dense<0.000000e+00> : vector<8x8xf32>
      %152 = tpu.matmul %150, %151, %cst_117 {dimension_numbers = #tpu.dot_dimension_numbers<[1], [0], [0], [1], [0, 0, 1, 1], [], []>} : vector<8x8xf32>, vector<8x8xf32>, vector<8x8xf32> -> vector<8x8xf32>
      %cst_118 = arith.constant 0.176776692 : f32
      %153 = vector.broadcast %cst_118 : f32 to vector<8x8xf32>
      %154 = arith.mulf %152, %153 : vector<8x8xf32>
      %c0_119 = arith.constant 0 : index
      %c0_120 = arith.constant 0 : index
      %155 = vector.load %arg15[%c0_119, %c0_120] : memref<8x32xf32, #tpu.memory_space<vmem>>, vector<8x8xf32>
      tpu.vector_store %arg15[%c0_119, %c0_120], %154 {strides = array<i32>} : memref<8x32xf32, #tpu.memory_space<vmem>>, vector<8x8xf32>,
      %156 = vector.extract_strided_slice %149 {offsets = [0, 8], sizes = [8, 8], strides = [1, 1]} : vector<8x32xf32> to vector<8x8xf32>
      %c0_121 = arith.constant 0 : index
      %c0_122 = arith.constant 0 : index
      %157 = vector.load %arg7[%c0_121, %c0_122] : memref<8x8xf32, #tpu.memory_space<vmem>>, vector<8x8xf32>
      %cst_123 = arith.constant dense<0.000000e+00> : vector<8x8xf32>
      %158 = tpu.matmul %156, %157, %cst_123 {dimension_numbers = #tpu.dot_dimension_numbers<[1], [0], [0], [1], [0, 0, 1, 1], [], []>} : vector<8x8xf32>, vector<8x8xf32>, vector<8x8xf32> -> vector<8x8xf32>
      %cst_124 = arith.constant 0.176776692 : f32
      %159 = vector.broadcast %cst_124 : f32 to vector<8x8xf32>
      %160 = arith.mulf %158, %159 : vector<8x8xf32>
      %c0_125 = arith.constant 0 : index
      %c8_126 = arith.constant 8 : index
      %161 = vector.load %arg15[%c0_125, %c8_126] : memref<8x32xf32, #tpu.memory_space<vmem>>, vector<8x8xf32>
      tpu.vector_store %arg15[%c0_125, %c8_126], %160 {strides = array<i32>} : memref<8x32xf32, #tpu.memory_space<vmem>>, vector<8x8xf32>,
      %162 = vector.extract_strided_slice %149 {offsets = [0, 16], sizes = [8, 8], strides = [1, 1]} : vector<8x32xf32> to vector<8x8xf32>
      %c0_127 = arith.constant 0 : index
      %c0_128 = arith.constant 0 : index
      %163 = vector.load %arg7[%c0_127, %c0_128] : memref<8x8xf32, #tpu.memory_space<vmem>>, vector<8x8xf32>
      %cst_129 = arith.constant dense<0.000000e+00> : vector<8x8xf32>
      %164 = tpu.matmul %162, %163, %cst_129 {dimension_numbers = #tpu.dot_dimension_numbers<[1], [0], [0], [1], [0, 0, 1, 1], [], []>} : vector<8x8xf32>, vector<8x8xf32>, vector<8x8xf32> -> vector<8x8xf32>
      %cst_130 = arith.constant 0.176776692 : f32
      %165 = vector.broadcast %cst_130 : f32 to vector<8x8xf32>
      %166 = arith.mulf %164, %165 : vector<8x8xf32>
      %c0_131 = arith.constant 0 : index
      %c16_132 = arith.constant 16 : index
      %167 = vector.load %arg15[%c0_131, %c16_132] : memref<8x32xf32, #tpu.memory_space<vmem>>, vector<8x8xf32>
      tpu.vector_store %arg15[%c0_131, %c16_132], %166 {strides = array<i32>} : memref<8x32xf32, #tpu.memory_space<vmem>>, vector<8x8xf32>,
      %168 = vector.extract_strided_slice %149 {offsets = [0, 24], sizes = [8, 8], strides = [1, 1]} : vector<8x32xf32> to vector<8x8xf32>
      %c0_133 = arith.constant 0 : index
      %c0_134 = arith.constant 0 : index
      %169 = vector.load %arg7[%c0_133, %c0_134] : memref<8x8xf32, #tpu.memory_space<vmem>>, vector<8x8xf32>
      %cst_135 = arith.constant dense<0.000000e+00> : vector<8x8xf32>
      %170 = tpu.matmul %168, %169, %cst_135 {dimension_numbers = #tpu.dot_dimension_numbers<[1], [0], [0], [1], [0, 0, 1, 1], [], []>} : vector<8x8xf32>, vector<8x8xf32>, vector<8x8xf32> -> vector<8x8xf32>
      %cst_136 = arith.constant 0.176776692 : f32
      %171 = vector.broadcast %cst_136 : f32 to vector<8x8xf32>
      %172 = arith.mulf %170, %171 : vector<8x8xf32>
      %c0_137 = arith.constant 0 : index
      %c24_138 = arith.constant 24 : index
      %173 = vector.load %arg15[%c0_137, %c24_138] : memref<8x32xf32, #tpu.memory_space<vmem>>, vector<8x8xf32>
      tpu.vector_store %arg15[%c0_137, %c24_138], %172 {strides = array<i32>} : memref<8x32xf32, #tpu.memory_space<vmem>>, vector<8x8xf32>,
    } else {
    }
    %c0 = arith.constant 0 : index
    %c0_1 = arith.constant 0 : index
    %c0_2 = arith.constant 0 : index
    %3 = vector.load %arg4[%c0, %c0_1, %c0_2] : memref<1x8x32xf32, #tpu.memory_space<vmem>>, vector<1x8x32xf32>
    %4 = vector.shape_cast %3 : vector<1x8x32xf32> to vector<8x32xf32>
    %c0_3 = arith.constant 0 : index
    %c0_4 = arith.constant 0 : index
    %c0_5 = arith.constant 0 : index
    %5 = vector.load %arg5[%c0_3, %c0_4, %c0_5] : memref<1x8x32xf32, #tpu.memory_space<vmem>>, vector<1x8x32xf32>
    %6 = vector.shape_cast %5 : vector<1x8x32xf32> to vector<8x32xf32>
    %c0_6 = arith.constant 0 : index
    %c0_7 = arith.constant 0 : index
    %c0_8 = arith.constant 0 : index
    %7 = vector.load %arg6[%c0_6, %c0_7, %c0_8] : memref<1x8x8xi8, #tpu.memory_space<vmem>>, vector<1x8x8xi8>
    %8 = vector.shape_cast %7 : vector<1x8x8xi8> to vector<8x8xi8>
    %9 = arith.extsi %8 : vector<8x8xi8> to vector<8x8xi32>
    %c0_i32_9 = arith.constant 0 : i32
    %10 = vector.broadcast %c0_i32_9 : i32 to vector<8x8xi32>
    %11 = arith.cmpi ne, %9, %10 : vector<8x8xi32>
    %cst = arith.constant 0.000000e+00 : f32
    %cst_10 = arith.constant -1.000000e+20 : f32
    %12 = vector.broadcast %cst : f32 to vector<8x8xf32>
    %13 = vector.broadcast %cst_10 : f32 to vector<8x8xf32>
    %14 = arith.select %11, %12, %13 : vector<8x8xi1>, vector<8x8xf32>
    %15 = vector.extract_strided_slice %4 {offsets = [0, 0], sizes = [8, 8], strides = [1, 1]} : vector<8x32xf32> to vector<8x8xf32>
    %c0_11 = arith.constant 0 : index
    %c0_12 = arith.constant 0 : index
    %16 = vector.load %arg8[%c0_11, %c0_12] : memref<8x8xf32, #tpu.memory_space<vmem>>, vector<8x8xf32>
    %cst_13 = arith.constant dense<0.000000e+00> : vector<8x8xf32>
    %17 = tpu.matmul %15, %16, %cst_13 {dimension_numbers = #tpu.dot_dimension_numbers<[1], [0], [0], [1], [0, 0, 1, 1], [], []>} : vector<8x8xf32>, vector<8x8xf32>, vector<8x8xf32> -> vector<8x8xf32>
    %18 = vector.extract_strided_slice %6 {offsets = [0, 0], sizes = [8, 8], strides = [1, 1]} : vector<8x32xf32> to vector<8x8xf32>
    %c0_14 = arith.constant 0 : index
    %c0_15 = arith.constant 0 : index
    %19 = vector.load %arg9[%c0_14, %c0_15] : memref<8x8xf32, #tpu.memory_space<vmem>>, vector<8x8xf32>
    %cst_16 = arith.constant dense<0.000000e+00> : vector<8x8xf32>
    %20 = tpu.matmul %18, %19, %cst_16 {dimension_numbers = #tpu.dot_dimension_numbers<[1], [0], [0], [1], [0, 0, 1, 1], [], []>} : vector<8x8xf32>, vector<8x8xf32>, vector<8x8xf32> -> vector<8x8xf32>
    %c0_17 = arith.constant 0 : index
    %c0_18 = arith.constant 0 : index
    %21 = vector.load %arg15[%c0_17, %c0_18] : memref<8x32xf32, #tpu.memory_space<vmem>>, vector<8x8xf32>
    %cst_19 = arith.constant dense<0.000000e+00> : vector<8x8xf32>
    %22 = tpu.matmul %21, %17, %cst_19 {dimension_numbers = #tpu.dot_dimension_numbers<[1], [1], [0], [0], [0, 0, 1, 0], [], []>} : vector<8x8xf32>, vector<8x8xf32>, vector<8x8xf32> -> vector<8x8xf32>
    %23 = arith.addf %22, %14 : vector<8x8xf32>
    %c0_20 = arith.constant 0 : index
    %c0_21 = arith.constant 0 : index
    %24 = vector.load %arg16[%c0_20, %c0_21] : memref<8x4xf32, #tpu.memory_space<vmem>>, vector<8x1xf32>
    %cst_22 = arith.constant dense<0xFF800000> : vector<8xf32>
    %25 = vector.multi_reduction <maximumf>, %23, %cst_22 [1] : vector<8x8xf32> to vector<8xf32>
    %26 = vector.shape_cast %25 : vector<8xf32> to vector<8x1xf32>
    %27 = arith.maximumf %24, %26 : vector<8x1xf32>
    %28 = arith.subf %24, %27 : vector<8x1xf32>
    %29 = math.exp %28 : vector<8x1xf32>
    %30 = vector.broadcast %27 : vector<8x1xf32> to vector<8x8xf32>
    %31 = arith.subf %23, %30 : vector<8x8xf32>
    %32 = math.exp %31 : vector<8x8xf32>
    %c0_23 = arith.constant 0 : index
    %c0_24 = arith.constant 0 : index
    %33 = vector.load %arg17[%c0_23, %c0_24] : memref<8x4xf32, #tpu.memory_space<vmem>>, vector<8x1xf32>
    %34 = arith.mulf %29, %33 : vector<8x1xf32>
    %cst_25 = arith.constant dense<0.000000e+00> : vector<8xf32>
    %35 = vector.multi_reduction <add>, %32, %cst_25 [1] : vector<8x8xf32> to vector<8xf32>
    %36 = vector.shape_cast %35 : vector<8xf32> to vector<8x1xf32>
    %37 = arith.addf %34, %36 : vector<8x1xf32>
    %c0_26 = arith.constant 0 : index
    %c0_27 = arith.constant 0 : index
    %38 = vector.load %arg17[%c0_26, %c0_27] : memref<8x4xf32, #tpu.memory_space<vmem>>, vector<8x1xf32>
    tpu.vector_store %arg17[%c0_26, %c0_27], %37 {strides = array<i32>} : memref<8x4xf32, #tpu.memory_space<vmem>>, vector<8x1xf32>,
    %c0_28 = arith.constant 0 : index
    %c0_29 = arith.constant 0 : index
    %39 = vector.load %arg18[%c0_28, %c0_29] : memref<8x32xf32, #tpu.memory_space<vmem>>, vector<8x8xf32>
    %40 = vector.broadcast %29 : vector<8x1xf32> to vector<8x8xf32>
    %41 = arith.mulf %40, %39 : vector<8x8xf32>
    %cst_30 = arith.constant dense<0.000000e+00> : vector<8x8xf32>
    %42 = tpu.matmul %32, %20, %cst_30 {dimension_numbers = #tpu.dot_dimension_numbers<[1], [0], [0], [1], [0, 0, 1, 1], [], []>} : vector<8x8xf32>, vector<8x8xf32>, vector<8x8xf32> -> vector<8x8xf32>
    %43 = arith.addf %41, %42 : vector<8x8xf32>
    %c0_31 = arith.constant 0 : index
    %c0_32 = arith.constant 0 : index
    %44 = vector.load %arg18[%c0_31, %c0_32] : memref<8x32xf32, #tpu.memory_space<vmem>>, vector<8x8xf32>
    tpu.vector_store %arg18[%c0_31, %c0_32], %43 {strides = array<i32>} : memref<8x32xf32, #tpu.memory_space<vmem>>, vector<8x8xf32>,
    %c0_33 = arith.constant 0 : index
    %c0_34 = arith.constant 0 : index
    %45 = vector.load %arg16[%c0_33, %c0_34] : memref<8x4xf32, #tpu.memory_space<vmem>>, vector<8x1xf32>
    tpu.vector_store %arg16[%c0_33, %c0_34], %27 {strides = array<i32>} : memref<8x4xf32, #tpu.memory_space<vmem>>, vector<8x1xf32>,
    %46 = vector.extract_strided_slice %4 {offsets = [0, 8], sizes = [8, 8], strides = [1, 1]} : vector<8x32xf32> to vector<8x8xf32>
    %c0_35 = arith.constant 0 : index
    %c0_36 = arith.constant 0 : index
    %47 = vector.load %arg8[%c0_35, %c0_36] : memref<8x8xf32, #tpu.memory_space<vmem>>, vector<8x8xf32>
    %cst_37 = arith.constant dense<0.000000e+00> : vector<8x8xf32>
    %48 = tpu.matmul %46, %47, %cst_37 {dimension_numbers = #tpu.dot_dimension_numbers<[1], [0], [0], [1], [0, 0, 1, 1], [], []>} : vector<8x8xf32>, vector<8x8xf32>, vector<8x8xf32> -> vector<8x8xf32>
    %49 = vector.extract_strided_slice %6 {offsets = [0, 8], sizes = [8, 8], strides = [1, 1]} : vector<8x32xf32> to vector<8x8xf32>
    %c0_38 = arith.constant 0 : index
    %c0_39 = arith.constant 0 : index
    %50 = vector.load %arg9[%c0_38, %c0_39] : memref<8x8xf32, #tpu.memory_space<vmem>>, vector<8x8xf32>
    %cst_40 = arith.constant dense<0.000000e+00> : vector<8x8xf32>
    %51 = tpu.matmul %49, %50, %cst_40 {dimension_numbers = #tpu.dot_dimension_numbers<[1], [0], [0], [1], [0, 0, 1, 1], [], []>} : vector<8x8xf32>, vector<8x8xf32>, vector<8x8xf32> -> vector<8x8xf32>
    %c0_41 = arith.constant 0 : index
    %c8 = arith.constant 8 : index
    %52 = vector.load %arg15[%c0_41, %c8] : memref<8x32xf32, #tpu.memory_space<vmem>>, vector<8x8xf32>
    %cst_42 = arith.constant dense<0.000000e+00> : vector<8x8xf32>
    %53 = tpu.matmul %52, %48, %cst_42 {dimension_numbers = #tpu.dot_dimension_numbers<[1], [1], [0], [0], [0, 0, 1, 0], [], []>} : vector<8x8xf32>, vector<8x8xf32>, vector<8x8xf32> -> vector<8x8xf32>
    %54 = arith.addf %53, %14 : vector<8x8xf32>
    %c0_43 = arith.constant 0 : index
    %c1 = arith.constant 1 : index
    %55 = vector.load %arg16[%c0_43, %c1] : memref<8x4xf32, #tpu.memory_space<vmem>>, vector<8x1xf32>
    %cst_44 = arith.constant dense<0xFF800000> : vector<8xf32>
    %56 = vector.multi_reduction <maximumf>, %54, %cst_44 [1] : vector<8x8xf32> to vector<8xf32>
    %57 = vector.shape_cast %56 : vector<8xf32> to vector<8x1xf32>
    %58 = arith.maximumf %55, %57 : vector<8x1xf32>
    %59 = arith.subf %55, %58 : vector<8x1xf32>
    %60 = math.exp %59 : vector<8x1xf32>
    %61 = vector.broadcast %58 : vector<8x1xf32> to vector<8x8xf32>
    %62 = arith.subf %54, %61 : vector<8x8xf32>
    %63 = math.exp %62 : vector<8x8xf32>
    %c0_45 = arith.constant 0 : index
    %c1_46 = arith.constant 1 : index
    %64 = vector.load %arg17[%c0_45, %c1_46] : memref<8x4xf32, #tpu.memory_space<vmem>>, vector<8x1xf32>
    %65 = arith.mulf %60, %64 : vector<8x1xf32>
    %cst_47 = arith.constant dense<0.000000e+00> : vector<8xf32>
    %66 = vector.multi_reduction <add>, %63, %cst_47 [1] : vector<8x8xf32> to vector<8xf32>
    %67 = vector.shape_cast %66 : vector<8xf32> to vector<8x1xf32>
    %68 = arith.addf %65, %67 : vector<8x1xf32>
    %c0_48 = arith.constant 0 : index
    %c1_49 = arith.constant 1 : index
    %69 = vector.load %arg17[%c0_48, %c1_49] : memref<8x4xf32, #tpu.memory_space<vmem>>, vector<8x1xf32>
    tpu.vector_store %arg17[%c0_48, %c1_49], %68 {strides = array<i32>} : memref<8x4xf32, #tpu.memory_space<vmem>>, vector<8x1xf32>,
    %c0_50 = arith.constant 0 : index
    %c8_51 = arith.constant 8 : index
    %70 = vector.load %arg18[%c0_50, %c8_51] : memref<8x32xf32, #tpu.memory_space<vmem>>, vector<8x8xf32>
    %71 = vector.broadcast %60 : vector<8x1xf32> to vector<8x8xf32>
    %72 = arith.mulf %71, %70 : vector<8x8xf32>
    %cst_52 = arith.constant dense<0.000000e+00> : vector<8x8xf32>
    %73 = tpu.matmul %63, %51, %cst_52 {dimension_numbers = #tpu.dot_dimension_numbers<[1], [0], [0], [1], [0, 0, 1, 1], [], []>} : vector<8x8xf32>, vector<8x8xf32>, vector<8x8xf32> -> vector<8x8xf32>
    %74 = arith.addf %72, %73 : vector<8x8xf32>
    %c0_53 = arith.constant 0 : index
    %c8_54 = arith.constant 8 : index
    %75 = vector.load %arg18[%c0_53, %c8_54] : memref<8x32xf32, #tpu.memory_space<vmem>>, vector<8x8xf32>
    tpu.vector_store %arg18[%c0_53, %c8_54], %74 {strides = array<i32>} : memref<8x32xf32, #tpu.memory_space<vmem>>, vector<8x8xf32>,
    %c0_55 = arith.constant 0 : index
    %c1_56 = arith.constant 1 : index
    %76 = vector.load %arg16[%c0_55, %c1_56] : memref<8x4xf32, #tpu.memory_space<vmem>>, vector<8x1xf32>
    tpu.vector_store %arg16[%c0_55, %c1_56], %58 {strides = array<i32>} : memref<8x4xf32, #tpu.memory_space<vmem>>, vector<8x1xf32>,
    %77 = vector.extract_strided_slice %4 {offsets = [0, 16], sizes = [8, 8], strides = [1, 1]} : vector<8x32xf32> to vector<8x8xf32>
    %c0_57 = arith.constant 0 : index
    %c0_58 = arith.constant 0 : index
    %78 = vector.load %arg8[%c0_57, %c0_58] : memref<8x8xf32, #tpu.memory_space<vmem>>, vector<8x8xf32>
    %cst_59 = arith.constant dense<0.000000e+00> : vector<8x8xf32>
    %79 = tpu.matmul %77, %78, %cst_59 {dimension_numbers = #tpu.dot_dimension_numbers<[1], [0], [0], [1], [0, 0, 1, 1], [], []>} : vector<8x8xf32>, vector<8x8xf32>, vector<8x8xf32> -> vector<8x8xf32>
    %80 = vector.extract_strided_slice %6 {offsets = [0, 16], sizes = [8, 8], strides = [1, 1]} : vector<8x32xf32> to vector<8x8xf32>
    %c0_60 = arith.constant 0 : index
    %c0_61 = arith.constant 0 : index
    %81 = vector.load %arg9[%c0_60, %c0_61] : memref<8x8xf32, #tpu.memory_space<vmem>>, vector<8x8xf32>
    %cst_62 = arith.constant dense<0.000000e+00> : vector<8x8xf32>
    %82 = tpu.matmul %80, %81, %cst_62 {dimension_numbers = #tpu.dot_dimension_numbers<[1], [0], [0], [1], [0, 0, 1, 1], [], []>} : vector<8x8xf32>, vector<8x8xf32>, vector<8x8xf32> -> vector<8x8xf32>
    %c0_63 = arith.constant 0 : index
    %c16 = arith.constant 16 : index
    %83 = vector.load %arg15[%c0_63, %c16] : memref<8x32xf32, #tpu.memory_space<vmem>>, vector<8x8xf32>
    %cst_64 = arith.constant dense<0.000000e+00> : vector<8x8xf32>
    %84 = tpu.matmul %83, %79, %cst_64 {dimension_numbers = #tpu.dot_dimension_numbers<[1], [1], [0], [0], [0, 0, 1, 0], [], []>} : vector<8x8xf32>, vector<8x8xf32>, vector<8x8xf32> -> vector<8x8xf32>
    %85 = arith.addf %84, %14 : vector<8x8xf32>
    %c0_65 = arith.constant 0 : index
    %c2 = arith.constant 2 : index
    %86 = vector.load %arg16[%c0_65, %c2] : memref<8x4xf32, #tpu.memory_space<vmem>>, vector<8x1xf32>
    %cst_66 = arith.constant dense<0xFF800000> : vector<8xf32>
    %87 = vector.multi_reduction <maximumf>, %85, %cst_66 [1] : vector<8x8xf32> to vector<8xf32>
    %88 = vector.shape_cast %87 : vector<8xf32> to vector<8x1xf32>
    %89 = arith.maximumf %86, %88 : vector<8x1xf32>
    %90 = arith.subf %86, %89 : vector<8x1xf32>
    %91 = math.exp %90 : vector<8x1xf32>
    %92 = vector.broadcast %89 : vector<8x1xf32> to vector<8x8xf32>
    %93 = arith.subf %85, %92 : vector<8x8xf32>
    %94 = math.exp %93 : vector<8x8xf32>
    %c0_67 = arith.constant 0 : index
    %c2_68 = arith.constant 2 : index
    %95 = vector.load %arg17[%c0_67, %c2_68] : memref<8x4xf32, #tpu.memory_space<vmem>>, vector<8x1xf32>
    %96 = arith.mulf %91, %95 : vector<8x1xf32>
    %cst_69 = arith.constant dense<0.000000e+00> : vector<8xf32>
    %97 = vector.multi_reduction <add>, %94, %cst_69 [1] : vector<8x8xf32> to vector<8xf32>
    %98 = vector.shape_cast %97 : vector<8xf32> to vector<8x1xf32>
    %99 = arith.addf %96, %98 : vector<8x1xf32>
    %c0_70 = arith.constant 0 : index
    %c2_71 = arith.constant 2 : index
    %100 = vector.load %arg17[%c0_70, %c2_71] : memref<8x4xf32, #tpu.memory_space<vmem>>, vector<8x1xf32>
    tpu.vector_store %arg17[%c0_70, %c2_71], %99 {strides = array<i32>} : memref<8x4xf32, #tpu.memory_space<vmem>>, vector<8x1xf32>,
    %c0_72 = arith.constant 0 : index
    %c16_73 = arith.constant 16 : index
    %101 = vector.load %arg18[%c0_72, %c16_73] : memref<8x32xf32, #tpu.memory_space<vmem>>, vector<8x8xf32>
    %102 = vector.broadcast %91 : vector<8x1xf32> to vector<8x8xf32>
    %103 = arith.mulf %102, %101 : vector<8x8xf32>
    %cst_74 = arith.constant dense<0.000000e+00> : vector<8x8xf32>
    %104 = tpu.matmul %94, %82, %cst_74 {dimension_numbers = #tpu.dot_dimension_numbers<[1], [0], [0], [1], [0, 0, 1, 1], [], []>} : vector<8x8xf32>, vector<8x8xf32>, vector<8x8xf32> -> vector<8x8xf32>
    %105 = arith.addf %103, %104 : vector<8x8xf32>
    %c0_75 = arith.constant 0 : index
    %c16_76 = arith.constant 16 : index
    %106 = vector.load %arg18[%c0_75, %c16_76] : memref<8x32xf32, #tpu.memory_space<vmem>>, vector<8x8xf32>
    tpu.vector_store %arg18[%c0_75, %c16_76], %105 {strides = array<i32>} : memref<8x32xf32, #tpu.memory_space<vmem>>, vector<8x8xf32>,
    %c0_77 = arith.constant 0 : index
    %c2_78 = arith.constant 2 : index
    %107 = vector.load %arg16[%c0_77, %c2_78] : memref<8x4xf32, #tpu.memory_space<vmem>>, vector<8x1xf32>
    tpu.vector_store %arg16[%c0_77, %c2_78], %89 {strides = array<i32>} : memref<8x4xf32, #tpu.memory_space<vmem>>, vector<8x1xf32>,
    %108 = vector.extract_strided_slice %4 {offsets = [0, 24], sizes = [8, 8], strides = [1, 1]} : vector<8x32xf32> to vector<8x8xf32>
    %c0_79 = arith.constant 0 : index
    %c0_80 = arith.constant 0 : index
    %109 = vector.load %arg8[%c0_79, %c0_80] : memref<8x8xf32, #tpu.memory_space<vmem>>, vector<8x8xf32>
    %cst_81 = arith.constant dense<0.000000e+00> : vector<8x8xf32>
    %110 = tpu.matmul %108, %109, %cst_81 {dimension_numbers = #tpu.dot_dimension_numbers<[1], [0], [0], [1], [0, 0, 1, 1], [], []>} : vector<8x8xf32>, vector<8x8xf32>, vector<8x8xf32> -> vector<8x8xf32>
    %111 = vector.extract_strided_slice %6 {offsets = [0, 24], sizes = [8, 8], strides = [1, 1]} : vector<8x32xf32> to vector<8x8xf32>
    %c0_82 = arith.constant 0 : index
    %c0_83 = arith.constant 0 : index
    %112 = vector.load %arg9[%c0_82, %c0_83] : memref<8x8xf32, #tpu.memory_space<vmem>>, vector<8x8xf32>
    %cst_84 = arith.constant dense<0.000000e+00> : vector<8x8xf32>
    %113 = tpu.matmul %111, %112, %cst_84 {dimension_numbers = #tpu.dot_dimension_numbers<[1], [0], [0], [1], [0, 0, 1, 1], [], []>} : vector<8x8xf32>, vector<8x8xf32>, vector<8x8xf32> -> vector<8x8xf32>
    %c0_85 = arith.constant 0 : index
    %c24 = arith.constant 24 : index
    %114 = vector.load %arg15[%c0_85, %c24] : memref<8x32xf32, #tpu.memory_space<vmem>>, vector<8x8xf32>
    %cst_86 = arith.constant dense<0.000000e+00> : vector<8x8xf32>
    %115 = tpu.matmul %114, %110, %cst_86 {dimension_numbers = #tpu.dot_dimension_numbers<[1], [1], [0], [0], [0, 0, 1, 0], [], []>} : vector<8x8xf32>, vector<8x8xf32>, vector<8x8xf32> -> vector<8x8xf32>
    %116 = arith.addf %115, %14 : vector<8x8xf32>
    %c0_87 = arith.constant 0 : index
    %c3 = arith.constant 3 : index
    %117 = vector.load %arg16[%c0_87, %c3] : memref<8x4xf32, #tpu.memory_space<vmem>>, vector<8x1xf32>
    %cst_88 = arith.constant dense<0xFF800000> : vector<8xf32>
    %118 = vector.multi_reduction <maximumf>, %116, %cst_88 [1] : vector<8x8xf32> to vector<8xf32>
    %119 = vector.shape_cast %118 : vector<8xf32> to vector<8x1xf32>
    %120 = arith.maximumf %117, %119 : vector<8x1xf32>
    %121 = arith.subf %117, %120 : vector<8x1xf32>
    %122 = math.exp %121 : vector<8x1xf32>
    %123 = vector.broadcast %120 : vector<8x1xf32> to vector<8x8xf32>
    %124 = arith.subf %116, %123 : vector<8x8xf32>
    %125 = math.exp %124 : vector<8x8xf32>
    %c0_89 = arith.constant 0 : index
    %c3_90 = arith.constant 3 : index
    %126 = vector.load %arg17[%c0_89, %c3_90] : memref<8x4xf32, #tpu.memory_space<vmem>>, vector<8x1xf32>
    %127 = arith.mulf %122, %126 : vector<8x1xf32>
    %cst_91 = arith.constant dense<0.000000e+00> : vector<8xf32>
    %128 = vector.multi_reduction <add>, %125, %cst_91 [1] : vector<8x8xf32> to vector<8xf32>
    %129 = vector.shape_cast %128 : vector<8xf32> to vector<8x1xf32>
    %130 = arith.addf %127, %129 : vector<8x1xf32>
    %c0_92 = arith.constant 0 : index
    %c3_93 = arith.constant 3 : index
    %131 = vector.load %arg17[%c0_92, %c3_93] : memref<8x4xf32, #tpu.memory_space<vmem>>, vector<8x1xf32>
    tpu.vector_store %arg17[%c0_92, %c3_93], %130 {strides = array<i32>} : memref<8x4xf32, #tpu.memory_space<vmem>>, vector<8x1xf32>,
    %c0_94 = arith.constant 0 : index
    %c24_95 = arith.constant 24 : index
    %132 = vector.load %arg18[%c0_94, %c24_95] : memref<8x32xf32, #tpu.memory_space<vmem>>, vector<8x8xf32>
    %133 = vector.broadcast %122 : vector<8x1xf32> to vector<8x8xf32>
    %134 = arith.mulf %133, %132 : vector<8x8xf32>
    %cst_96 = arith.constant dense<0.000000e+00> : vector<8x8xf32>
    %135 = tpu.matmul %125, %113, %cst_96 {dimension_numbers = #tpu.dot_dimension_numbers<[1], [0], [0], [1], [0, 0, 1, 1], [], []>} : vector<8x8xf32>, vector<8x8xf32>, vector<8x8xf32> -> vector<8x8xf32>
    %136 = arith.addf %134, %135 : vector<8x8xf32>
    %c0_97 = arith.constant 0 : index
    %c24_98 = arith.constant 24 : index
    %137 = vector.load %arg18[%c0_97, %c24_98] : memref<8x32xf32, #tpu.memory_space<vmem>>, vector<8x8xf32>
    tpu.vector_store %arg18[%c0_97, %c24_98], %136 {strides = array<i32>} : memref<8x32xf32, #tpu.memory_space<vmem>>, vector<8x8xf32>,
    %c0_99 = arith.constant 0 : index
    %c3_100 = arith.constant 3 : index
    %138 = vector.load %arg16[%c0_99, %c3_100] : memref<8x4xf32, #tpu.memory_space<vmem>>, vector<8x1xf32>
    tpu.vector_store %arg16[%c0_99, %c3_100], %120 {strides = array<i32>} : memref<8x4xf32, #tpu.memory_space<vmem>>, vector<8x1xf32>,
    %c0_i32_101 = arith.constant 0 : i32
    %139 = arith.cmpi eq, %arg2, %c0_i32_101 : i32
    %140 = arith.extui %139 : i1 to i32
    %c0_i32_102 = arith.constant 0 : i32
    %141 = arith.cmpi ne, %140, %c0_i32_102 : i32
    scf.if %141 {
      %c0_103 = arith.constant 0 : index
      %c0_104 = arith.constant 0 : index
      %142 = vector.load %arg17[%c0_103, %c0_104] : memref<8x4xf32, #tpu.memory_space<vmem>>, vector<8x4xf32>
      %143 = tpu.reciprocal %142 {approx = true} : vector<8x4xf32> -> vector<8x4xf32>
      %c0_105 = arith.constant 0 : index
      %c0_106 = arith.constant 0 : index
      %144 = vector.load %arg18[%c0_105, %c0_106] : memref<8x32xf32, #tpu.memory_space<vmem>>, vector<8x8xf32>
      %145 = vector.extract_strided_slice %143 {offsets = [0, 0], sizes = [8, 1], strides = [1, 1]} : vector<8x4xf32> to vector<8x1xf32>
      %146 = vector.broadcast %145 : vector<8x1xf32> to vector<8x8xf32>
      %147 = arith.mulf %144, %146 : vector<8x8xf32>
      %c0_107 = arith.constant 0 : index
      %c0_108 = arith.constant 0 : index
      %148 = vector.load %arg18[%c0_107, %c0_108] : memref<8x32xf32, #tpu.memory_space<vmem>>, vector<8x8xf32>
      tpu.vector_store %arg18[%c0_107, %c0_108], %147 {strides = array<i32>} : memref<8x32xf32, #tpu.memory_space<vmem>>, vector<8x8xf32>,
      %c0_109 = arith.constant 0 : index
      %c8_110 = arith.constant 8 : index
      %149 = vector.load %arg18[%c0_109, %c8_110] : memref<8x32xf32, #tpu.memory_space<vmem>>, vector<8x8xf32>
      %150 = vector.extract_strided_slice %143 {offsets = [0, 1], sizes = [8, 1], strides = [1, 1]} : vector<8x4xf32> to vector<8x1xf32>
      %151 = vector.broadcast %150 : vector<8x1xf32> to vector<8x8xf32>
      %152 = arith.mulf %149, %151 : vector<8x8xf32>
      %c0_111 = arith.constant 0 : index
      %c8_112 = arith.constant 8 : index
      %153 = vector.load %arg18[%c0_111, %c8_112] : memref<8x32xf32, #tpu.memory_space<vmem>>, vector<8x8xf32>
      tpu.vector_store %arg18[%c0_111, %c8_112], %152 {strides = array<i32>} : memref<8x32xf32, #tpu.memory_space<vmem>>, vector<8x8xf32>,
      %c0_113 = arith.constant 0 : index
      %c16_114 = arith.constant 16 : index
      %154 = vector.load %arg18[%c0_113, %c16_114] : memref<8x32xf32, #tpu.memory_space<vmem>>, vector<8x8xf32>
      %155 = vector.extract_strided_slice %143 {offsets = [0, 2], sizes = [8, 1], strides = [1, 1]} : vector<8x4xf32> to vector<8x1xf32>
      %156 = vector.broadcast %155 : vector<8x1xf32> to vector<8x8xf32>
      %157 = arith.mulf %154, %156 : vector<8x8xf32>
      %c0_115 = arith.constant 0 : index
      %c16_116 = arith.constant 16 : index
      %158 = vector.load %arg18[%c0_115, %c16_116] : memref<8x32xf32, #tpu.memory_space<vmem>>, vector<8x8xf32>
      tpu.vector_store %arg18[%c0_115, %c16_116], %157 {strides = array<i32>} : memref<8x32xf32, #tpu.memory_space<vmem>>, vector<8x8xf32>,
      %c0_117 = arith.constant 0 : index
      %c24_118 = arith.constant 24 : index
      %159 = vector.load %arg18[%c0_117, %c24_118] : memref<8x32xf32, #tpu.memory_space<vmem>>, vector<8x8xf32>
      %160 = vector.extract_strided_slice %143 {offsets = [0, 3], sizes = [8, 1], strides = [1, 1]} : vector<8x4xf32> to vector<8x1xf32>
      %161 = vector.broadcast %160 : vector<8x1xf32> to vector<8x8xf32>
      %162 = arith.mulf %159, %161 : vector<8x8xf32>
      %c0_119 = arith.constant 0 : index
      %c24_120 = arith.constant 24 : index
      %163 = vector.load %arg18[%c0_119, %c24_120] : memref<8x32xf32, #tpu.memory_space<vmem>>, vector<8x8xf32>
      tpu.vector_store %arg18[%c0_119, %c24_120], %162 {strides = array<i32>} : memref<8x32xf32, #tpu.memory_space<vmem>>, vector<8x8xf32>,
      %c0_121 = arith.constant 0 : index
      %c0_122 = arith.constant 0 : index
      %164 = vector.load %arg18[%c0_121, %c0_122] : memref<8x32xf32, #tpu.memory_space<vmem>>, vector<8x32xf32>
      %c0_123 = arith.constant 0 : index
      %c0_124 = arith.constant 0 : index
      %165 = vector.load %arg10[%c0_123, %c0_124] : memref<32x32xf32, #tpu.memory_space<vmem>>, vector<32x32xf32>
      %cst_125 = arith.constant dense<0.000000e+00> : vector<8x32xf32>
      %166 = tpu.matmul %164, %165, %cst_125 {dimension_numbers = #tpu.dot_dimension_numbers<[1], [0], [0], [1], [0, 0, 1, 1], [], []>} : vector<8x32xf32>, vector<32x32xf32>, vector<8x32xf32> -> vector<8x32xf32>
      %c0_126 = arith.constant 0 : index
      %c0_127 = arith.constant 0 : index
      %167 = vector.load %arg11[%c0_126, %c0_127] : memref<1x32xf32, #tpu.memory_space<vmem>>, vector<1x32xf32>
      %168 = vector.broadcast %167 : vector<1x32xf32> to vector<8x32xf32>
      %169 = arith.addf %166, %168 : vector<8x32xf32>
      %c0_128 = arith.constant 0 : index
      %c0_129 = arith.constant 0 : index
      %c0_130 = arith.constant 0 : index
      %170 = vector.load %arg3[%c0_128, %c0_129, %c0_130] : memref<1x8x32xf32, #tpu.memory_space<vmem>>, vector<1x8x32xf32>
      %171 = vector.shape_cast %170 : vector<1x8x32xf32> to vector<8x32xf32>
      %172 = arith.addf %169, %171 : vector<8x32xf32>
      %cst_131 = arith.constant dense<0.000000e+00> : vector<8xf32>
      %173 = vector.multi_reduction <add>, %172, %cst_131 [1] : vector<8x32xf32> to vector<8xf32>
      %174 = vector.shape_cast %173 : vector<8xf32> to vector<8x1xf32>
      %cst_132 = arith.constant 3.200000e+01 : f32
      %175 = vector.broadcast %cst_132 : f32 to vector<8x1xf32>
      %176 = arith.divf %174, %175 : vector<8x1xf32>
      %177 = vector.broadcast %176 : vector<8x1xf32> to vector<8x32xf32>
      %178 = arith.subf %172, %177 : vector<8x32xf32>
      %179 = arith.mulf %178, %178 : vector<8x32xf32>
      %cst_133 = arith.constant dense<0.000000e+00> : vector<8xf32>
      %180 = vector.multi_reduction <add>, %179, %cst_133 [1] : vector<8x32xf32> to vector<8xf32>
      %181 = vector.shape_cast %180 : vector<8xf32> to vector<8x1xf32>
      %cst_134 = arith.constant 3.200000e+01 : f32
      %182 = vector.broadcast %cst_134 : f32 to vector<8x1xf32>
      %183 = arith.divf %181, %182 : vector<8x1xf32>
      %cst_135 = arith.constant 9.99999974E-6 : f32
      %184 = vector.broadcast %cst_135 : f32 to vector<8x1xf32>
      %185 = arith.addf %183, %184 : vector<8x1xf32>
      %186 = math.rsqrt %185 : vector<8x1xf32>
      %187 = vector.broadcast %186 : vector<8x1xf32> to vector<8x32xf32>
      %188 = arith.mulf %178, %187 : vector<8x32xf32>
      %c0_136 = arith.constant 0 : index
      %c0_137 = arith.constant 0 : index
      %189 = vector.load %arg12[%c0_136, %c0_137] : memref<1x32xf32, #tpu.memory_space<vmem>>, vector<1x32xf32>
      %190 = vector.broadcast %189 : vector<1x32xf32> to vector<8x32xf32>
      %191 = arith.mulf %188, %190 : vector<8x32xf32>
      %c0_138 = arith.constant 0 : index
      %c0_139 = arith.constant 0 : index
      %192 = vector.load %arg13[%c0_138, %c0_139] : memref<1x32xf32, #tpu.memory_space<vmem>>, vector<1x32xf32>
      %193 = vector.broadcast %192 : vector<1x32xf32> to vector<8x32xf32>
      %194 = arith.addf %191, %193 : vector<8x32xf32>
      %c0_140 = arith.constant 0 : index
      %c0_141 = arith.constant 0 : index
      %c0_142 = arith.constant 0 : index
      %195 = vector.load %arg14[%c0_140, %c0_141, %c0_142] : memref<1x8x32xf32, #tpu.memory_space<vmem>>, vector<1x8x32xf32>
      %196 = vector.shape_cast %195 : vector<1x8x32xf32> to vector<8x32xf32>
      %197 = vector.shape_cast %194 : vector<8x32xf32> to vector<1x8x32xf32>
      tpu.vector_store %arg14[%c0_140, %c0_141, %c0_142], %197 {strides = array<i32>} : memref<1x8x32xf32, #tpu.memory_space<vmem>>, vector<1x8x32xf32>,
    } else {
    }
    return
  }
  func.func @transform_0(%arg0: i32, %arg1: i32, %arg2: i32) -> (i32, i32, i32) {
    %c0_i32 = arith.constant 0 : i32
    %c0_i32_0 = arith.constant 0 : i32
    return %arg0, %arg1, %c0_i32 : i32, i32, i32
  }
  func.func @transform_1(%arg0: i32, %arg1: i32, %arg2: i32) -> (i32, i32, i32) {
    %c0_i32 = arith.constant 0 : i32
    %c0_i32_0 = arith.constant 0 : i32
    return %arg0, %arg2, %c0_i32 : i32, i32, i32
  }
  func.func @transform_2(%arg0: i32, %arg1: i32, %arg2: i32) -> (i32, i32, i32) {
    %c0_i32 = arith.constant 0 : i32
    %c0_i32_0 = arith.constant 0 : i32
    return %arg0, %arg2, %c0_i32 : i32, i32, i32
  }
  func.func @transform_3(%arg0: i32, %arg1: i32, %arg2: i32) -> (i32, i32, i32) {
    %c0_i32 = arith.constant 0 : i32
    return %arg0, %arg1, %arg2 : i32, i32, i32
  }
  func.func @transform_4(%arg0: i32, %arg1: i32, %arg2: i32) -> (i32, i32) {
    %c0_i32 = arith.constant 0 : i32
    %c0_i32_0 = arith.constant 0 : i32
    %c0_i32_1 = arith.constant 0 : i32
    return %c0_i32, %c0_i32_0 : i32, i32
  }
  func.func @transform_5(%arg0: i32, %arg1: i32, %arg2: i32) -> (i32, i32) {
    %c0_i32 = arith.constant 0 : i32
    %c0_i32_0 = arith.constant 0 : i32
    %c0_i32_1 = arith.constant 0 : i32
    return %c0_i32, %c0_i32_0 : i32, i32
  }
  func.func @transform_6(%arg0: i32, %arg1: i32, %arg2: i32) -> (i32, i32) {
    %c0_i32 = arith.constant 0 : i32
    %c0_i32_0 = arith.constant 0 : i32
    %c0_i32_1 = arith.constant 0 : i32
    return %c0_i32, %c0_i32_0 : i32, i32
  }
  func.func @transform_7(%arg0: i32, %arg1: i32, %arg2: i32) -> (i32, i32) {
    %c0_i32 = arith.constant 0 : i32
    %c0_i32_0 = arith.constant 0 : i32
    %c0_i32_1 = arith.constant 0 : i32
    return %c0_i32, %c0_i32_0 : i32, i32
  }
  func.func @transform_8(%arg0: i32, %arg1: i32, %arg2: i32) -> (i32, i32) {
    %c0_i32 = arith.constant 0 : i32
    %c0_i32_0 = arith.constant 0 : i32
    %c0_i32_1 = arith.constant 0 : i32
    return %c0_i32, %c0_i32_0 : i32, i32
  }
  func.func @transform_9(%arg0: i32, %arg1: i32, %arg2: i32) -> (i32, i32) {
    %c0_i32 = arith.constant 0 : i32
    %c0_i32_0 = arith.constant 0 : i32
    %c0_i32_1 = arith.constant 0 : i32
    return %c0_i32, %c0_i32_0 : i32, i32
  }
  func.func @transform_10(%arg0: i32, %arg1: i32, %arg2: i32) -> (i32, i32) {
    %c0_i32 = arith.constant 0 : i32
    %c0_i32_0 = arith.constant 0 : i32
    %c0_i32_1 = arith.constant 0 : i32
    return %c0_i32, %c0_i32_0 : i32, i32
  }
  func.func @transform_11(%arg0: i32, %arg1: i32, %arg2: i32) -> (i32, i32, i32) {
    %c0_i32 = arith.constant 0 : i32
    %c0_i32_0 = arith.constant 0 : i32
    return %arg0, %arg1, %c0_i32 : i32, i32, i32
  }
}

module attributes {stable_mosaic.version = 11 : i64} {
  func.func @_mha_flash_kernel_shared_kv(%arg0: i32, %arg1: i32, %arg2: i32, %arg3: memref<1x8x32xf32, #tpu.memory_space<vmem>>, %arg4: memref<1x8x32xf32, #tpu.memory_space<vmem>>, %arg5: memref<1x8x8xi8, #tpu.memory_space<vmem>>, %arg6: memref<8x8xf32, #tpu.memory_space<vmem>>, %arg7: memref<8x8xf32, #tpu.memory_space<vmem>>, %arg8: memref<8x8xf32, #tpu.memory_space<vmem>>, %arg9: memref<32x32xf32, #tpu.memory_space<vmem>>, %arg10: memref<1x32xf32, #tpu.memory_space<vmem>>, %arg11: memref<1x32xf32, #tpu.memory_space<vmem>>, %arg12: memref<1x32xf32, #tpu.memory_space<vmem>>, %arg13: memref<1x8x32xf32, #tpu.memory_space<vmem>>, %arg14: memref<8x32xf32, #tpu.memory_space<vmem>>, %arg15: memref<8x4xf32, #tpu.memory_space<vmem>>, %arg16: memref<8x4xf32, #tpu.memory_space<vmem>>, %arg17: memref<8x32xf32, #tpu.memory_space<vmem>>) attributes {dimension_semantics = [#tpu.dimension_semantics<parallel>, #tpu.dimension_semantics<parallel>, #tpu.dimension_semantics<arbitrary>], iteration_bounds = array<i64: 2, 1, 1>, scalar_prefetch = 0 : i64, scratch_operands = 4 : i64, tpu.core_type = #tpu.core_type<tc>, window_params = [{transform_indices = @transform_0, window_bounds = array<i64: 1, 8, 32>}, {transform_indices = @transform_1, window_bounds = array<i64: 1, 8, 32>}, {transform_indices = @transform_2, window_bounds = array<i64: 1, 8, 8>}, {pipeline_mode = #tpu.pipeline_mode<synchronous>, transform_indices = @transform_3, window_bounds = array<i64: 8, 8>}, {pipeline_mode = #tpu.pipeline_mode<synchronous>, transform_indices = @transform_4, window_bounds = array<i64: 8, 8>}, {pipeline_mode = #tpu.pipeline_mode<synchronous>, transform_indices = @transform_5, window_bounds = array<i64: 8, 8>}, {pipeline_mode = #tpu.pipeline_mode<synchronous>, transform_indices = @transform_6, window_bounds = array<i64: 32, 32>}, {pipeline_mode = #tpu.pipeline_mode<synchronous>, transform_indices = @transform_7, window_bounds = array<i64: 1, 32>}, {pipeline_mode = #tpu.pipeline_mode<synchronous>, transform_indices = @transform_8, window_bounds = array<i64: 1, 32>}, {pipeline_mode = #tpu.pipeline_mode<synchronous>, transform_indices = @transform_9, window_bounds = array<i64: 1, 32>}, {transform_indices = @transform_10, window_bounds = array<i64: 1, 8, 32>}]} {
    %c0_i32 = arith.constant 0 : i32
    %0 = arith.cmpi eq, %arg2, %c0_i32 : i32
    %1 = arith.extui %0 : i1 to i32
    %c0_i32_0 = arith.constant 0 : i32
    %2 = arith.cmpi ne, %1, %c0_i32_0 : i32
    scf.if %2 {
      %cst_100 = arith.constant 0xFF800000 : f32
      %140 = vector.broadcast %cst_100 : f32 to vector<8x4xf32>
      %c0_101 = arith.constant 0 : index
      %c0_102 = arith.constant 0 : index
      %141 = vector.load %arg15[%c0_101, %c0_102] : memref<8x4xf32, #tpu.memory_space<vmem>>, vector<8x4xf32>
      tpu.vector_store %arg15[%c0_101, %c0_102], %140 {strides = array<i32>} : memref<8x4xf32, #tpu.memory_space<vmem>>, vector<8x4xf32>,
      %cst_103 = arith.constant 0.000000e+00 : f32
      %142 = vector.broadcast %cst_103 : f32 to vector<8x4xf32>
      %c0_104 = arith.constant 0 : index
      %c0_105 = arith.constant 0 : index
      %143 = vector.load %arg16[%c0_104, %c0_105] : memref<8x4xf32, #tpu.memory_space<vmem>>, vector<8x4xf32>
      tpu.vector_store %arg16[%c0_104, %c0_105], %142 {strides = array<i32>} : memref<8x4xf32, #tpu.memory_space<vmem>>, vector<8x4xf32>,
      %cst_106 = arith.constant 0.000000e+00 : f32
      %144 = vector.broadcast %cst_106 : f32 to vector<8x32xf32>
      %c0_107 = arith.constant 0 : index
      %c0_108 = arith.constant 0 : index
      %145 = vector.load %arg17[%c0_107, %c0_108] : memref<8x32xf32, #tpu.memory_space<vmem>>, vector<8x32xf32>
      tpu.vector_store %arg17[%c0_107, %c0_108], %144 {strides = array<i32>} : memref<8x32xf32, #tpu.memory_space<vmem>>, vector<8x32xf32>,
      %c0_109 = arith.constant 0 : index
      %c0_110 = arith.constant 0 : index
      %c0_111 = arith.constant 0 : index
      %146 = vector.load %arg3[%c0_109, %c0_110, %c0_111] : memref<1x8x32xf32, #tpu.memory_space<vmem>>, vector<1x8x32xf32>
      %147 = vector.shape_cast %146 : vector<1x8x32xf32> to vector<8x32xf32>
      %148 = vector.extract_strided_slice %147 {offsets = [0, 0], sizes = [8, 8], strides = [1, 1]} : vector<8x32xf32> to vector<8x8xf32>
      %c0_112 = arith.constant 0 : index
      %c0_113 = arith.constant 0 : index
      %149 = vector.load %arg6[%c0_112, %c0_113] : memref<8x8xf32, #tpu.memory_space<vmem>>, vector<8x8xf32>
      %cst_114 = arith.constant dense<0.000000e+00> : vector<8x8xf32>
      %150 = tpu.matmul %148, %149, %cst_114 {dimension_numbers = #tpu.dot_dimension_numbers<[1], [0], [0], [1], [0, 0, 1, 1], [], []>} : vector<8x8xf32>, vector<8x8xf32>, vector<8x8xf32> -> vector<8x8xf32>
      %cst_115 = arith.constant 0.176776692 : f32
      %151 = vector.broadcast %cst_115 : f32 to vector<8x8xf32>
      %152 = arith.mulf %150, %151 : vector<8x8xf32>
      %c0_116 = arith.constant 0 : index
      %c0_117 = arith.constant 0 : index
      %153 = vector.load %arg14[%c0_116, %c0_117] : memref<8x32xf32, #tpu.memory_space<vmem>>, vector<8x8xf32>
      tpu.vector_store %arg14[%c0_116, %c0_117], %152 {strides = array<i32>} : memref<8x32xf32, #tpu.memory_space<vmem>>, vector<8x8xf32>,
      %154 = vector.extract_strided_slice %147 {offsets = [0, 8], sizes = [8, 8], strides = [1, 1]} : vector<8x32xf32> to vector<8x8xf32>
      %c0_118 = arith.constant 0 : index
      %c0_119 = arith.constant 0 : index
      %155 = vector.load %arg6[%c0_118, %c0_119] : memref<8x8xf32, #tpu.memory_space<vmem>>, vector<8x8xf32>
      %cst_120 = arith.constant dense<0.000000e+00> : vector<8x8xf32>
      %156 = tpu.matmul %154, %155, %cst_120 {dimension_numbers = #tpu.dot_dimension_numbers<[1], [0], [0], [1], [0, 0, 1, 1], [], []>} : vector<8x8xf32>, vector<8x8xf32>, vector<8x8xf32> -> vector<8x8xf32>
      %cst_121 = arith.constant 0.176776692 : f32
      %157 = vector.broadcast %cst_121 : f32 to vector<8x8xf32>
      %158 = arith.mulf %156, %157 : vector<8x8xf32>
      %c0_122 = arith.constant 0 : index
      %c8_123 = arith.constant 8 : index
      %159 = vector.load %arg14[%c0_122, %c8_123] : memref<8x32xf32, #tpu.memory_space<vmem>>, vector<8x8xf32>
      tpu.vector_store %arg14[%c0_122, %c8_123], %158 {strides = array<i32>} : memref<8x32xf32, #tpu.memory_space<vmem>>, vector<8x8xf32>,
      %160 = vector.extract_strided_slice %147 {offsets = [0, 16], sizes = [8, 8], strides = [1, 1]} : vector<8x32xf32> to vector<8x8xf32>
      %c0_124 = arith.constant 0 : index
      %c0_125 = arith.constant 0 : index
      %161 = vector.load %arg6[%c0_124, %c0_125] : memref<8x8xf32, #tpu.memory_space<vmem>>, vector<8x8xf32>
      %cst_126 = arith.constant dense<0.000000e+00> : vector<8x8xf32>
      %162 = tpu.matmul %160, %161, %cst_126 {dimension_numbers = #tpu.dot_dimension_numbers<[1], [0], [0], [1], [0, 0, 1, 1], [], []>} : vector<8x8xf32>, vector<8x8xf32>, vector<8x8xf32> -> vector<8x8xf32>
      %cst_127 = arith.constant 0.176776692 : f32
      %163 = vector.broadcast %cst_127 : f32 to vector<8x8xf32>
      %164 = arith.mulf %162, %163 : vector<8x8xf32>
      %c0_128 = arith.constant 0 : index
      %c16_129 = arith.constant 16 : index
      %165 = vector.load %arg14[%c0_128, %c16_129] : memref<8x32xf32, #tpu.memory_space<vmem>>, vector<8x8xf32>
      tpu.vector_store %arg14[%c0_128, %c16_129], %164 {strides = array<i32>} : memref<8x32xf32, #tpu.memory_space<vmem>>, vector<8x8xf32>,
      %166 = vector.extract_strided_slice %147 {offsets = [0, 24], sizes = [8, 8], strides = [1, 1]} : vector<8x32xf32> to vector<8x8xf32>
      %c0_130 = arith.constant 0 : index
      %c0_131 = arith.constant 0 : index
      %167 = vector.load %arg6[%c0_130, %c0_131] : memref<8x8xf32, #tpu.memory_space<vmem>>, vector<8x8xf32>
      %cst_132 = arith.constant dense<0.000000e+00> : vector<8x8xf32>
      %168 = tpu.matmul %166, %167, %cst_132 {dimension_numbers = #tpu.dot_dimension_numbers<[1], [0], [0], [1], [0, 0, 1, 1], [], []>} : vector<8x8xf32>, vector<8x8xf32>, vector<8x8xf32> -> vector<8x8xf32>
      %cst_133 = arith.constant 0.176776692 : f32
      %169 = vector.broadcast %cst_133 : f32 to vector<8x8xf32>
      %170 = arith.mulf %168, %169 : vector<8x8xf32>
      %c0_134 = arith.constant 0 : index
      %c24_135 = arith.constant 24 : index
      %171 = vector.load %arg14[%c0_134, %c24_135] : memref<8x32xf32, #tpu.memory_space<vmem>>, vector<8x8xf32>
      tpu.vector_store %arg14[%c0_134, %c24_135], %170 {strides = array<i32>} : memref<8x32xf32, #tpu.memory_space<vmem>>, vector<8x8xf32>,
    } else {
    }
    %c0 = arith.constant 0 : index
    %c0_1 = arith.constant 0 : index
    %c0_2 = arith.constant 0 : index
    %3 = vector.load %arg4[%c0, %c0_1, %c0_2] : memref<1x8x32xf32, #tpu.memory_space<vmem>>, vector<1x8x32xf32>
    %4 = vector.shape_cast %3 : vector<1x8x32xf32> to vector<8x32xf32>
    %c0_3 = arith.constant 0 : index
    %c0_4 = arith.constant 0 : index
    %c0_5 = arith.constant 0 : index
    %5 = vector.load %arg5[%c0_3, %c0_4, %c0_5] : memref<1x8x8xi8, #tpu.memory_space<vmem>>, vector<1x8x8xi8>
    %6 = vector.shape_cast %5 : vector<1x8x8xi8> to vector<8x8xi8>
    %7 = arith.extsi %6 : vector<8x8xi8> to vector<8x8xi32>
    %c0_i32_6 = arith.constant 0 : i32
    %8 = vector.broadcast %c0_i32_6 : i32 to vector<8x8xi32>
    %9 = arith.cmpi ne, %7, %8 : vector<8x8xi32>
    %cst = arith.constant 0.000000e+00 : f32
    %cst_7 = arith.constant -1.000000e+20 : f32
    %10 = vector.broadcast %cst : f32 to vector<8x8xf32>
    %11 = vector.broadcast %cst_7 : f32 to vector<8x8xf32>
    %12 = arith.select %9, %10, %11 : vector<8x8xi1>, vector<8x8xf32>
    %13 = vector.extract_strided_slice %4 {offsets = [0, 0], sizes = [8, 8], strides = [1, 1]} : vector<8x32xf32> to vector<8x8xf32>
    %c0_8 = arith.constant 0 : index
    %c0_9 = arith.constant 0 : index
    %14 = vector.load %arg7[%c0_8, %c0_9] : memref<8x8xf32, #tpu.memory_space<vmem>>, vector<8x8xf32>
    %cst_10 = arith.constant dense<0.000000e+00> : vector<8x8xf32>
    %15 = tpu.matmul %13, %14, %cst_10 {dimension_numbers = #tpu.dot_dimension_numbers<[1], [0], [0], [1], [0, 0, 1, 1], [], []>} : vector<8x8xf32>, vector<8x8xf32>, vector<8x8xf32> -> vector<8x8xf32>
    %16 = vector.extract_strided_slice %4 {offsets = [0, 0], sizes = [8, 8], strides = [1, 1]} : vector<8x32xf32> to vector<8x8xf32>
    %c0_11 = arith.constant 0 : index
    %c0_12 = arith.constant 0 : index
    %17 = vector.load %arg8[%c0_11, %c0_12] : memref<8x8xf32, #tpu.memory_space<vmem>>, vector<8x8xf32>
    %cst_13 = arith.constant dense<0.000000e+00> : vector<8x8xf32>
    %18 = tpu.matmul %16, %17, %cst_13 {dimension_numbers = #tpu.dot_dimension_numbers<[1], [0], [0], [1], [0, 0, 1, 1], [], []>} : vector<8x8xf32>, vector<8x8xf32>, vector<8x8xf32> -> vector<8x8xf32>
    %c0_14 = arith.constant 0 : index
    %c0_15 = arith.constant 0 : index
    %19 = vector.load %arg14[%c0_14, %c0_15] : memref<8x32xf32, #tpu.memory_space<vmem>>, vector<8x8xf32>
    %cst_16 = arith.constant dense<0.000000e+00> : vector<8x8xf32>
    %20 = tpu.matmul %19, %15, %cst_16 {dimension_numbers = #tpu.dot_dimension_numbers<[1], [1], [0], [0], [0, 0, 1, 0], [], []>} : vector<8x8xf32>, vector<8x8xf32>, vector<8x8xf32> -> vector<8x8xf32>
    %21 = arith.addf %20, %12 : vector<8x8xf32>
    %c0_17 = arith.constant 0 : index
    %c0_18 = arith.constant 0 : index
    %22 = vector.load %arg15[%c0_17, %c0_18] : memref<8x4xf32, #tpu.memory_space<vmem>>, vector<8x1xf32>
    %cst_19 = arith.constant dense<0xFF800000> : vector<8xf32>
    %23 = vector.multi_reduction <maximumf>, %21, %cst_19 [1] : vector<8x8xf32> to vector<8xf32>
    %24 = vector.shape_cast %23 : vector<8xf32> to vector<8x1xf32>
    %25 = arith.maximumf %22, %24 : vector<8x1xf32>
    %26 = arith.subf %22, %25 : vector<8x1xf32>
    %27 = math.exp %26 : vector<8x1xf32>
    %28 = vector.broadcast %25 : vector<8x1xf32> to vector<8x8xf32>
    %29 = arith.subf %21, %28 : vector<8x8xf32>
    %30 = math.exp %29 : vector<8x8xf32>
    %c0_20 = arith.constant 0 : index
    %c0_21 = arith.constant 0 : index
    %31 = vector.load %arg16[%c0_20, %c0_21] : memref<8x4xf32, #tpu.memory_space<vmem>>, vector<8x1xf32>
    %32 = arith.mulf %27, %31 : vector<8x1xf32>
    %cst_22 = arith.constant dense<0.000000e+00> : vector<8xf32>
    %33 = vector.multi_reduction <add>, %30, %cst_22 [1] : vector<8x8xf32> to vector<8xf32>
    %34 = vector.shape_cast %33 : vector<8xf32> to vector<8x1xf32>
    %35 = arith.addf %32, %34 : vector<8x1xf32>
    %c0_23 = arith.constant 0 : index
    %c0_24 = arith.constant 0 : index
    %36 = vector.load %arg16[%c0_23, %c0_24] : memref<8x4xf32, #tpu.memory_space<vmem>>, vector<8x1xf32>
    tpu.vector_store %arg16[%c0_23, %c0_24], %35 {strides = array<i32>} : memref<8x4xf32, #tpu.memory_space<vmem>>, vector<8x1xf32>,
    %c0_25 = arith.constant 0 : index
    %c0_26 = arith.constant 0 : index
    %37 = vector.load %arg17[%c0_25, %c0_26] : memref<8x32xf32, #tpu.memory_space<vmem>>, vector<8x8xf32>
    %38 = vector.broadcast %27 : vector<8x1xf32> to vector<8x8xf32>
    %39 = arith.mulf %38, %37 : vector<8x8xf32>
    %cst_27 = arith.constant dense<0.000000e+00> : vector<8x8xf32>
    %40 = tpu.matmul %30, %18, %cst_27 {dimension_numbers = #tpu.dot_dimension_numbers<[1], [0], [0], [1], [0, 0, 1, 1], [], []>} : vector<8x8xf32>, vector<8x8xf32>, vector<8x8xf32> -> vector<8x8xf32>
    %41 = arith.addf %39, %40 : vector<8x8xf32>
    %c0_28 = arith.constant 0 : index
    %c0_29 = arith.constant 0 : index
    %42 = vector.load %arg17[%c0_28, %c0_29] : memref<8x32xf32, #tpu.memory_space<vmem>>, vector<8x8xf32>
    tpu.vector_store %arg17[%c0_28, %c0_29], %41 {strides = array<i32>} : memref<8x32xf32, #tpu.memory_space<vmem>>, vector<8x8xf32>,
    %c0_30 = arith.constant 0 : index
    %c0_31 = arith.constant 0 : index
    %43 = vector.load %arg15[%c0_30, %c0_31] : memref<8x4xf32, #tpu.memory_space<vmem>>, vector<8x1xf32>
    tpu.vector_store %arg15[%c0_30, %c0_31], %25 {strides = array<i32>} : memref<8x4xf32, #tpu.memory_space<vmem>>, vector<8x1xf32>,
    %44 = vector.extract_strided_slice %4 {offsets = [0, 8], sizes = [8, 8], strides = [1, 1]} : vector<8x32xf32> to vector<8x8xf32>
    %c0_32 = arith.constant 0 : index
    %c0_33 = arith.constant 0 : index
    %45 = vector.load %arg7[%c0_32, %c0_33] : memref<8x8xf32, #tpu.memory_space<vmem>>, vector<8x8xf32>
    %cst_34 = arith.constant dense<0.000000e+00> : vector<8x8xf32>
    %46 = tpu.matmul %44, %45, %cst_34 {dimension_numbers = #tpu.dot_dimension_numbers<[1], [0], [0], [1], [0, 0, 1, 1], [], []>} : vector<8x8xf32>, vector<8x8xf32>, vector<8x8xf32> -> vector<8x8xf32>
    %47 = vector.extract_strided_slice %4 {offsets = [0, 8], sizes = [8, 8], strides = [1, 1]} : vector<8x32xf32> to vector<8x8xf32>
    %c0_35 = arith.constant 0 : index
    %c0_36 = arith.constant 0 : index
    %48 = vector.load %arg8[%c0_35, %c0_36] : memref<8x8xf32, #tpu.memory_space<vmem>>, vector<8x8xf32>
    %cst_37 = arith.constant dense<0.000000e+00> : vector<8x8xf32>
    %49 = tpu.matmul %47, %48, %cst_37 {dimension_numbers = #tpu.dot_dimension_numbers<[1], [0], [0], [1], [0, 0, 1, 1], [], []>} : vector<8x8xf32>, vector<8x8xf32>, vector<8x8xf32> -> vector<8x8xf32>
    %c0_38 = arith.constant 0 : index
    %c8 = arith.constant 8 : index
    %50 = vector.load %arg14[%c0_38, %c8] : memref<8x32xf32, #tpu.memory_space<vmem>>, vector<8x8xf32>
    %cst_39 = arith.constant dense<0.000000e+00> : vector<8x8xf32>
    %51 = tpu.matmul %50, %46, %cst_39 {dimension_numbers = #tpu.dot_dimension_numbers<[1], [1], [0], [0], [0, 0, 1, 0], [], []>} : vector<8x8xf32>, vector<8x8xf32>, vector<8x8xf32> -> vector<8x8xf32>
    %52 = arith.addf %51, %12 : vector<8x8xf32>
    %c0_40 = arith.constant 0 : index
    %c1 = arith.constant 1 : index
    %53 = vector.load %arg15[%c0_40, %c1] : memref<8x4xf32, #tpu.memory_space<vmem>>, vector<8x1xf32>
    %cst_41 = arith.constant dense<0xFF800000> : vector<8xf32>
    %54 = vector.multi_reduction <maximumf>, %52, %cst_41 [1] : vector<8x8xf32> to vector<8xf32>
    %55 = vector.shape_cast %54 : vector<8xf32> to vector<8x1xf32>
    %56 = arith.maximumf %53, %55 : vector<8x1xf32>
    %57 = arith.subf %53, %56 : vector<8x1xf32>
    %58 = math.exp %57 : vector<8x1xf32>
    %59 = vector.broadcast %56 : vector<8x1xf32> to vector<8x8xf32>
    %60 = arith.subf %52, %59 : vector<8x8xf32>
    %61 = math.exp %60 : vector<8x8xf32>
    %c0_42 = arith.constant 0 : index
    %c1_43 = arith.constant 1 : index
    %62 = vector.load %arg16[%c0_42, %c1_43] : memref<8x4xf32, #tpu.memory_space<vmem>>, vector<8x1xf32>
    %63 = arith.mulf %58, %62 : vector<8x1xf32>
    %cst_44 = arith.constant dense<0.000000e+00> : vector<8xf32>
    %64 = vector.multi_reduction <add>, %61, %cst_44 [1] : vector<8x8xf32> to vector<8xf32>
    %65 = vector.shape_cast %64 : vector<8xf32> to vector<8x1xf32>
    %66 = arith.addf %63, %65 : vector<8x1xf32>
    %c0_45 = arith.constant 0 : index
    %c1_46 = arith.constant 1 : index
    %67 = vector.load %arg16[%c0_45, %c1_46] : memref<8x4xf32, #tpu.memory_space<vmem>>, vector<8x1xf32>
    tpu.vector_store %arg16[%c0_45, %c1_46], %66 {strides = array<i32>} : memref<8x4xf32, #tpu.memory_space<vmem>>, vector<8x1xf32>,
    %c0_47 = arith.constant 0 : index
    %c8_48 = arith.constant 8 : index
    %68 = vector.load %arg17[%c0_47, %c8_48] : memref<8x32xf32, #tpu.memory_space<vmem>>, vector<8x8xf32>
    %69 = vector.broadcast %58 : vector<8x1xf32> to vector<8x8xf32>
    %70 = arith.mulf %69, %68 : vector<8x8xf32>
    %cst_49 = arith.constant dense<0.000000e+00> : vector<8x8xf32>
    %71 = tpu.matmul %61, %49, %cst_49 {dimension_numbers = #tpu.dot_dimension_numbers<[1], [0], [0], [1], [0, 0, 1, 1], [], []>} : vector<8x8xf32>, vector<8x8xf32>, vector<8x8xf32> -> vector<8x8xf32>
    %72 = arith.addf %70, %71 : vector<8x8xf32>
    %c0_50 = arith.constant 0 : index
    %c8_51 = arith.constant 8 : index
    %73 = vector.load %arg17[%c0_50, %c8_51] : memref<8x32xf32, #tpu.memory_space<vmem>>, vector<8x8xf32>
    tpu.vector_store %arg17[%c0_50, %c8_51], %72 {strides = array<i32>} : memref<8x32xf32, #tpu.memory_space<vmem>>, vector<8x8xf32>,
    %c0_52 = arith.constant 0 : index
    %c1_53 = arith.constant 1 : index
    %74 = vector.load %arg15[%c0_52, %c1_53] : memref<8x4xf32, #tpu.memory_space<vmem>>, vector<8x1xf32>
    tpu.vector_store %arg15[%c0_52, %c1_53], %56 {strides = array<i32>} : memref<8x4xf32, #tpu.memory_space<vmem>>, vector<8x1xf32>,
    %75 = vector.extract_strided_slice %4 {offsets = [0, 16], sizes = [8, 8], strides = [1, 1]} : vector<8x32xf32> to vector<8x8xf32>
    %c0_54 = arith.constant 0 : index
    %c0_55 = arith.constant 0 : index
    %76 = vector.load %arg7[%c0_54, %c0_55] : memref<8x8xf32, #tpu.memory_space<vmem>>, vector<8x8xf32>
    %cst_56 = arith.constant dense<0.000000e+00> : vector<8x8xf32>
    %77 = tpu.matmul %75, %76, %cst_56 {dimension_numbers = #tpu.dot_dimension_numbers<[1], [0], [0], [1], [0, 0, 1, 1], [], []>} : vector<8x8xf32>, vector<8x8xf32>, vector<8x8xf32> -> vector<8x8xf32>
    %78 = vector.extract_strided_slice %4 {offsets = [0, 16], sizes = [8, 8], strides = [1, 1]} : vector<8x32xf32> to vector<8x8xf32>
    %c0_57 = arith.constant 0 : index
    %c0_58 = arith.constant 0 : index
    %79 = vector.load %arg8[%c0_57, %c0_58] : memref<8x8xf32, #tpu.memory_space<vmem>>, vector<8x8xf32>
    %cst_59 = arith.constant dense<0.000000e+00> : vector<8x8xf32>
    %80 = tpu.matmul %78, %79, %cst_59 {dimension_numbers = #tpu.dot_dimension_numbers<[1], [0], [0], [1], [0, 0, 1, 1], [], []>} : vector<8x8xf32>, vector<8x8xf32>, vector<8x8xf32> -> vector<8x8xf32>
    %c0_60 = arith.constant 0 : index
    %c16 = arith.constant 16 : index
    %81 = vector.load %arg14[%c0_60, %c16] : memref<8x32xf32, #tpu.memory_space<vmem>>, vector<8x8xf32>
    %cst_61 = arith.constant dense<0.000000e+00> : vector<8x8xf32>
    %82 = tpu.matmul %81, %77, %cst_61 {dimension_numbers = #tpu.dot_dimension_numbers<[1], [1], [0], [0], [0, 0, 1, 0], [], []>} : vector<8x8xf32>, vector<8x8xf32>, vector<8x8xf32> -> vector<8x8xf32>
    %83 = arith.addf %82, %12 : vector<8x8xf32>
    %c0_62 = arith.constant 0 : index
    %c2 = arith.constant 2 : index
    %84 = vector.load %arg15[%c0_62, %c2] : memref<8x4xf32, #tpu.memory_space<vmem>>, vector<8x1xf32>
    %cst_63 = arith.constant dense<0xFF800000> : vector<8xf32>
    %85 = vector.multi_reduction <maximumf>, %83, %cst_63 [1] : vector<8x8xf32> to vector<8xf32>
    %86 = vector.shape_cast %85 : vector<8xf32> to vector<8x1xf32>
    %87 = arith.maximumf %84, %86 : vector<8x1xf32>
    %88 = arith.subf %84, %87 : vector<8x1xf32>
    %89 = math.exp %88 : vector<8x1xf32>
    %90 = vector.broadcast %87 : vector<8x1xf32> to vector<8x8xf32>
    %91 = arith.subf %83, %90 : vector<8x8xf32>
    %92 = math.exp %91 : vector<8x8xf32>
    %c0_64 = arith.constant 0 : index
    %c2_65 = arith.constant 2 : index
    %93 = vector.load %arg16[%c0_64, %c2_65] : memref<8x4xf32, #tpu.memory_space<vmem>>, vector<8x1xf32>
    %94 = arith.mulf %89, %93 : vector<8x1xf32>
    %cst_66 = arith.constant dense<0.000000e+00> : vector<8xf32>
    %95 = vector.multi_reduction <add>, %92, %cst_66 [1] : vector<8x8xf32> to vector<8xf32>
    %96 = vector.shape_cast %95 : vector<8xf32> to vector<8x1xf32>
    %97 = arith.addf %94, %96 : vector<8x1xf32>
    %c0_67 = arith.constant 0 : index
    %c2_68 = arith.constant 2 : index
    %98 = vector.load %arg16[%c0_67, %c2_68] : memref<8x4xf32, #tpu.memory_space<vmem>>, vector<8x1xf32>
    tpu.vector_store %arg16[%c0_67, %c2_68], %97 {strides = array<i32>} : memref<8x4xf32, #tpu.memory_space<vmem>>, vector<8x1xf32>,
    %c0_69 = arith.constant 0 : index
    %c16_70 = arith.constant 16 : index
    %99 = vector.load %arg17[%c0_69, %c16_70] : memref<8x32xf32, #tpu.memory_space<vmem>>, vector<8x8xf32>
    %100 = vector.broadcast %89 : vector<8x1xf32> to vector<8x8xf32>
    %101 = arith.mulf %100, %99 : vector<8x8xf32>
    %cst_71 = arith.constant dense<0.000000e+00> : vector<8x8xf32>
    %102 = tpu.matmul %92, %80, %cst_71 {dimension_numbers = #tpu.dot_dimension_numbers<[1], [0], [0], [1], [0, 0, 1, 1], [], []>} : vector<8x8xf32>, vector<8x8xf32>, vector<8x8xf32> -> vector<8x8xf32>
    %103 = arith.addf %101, %102 : vector<8x8xf32>
    %c0_72 = arith.constant 0 : index
    %c16_73 = arith.constant 16 : index
    %104 = vector.load %arg17[%c0_72, %c16_73] : memref<8x32xf32, #tpu.memory_space<vmem>>, vector<8x8xf32>
    tpu.vector_store %arg17[%c0_72, %c16_73], %103 {strides = array<i32>} : memref<8x32xf32, #tpu.memory_space<vmem>>, vector<8x8xf32>,
    %c0_74 = arith.constant 0 : index
    %c2_75 = arith.constant 2 : index
    %105 = vector.load %arg15[%c0_74, %c2_75] : memref<8x4xf32, #tpu.memory_space<vmem>>, vector<8x1xf32>
    tpu.vector_store %arg15[%c0_74, %c2_75], %87 {strides = array<i32>} : memref<8x4xf32, #tpu.memory_space<vmem>>, vector<8x1xf32>,
    %106 = vector.extract_strided_slice %4 {offsets = [0, 24], sizes = [8, 8], strides = [1, 1]} : vector<8x32xf32> to vector<8x8xf32>
    %c0_76 = arith.constant 0 : index
    %c0_77 = arith.constant 0 : index
    %107 = vector.load %arg7[%c0_76, %c0_77] : memref<8x8xf32, #tpu.memory_space<vmem>>, vector<8x8xf32>
    %cst_78 = arith.constant dense<0.000000e+00> : vector<8x8xf32>
    %108 = tpu.matmul %106, %107, %cst_78 {dimension_numbers = #tpu.dot_dimension_numbers<[1], [0], [0], [1], [0, 0, 1, 1], [], []>} : vector<8x8xf32>, vector<8x8xf32>, vector<8x8xf32> -> vector<8x8xf32>
    %109 = vector.extract_strided_slice %4 {offsets = [0, 24], sizes = [8, 8], strides = [1, 1]} : vector<8x32xf32> to vector<8x8xf32>
    %c0_79 = arith.constant 0 : index
    %c0_80 = arith.constant 0 : index
    %110 = vector.load %arg8[%c0_79, %c0_80] : memref<8x8xf32, #tpu.memory_space<vmem>>, vector<8x8xf32>
    %cst_81 = arith.constant dense<0.000000e+00> : vector<8x8xf32>
    %111 = tpu.matmul %109, %110, %cst_81 {dimension_numbers = #tpu.dot_dimension_numbers<[1], [0], [0], [1], [0, 0, 1, 1], [], []>} : vector<8x8xf32>, vector<8x8xf32>, vector<8x8xf32> -> vector<8x8xf32>
    %c0_82 = arith.constant 0 : index
    %c24 = arith.constant 24 : index
    %112 = vector.load %arg14[%c0_82, %c24] : memref<8x32xf32, #tpu.memory_space<vmem>>, vector<8x8xf32>
    %cst_83 = arith.constant dense<0.000000e+00> : vector<8x8xf32>
    %113 = tpu.matmul %112, %108, %cst_83 {dimension_numbers = #tpu.dot_dimension_numbers<[1], [1], [0], [0], [0, 0, 1, 0], [], []>} : vector<8x8xf32>, vector<8x8xf32>, vector<8x8xf32> -> vector<8x8xf32>
    %114 = arith.addf %113, %12 : vector<8x8xf32>
    %c0_84 = arith.constant 0 : index
    %c3 = arith.constant 3 : index
    %115 = vector.load %arg15[%c0_84, %c3] : memref<8x4xf32, #tpu.memory_space<vmem>>, vector<8x1xf32>
    %cst_85 = arith.constant dense<0xFF800000> : vector<8xf32>
    %116 = vector.multi_reduction <maximumf>, %114, %cst_85 [1] : vector<8x8xf32> to vector<8xf32>
    %117 = vector.shape_cast %116 : vector<8xf32> to vector<8x1xf32>
    %118 = arith.maximumf %115, %117 : vector<8x1xf32>
    %119 = arith.subf %115, %118 : vector<8x1xf32>
    %120 = math.exp %119 : vector<8x1xf32>
    %121 = vector.broadcast %118 : vector<8x1xf32> to vector<8x8xf32>
    %122 = arith.subf %114, %121 : vector<8x8xf32>
    %123 = math.exp %122 : vector<8x8xf32>
    %c0_86 = arith.constant 0 : index
    %c3_87 = arith.constant 3 : index
    %124 = vector.load %arg16[%c0_86, %c3_87] : memref<8x4xf32, #tpu.memory_space<vmem>>, vector<8x1xf32>
    %125 = arith.mulf %120, %124 : vector<8x1xf32>
    %cst_88 = arith.constant dense<0.000000e+00> : vector<8xf32>
    %126 = vector.multi_reduction <add>, %123, %cst_88 [1] : vector<8x8xf32> to vector<8xf32>
    %127 = vector.shape_cast %126 : vector<8xf32> to vector<8x1xf32>
    %128 = arith.addf %125, %127 : vector<8x1xf32>
    %c0_89 = arith.constant 0 : index
    %c3_90 = arith.constant 3 : index
    %129 = vector.load %arg16[%c0_89, %c3_90] : memref<8x4xf32, #tpu.memory_space<vmem>>, vector<8x1xf32>
    tpu.vector_store %arg16[%c0_89, %c3_90], %128 {strides = array<i32>} : memref<8x4xf32, #tpu.memory_space<vmem>>, vector<8x1xf32>,
    %c0_91 = arith.constant 0 : index
    %c24_92 = arith.constant 24 : index
    %130 = vector.load %arg17[%c0_91, %c24_92] : memref<8x32xf32, #tpu.memory_space<vmem>>, vector<8x8xf32>
    %131 = vector.broadcast %120 : vector<8x1xf32> to vector<8x8xf32>
    %132 = arith.mulf %131, %130 : vector<8x8xf32>
    %cst_93 = arith.constant dense<0.000000e+00> : vector<8x8xf32>
    %133 = tpu.matmul %123, %111, %cst_93 {dimension_numbers = #tpu.dot_dimension_numbers<[1], [0], [0], [1], [0, 0, 1, 1], [], []>} : vector<8x8xf32>, vector<8x8xf32>, vector<8x8xf32> -> vector<8x8xf32>
    %134 = arith.addf %132, %133 : vector<8x8xf32>
    %c0_94 = arith.constant 0 : index
    %c24_95 = arith.constant 24 : index
    %135 = vector.load %arg17[%c0_94, %c24_95] : memref<8x32xf32, #tpu.memory_space<vmem>>, vector<8x8xf32>
    tpu.vector_store %arg17[%c0_94, %c24_95], %134 {strides = array<i32>} : memref<8x32xf32, #tpu.memory_space<vmem>>, vector<8x8xf32>,
    %c0_96 = arith.constant 0 : index
    %c3_97 = arith.constant 3 : index
    %136 = vector.load %arg15[%c0_96, %c3_97] : memref<8x4xf32, #tpu.memory_space<vmem>>, vector<8x1xf32>
    tpu.vector_store %arg15[%c0_96, %c3_97], %118 {strides = array<i32>} : memref<8x4xf32, #tpu.memory_space<vmem>>, vector<8x1xf32>,
    %c0_i32_98 = arith.constant 0 : i32
    %137 = arith.cmpi eq, %arg2, %c0_i32_98 : i32
    %138 = arith.extui %137 : i1 to i32
    %c0_i32_99 = arith.constant 0 : i32
    %139 = arith.cmpi ne, %138, %c0_i32_99 : i32
    scf.if %139 {
      %c0_100 = arith.constant 0 : index
      %c0_101 = arith.constant 0 : index
      %140 = vector.load %arg16[%c0_100, %c0_101] : memref<8x4xf32, #tpu.memory_space<vmem>>, vector<8x4xf32>
      %141 = tpu.reciprocal %140 {approx = true} : vector<8x4xf32> -> vector<8x4xf32>
      %c0_102 = arith.constant 0 : index
      %c0_103 = arith.constant 0 : index
      %142 = vector.load %arg17[%c0_102, %c0_103] : memref<8x32xf32, #tpu.memory_space<vmem>>, vector<8x8xf32>
      %143 = vector.extract_strided_slice %141 {offsets = [0, 0], sizes = [8, 1], strides = [1, 1]} : vector<8x4xf32> to vector<8x1xf32>
      %144 = vector.broadcast %143 : vector<8x1xf32> to vector<8x8xf32>
      %145 = arith.mulf %142, %144 : vector<8x8xf32>
      %c0_104 = arith.constant 0 : index
      %c0_105 = arith.constant 0 : index
      %146 = vector.load %arg17[%c0_104, %c0_105] : memref<8x32xf32, #tpu.memory_space<vmem>>, vector<8x8xf32>
      tpu.vector_store %arg17[%c0_104, %c0_105], %145 {strides = array<i32>} : memref<8x32xf32, #tpu.memory_space<vmem>>, vector<8x8xf32>,
      %c0_106 = arith.constant 0 : index
      %c8_107 = arith.constant 8 : index
      %147 = vector.load %arg17[%c0_106, %c8_107] : memref<8x32xf32, #tpu.memory_space<vmem>>, vector<8x8xf32>
      %148 = vector.extract_strided_slice %141 {offsets = [0, 1], sizes = [8, 1], strides = [1, 1]} : vector<8x4xf32> to vector<8x1xf32>
      %149 = vector.broadcast %148 : vector<8x1xf32> to vector<8x8xf32>
      %150 = arith.mulf %147, %149 : vector<8x8xf32>
      %c0_108 = arith.constant 0 : index
      %c8_109 = arith.constant 8 : index
      %151 = vector.load %arg17[%c0_108, %c8_109] : memref<8x32xf32, #tpu.memory_space<vmem>>, vector<8x8xf32>
      tpu.vector_store %arg17[%c0_108, %c8_109], %150 {strides = array<i32>} : memref<8x32xf32, #tpu.memory_space<vmem>>, vector<8x8xf32>,
      %c0_110 = arith.constant 0 : index
      %c16_111 = arith.constant 16 : index
      %152 = vector.load %arg17[%c0_110, %c16_111] : memref<8x32xf32, #tpu.memory_space<vmem>>, vector<8x8xf32>
      %153 = vector.extract_strided_slice %141 {offsets = [0, 2], sizes = [8, 1], strides = [1, 1]} : vector<8x4xf32> to vector<8x1xf32>
      %154 = vector.broadcast %153 : vector<8x1xf32> to vector<8x8xf32>
      %155 = arith.mulf %152, %154 : vector<8x8xf32>
      %c0_112 = arith.constant 0 : index
      %c16_113 = arith.constant 16 : index
      %156 = vector.load %arg17[%c0_112, %c16_113] : memref<8x32xf32, #tpu.memory_space<vmem>>, vector<8x8xf32>
      tpu.vector_store %arg17[%c0_112, %c16_113], %155 {strides = array<i32>} : memref<8x32xf32, #tpu.memory_space<vmem>>, vector<8x8xf32>,
      %c0_114 = arith.constant 0 : index
      %c24_115 = arith.constant 24 : index
      %157 = vector.load %arg17[%c0_114, %c24_115] : memref<8x32xf32, #tpu.memory_space<vmem>>, vector<8x8xf32>
      %158 = vector.extract_strided_slice %141 {offsets = [0, 3], sizes = [8, 1], strides = [1, 1]} : vector<8x4xf32> to vector<8x1xf32>
      %159 = vector.broadcast %158 : vector<8x1xf32> to vector<8x8xf32>
      %160 = arith.mulf %157, %159 : vector<8x8xf32>
      %c0_116 = arith.constant 0 : index
      %c24_117 = arith.constant 24 : index
      %161 = vector.load %arg17[%c0_116, %c24_117] : memref<8x32xf32, #tpu.memory_space<vmem>>, vector<8x8xf32>
      tpu.vector_store %arg17[%c0_116, %c24_117], %160 {strides = array<i32>} : memref<8x32xf32, #tpu.memory_space<vmem>>, vector<8x8xf32>,
      %c0_118 = arith.constant 0 : index
      %c0_119 = arith.constant 0 : index
      %162 = vector.load %arg17[%c0_118, %c0_119] : memref<8x32xf32, #tpu.memory_space<vmem>>, vector<8x32xf32>
      %c0_120 = arith.constant 0 : index
      %c0_121 = arith.constant 0 : index
      %163 = vector.load %arg9[%c0_120, %c0_121] : memref<32x32xf32, #tpu.memory_space<vmem>>, vector<32x32xf32>
      %cst_122 = arith.constant dense<0.000000e+00> : vector<8x32xf32>
      %164 = tpu.matmul %162, %163, %cst_122 {dimension_numbers = #tpu.dot_dimension_numbers<[1], [0], [0], [1], [0, 0, 1, 1], [], []>} : vector<8x32xf32>, vector<32x32xf32>, vector<8x32xf32> -> vector<8x32xf32>
      %c0_123 = arith.constant 0 : index
      %c0_124 = arith.constant 0 : index
      %165 = vector.load %arg10[%c0_123, %c0_124] : memref<1x32xf32, #tpu.memory_space<vmem>>, vector<1x32xf32>
      %166 = vector.broadcast %165 : vector<1x32xf32> to vector<8x32xf32>
      %167 = arith.addf %164, %166 : vector<8x32xf32>
      %c0_125 = arith.constant 0 : index
      %c0_126 = arith.constant 0 : index
      %c0_127 = arith.constant 0 : index
      %168 = vector.load %arg3[%c0_125, %c0_126, %c0_127] : memref<1x8x32xf32, #tpu.memory_space<vmem>>, vector<1x8x32xf32>
      %169 = vector.shape_cast %168 : vector<1x8x32xf32> to vector<8x32xf32>
      %170 = arith.addf %167, %169 : vector<8x32xf32>
      %cst_128 = arith.constant dense<0.000000e+00> : vector<8xf32>
      %171 = vector.multi_reduction <add>, %170, %cst_128 [1] : vector<8x32xf32> to vector<8xf32>
      %172 = vector.shape_cast %171 : vector<8xf32> to vector<8x1xf32>
      %cst_129 = arith.constant 3.200000e+01 : f32
      %173 = vector.broadcast %cst_129 : f32 to vector<8x1xf32>
      %174 = arith.divf %172, %173 : vector<8x1xf32>
      %175 = vector.broadcast %174 : vector<8x1xf32> to vector<8x32xf32>
      %176 = arith.subf %170, %175 : vector<8x32xf32>
      %177 = arith.mulf %176, %176 : vector<8x32xf32>
      %cst_130 = arith.constant dense<0.000000e+00> : vector<8xf32>
      %178 = vector.multi_reduction <add>, %177, %cst_130 [1] : vector<8x32xf32> to vector<8xf32>
      %179 = vector.shape_cast %178 : vector<8xf32> to vector<8x1xf32>
      %cst_131 = arith.constant 3.200000e+01 : f32
      %180 = vector.broadcast %cst_131 : f32 to vector<8x1xf32>
      %181 = arith.divf %179, %180 : vector<8x1xf32>
      %cst_132 = arith.constant 9.99999974E-6 : f32
      %182 = vector.broadcast %cst_132 : f32 to vector<8x1xf32>
      %183 = arith.addf %181, %182 : vector<8x1xf32>
      %184 = math.rsqrt %183 : vector<8x1xf32>
      %185 = vector.broadcast %184 : vector<8x1xf32> to vector<8x32xf32>
      %186 = arith.mulf %176, %185 : vector<8x32xf32>
      %c0_133 = arith.constant 0 : index
      %c0_134 = arith.constant 0 : index
      %187 = vector.load %arg11[%c0_133, %c0_134] : memref<1x32xf32, #tpu.memory_space<vmem>>, vector<1x32xf32>
      %188 = vector.broadcast %187 : vector<1x32xf32> to vector<8x32xf32>
      %189 = arith.mulf %186, %188 : vector<8x32xf32>
      %c0_135 = arith.constant 0 : index
      %c0_136 = arith.constant 0 : index
      %190 = vector.load %arg12[%c0_135, %c0_136] : memref<1x32xf32, #tpu.memory_space<vmem>>, vector<1x32xf32>
      %191 = vector.broadcast %190 : vector<1x32xf32> to vector<8x32xf32>
      %192 = arith.addf %189, %191 : vector<8x32xf32>
      %c0_137 = arith.constant 0 : index
      %c0_138 = arith.constant 0 : index
      %c0_139 = arith.constant 0 : index
      %193 = vector.load %arg13[%c0_137, %c0_138, %c0_139] : memref<1x8x32xf32, #tpu.memory_space<vmem>>, vector<1x8x32xf32>
      %194 = vector.shape_cast %193 : vector<1x8x32xf32> to vector<8x32xf32>
      %195 = vector.shape_cast %192 : vector<8x32xf32> to vector<1x8x32xf32>
      tpu.vector_store %arg13[%c0_137, %c0_138, %c0_139], %195 {strides = array<i32>} : memref<1x8x32xf32, #tpu.memory_space<vmem>>, vector<1x8x32xf32>,
    } else {
    }
    return
  }
  func.func @transform_0(%arg0: i32, %arg1: i32, %arg2: i32) -> (i32, i32, i32) {
    %c0_i32 = arith.constant 0 : i32
    %c0_i32_0 = arith.constant 0 : i32
    return %arg0, %arg1, %c0_i32 : i32, i32, i32
  }
  func.func @transform_1(%arg0: i32, %arg1: i32, %arg2: i32) -> (i32, i32, i32) {
    %c0_i32 = arith.constant 0 : i32
    %c0_i32_0 = arith.constant 0 : i32
    return %arg0, %arg2, %c0_i32 : i32, i32, i32
  }
  func.func @transform_2(%arg0: i32, %arg1: i32, %arg2: i32) -> (i32, i32, i32) {
    %c0_i32 = arith.constant 0 : i32
    return %arg0, %arg1, %arg2 : i32, i32, i32
  }
  func.func @transform_3(%arg0: i32, %arg1: i32, %arg2: i32) -> (i32, i32) {
    %c0_i32 = arith.constant 0 : i32
    %c0_i32_0 = arith.constant 0 : i32
    %c0_i32_1 = arith.constant 0 : i32
    return %c0_i32, %c0_i32_0 : i32, i32
  }
  func.func @transform_4(%arg0: i32, %arg1: i32, %arg2: i32) -> (i32, i32) {
    %c0_i32 = arith.constant 0 : i32
    %c0_i32_0 = arith.constant 0 : i32
    %c0_i32_1 = arith.constant 0 : i32
    return %c0_i32, %c0_i32_0 : i32, i32
  }
  func.func @transform_5(%arg0: i32, %arg1: i32, %arg2: i32) -> (i32, i32) {
    %c0_i32 = arith.constant 0 : i32
    %c0_i32_0 = arith.constant 0 : i32
    %c0_i32_1 = arith.constant 0 : i32
    return %c0_i32, %c0_i32_0 : i32, i32
  }
  func.func @transform_6(%arg0: i32, %arg1: i32, %arg2: i32) -> (i32, i32) {
    %c0_i32 = arith.constant 0 : i32
    %c0_i32_0 = arith.constant 0 : i32
    %c0_i32_1 = arith.constant 0 : i32
    return %c0_i32, %c0_i32_0 : i32, i32
  }
  func.func @transform_7(%arg0: i32, %arg1: i32, %arg2: i32) -> (i32, i32) {
    %c0_i32 = arith.constant 0 : i32
    %c0_i32_0 = arith.constant 0 : i32
    %c0_i32_1 = arith.constant 0 : i32
    return %c0_i32, %c0_i32_0 : i32, i32
  }
  func.func @transform_8(%arg0: i32, %arg1: i32, %arg2: i32) -> (i32, i32) {
    %c0_i32 = arith.constant 0 : i32
    %c0_i32_0 = arith.constant 0 : i32
    %c0_i32_1 = arith.constant 0 : i32
    return %c0_i32, %c0_i32_0 : i32, i32
  }
  func.func @transform_9(%arg0: i32, %arg1: i32, %arg2: i32) -> (i32, i32) {
    %c0_i32 = arith.constant 0 : i32
    %c0_i32_0 = arith.constant 0 : i32
    %c0_i32_1 = arith.constant 0 : i32
    return %c0_i32, %c0_i32_0 : i32, i32
  }
  func.func @transform_10(%arg0: i32, %arg1: i32, %arg2: i32) -> (i32, i32, i32) {
    %c0_i32 = arith.constant 0 : i32
    %c0_i32_0 = arith.constant 0 : i32
    return %arg0, %arg1, %c0_i32 : i32, i32, i32
  }
}

module attributes {stable_mosaic.version = 11 : i64} {
  func.func @_ffn_add_ln_kernel(%arg0: i32, %arg1: i32, %arg2: i32, %arg3: memref<1x8x32xf32, #tpu.memory_space<vmem>>, %arg4: memref<32x128xf32, #tpu.memory_space<vmem>>, %arg5: memref<1x128xf32, #tpu.memory_space<vmem>>, %arg6: memref<128x32xf32, #tpu.memory_space<vmem>>, %arg7: memref<1x32xf32, #tpu.memory_space<vmem>>, %arg8: memref<1x32xf32, #tpu.memory_space<vmem>>, %arg9: memref<1x32xf32, #tpu.memory_space<vmem>>, %arg10: memref<1x8x32xf32, #tpu.memory_space<vmem>>, %arg11: memref<8x32xf32, #tpu.memory_space<vmem>>) attributes {dimension_semantics = [#tpu.dimension_semantics<parallel>, #tpu.dimension_semantics<parallel>, #tpu.dimension_semantics<arbitrary>], iteration_bounds = array<i64: 2, 1, 1>, scalar_prefetch = 0 : i64, scratch_operands = 1 : i64, tpu.core_type = #tpu.core_type<tc>, window_params = [{transform_indices = @transform_0, window_bounds = array<i64: 1, 8, 32>}, {transform_indices = @transform_1, window_bounds = array<i64: 32, 128>}, {transform_indices = @transform_2, window_bounds = array<i64: 1, 128>}, {transform_indices = @transform_3, window_bounds = array<i64: 128, 32>}, {pipeline_mode = #tpu.pipeline_mode<synchronous>, transform_indices = @transform_4, window_bounds = array<i64: 1, 32>}, {pipeline_mode = #tpu.pipeline_mode<synchronous>, transform_indices = @transform_5, window_bounds = array<i64: 1, 32>}, {pipeline_mode = #tpu.pipeline_mode<synchronous>, transform_indices = @transform_6, window_bounds = array<i64: 1, 32>}, {transform_indices = @transform_7, window_bounds = array<i64: 1, 8, 32>}]} {
    %c0_i32 = arith.constant 0 : i32
    %0 = arith.cmpi eq, %arg2, %c0_i32 : i32
    %1 = arith.extui %0 : i1 to i32
    %c0_i32_0 = arith.constant 0 : i32
    %2 = arith.cmpi ne, %1, %c0_i32_0 : i32
    scf.if %2 {
      %cst_17 = arith.constant 0.000000e+00 : f32
      %20 = vector.broadcast %cst_17 : f32 to vector<8x32xf32>
      %c0_18 = arith.constant 0 : index
      %c0_19 = arith.constant 0 : index
      %21 = vector.load %arg11[%c0_18, %c0_19] : memref<8x32xf32, #tpu.memory_space<vmem>>, vector<8x32xf32>
      tpu.vector_store %arg11[%c0_18, %c0_19], %20 {strides = array<i32>} : memref<8x32xf32, #tpu.memory_space<vmem>>, vector<8x32xf32>,
    } else {
    }
    %c0 = arith.constant 0 : index
    %c0_1 = arith.constant 0 : index
    %c0_2 = arith.constant 0 : index
    %3 = vector.load %arg3[%c0, %c0_1, %c0_2] : memref<1x8x32xf32, #tpu.memory_space<vmem>>, vector<1x8x32xf32>
    %4 = vector.shape_cast %3 : vector<1x8x32xf32> to vector<8x32xf32>
    %c0_3 = arith.constant 0 : index
    %c0_4 = arith.constant 0 : index
    %5 = vector.load %arg4[%c0_3, %c0_4] : memref<32x128xf32, #tpu.memory_space<vmem>>, vector<32x128xf32>
    %cst = arith.constant dense<0.000000e+00> : vector<8x128xf32>
    %6 = tpu.matmul %4, %5, %cst {dimension_numbers = #tpu.dot_dimension_numbers<[1], [0], [0], [1], [0, 0, 1, 1], [], []>} : vector<8x32xf32>, vector<32x128xf32>, vector<8x128xf32> -> vector<8x128xf32>
    %c0_5 = arith.constant 0 : index
    %c0_6 = arith.constant 0 : index
    %7 = vector.load %arg5[%c0_5, %c0_6] : memref<1x128xf32, #tpu.memory_space<vmem>>, vector<1x128xf32>
    %8 = vector.broadcast %7 : vector<1x128xf32> to vector<8x128xf32>
    %9 = arith.addf %6, %8 : vector<8x128xf32>
    %cst_7 = arith.constant 0.000000e+00 : f32
    %10 = vector.broadcast %cst_7 : f32 to vector<8x128xf32>
    %11 = arith.maximumf %9, %10 : vector<8x128xf32>
    %c0_8 = arith.constant 0 : index
    %c0_9 = arith.constant 0 : index
    %12 = vector.load %arg11[%c0_8, %c0_9] : memref<8x32xf32, #tpu.memory_space<vmem>>, vector<8x32xf32>
    %c0_10 = arith.constant 0 : index
    %c0_11 = arith.constant 0 : index
    %13 = vector.load %arg6[%c0_10, %c0_11] : memref<128x32xf32, #tpu.memory_space<vmem>>, vector<128x32xf32>
    %cst_12 = arith.constant dense<0.000000e+00> : vector<8x32xf32>
    %14 = tpu.matmul %11, %13, %cst_12 {dimension_numbers = #tpu.dot_dimension_numbers<[1], [0], [0], [1], [0, 0, 1, 1], [], []>} : vector<8x128xf32>, vector<128x32xf32>, vector<8x32xf32> -> vector<8x32xf32>
    %15 = arith.addf %12, %14 : vector<8x32xf32>
    %c0_13 = arith.constant 0 : index
    %c0_14 = arith.constant 0 : index
    %16 = vector.load %arg11[%c0_13, %c0_14] : memref<8x32xf32, #tpu.memory_space<vmem>>, vector<8x32xf32>
    tpu.vector_store %arg11[%c0_13, %c0_14], %15 {strides = array<i32>} : memref<8x32xf32, #tpu.memory_space<vmem>>, vector<8x32xf32>,
    %c0_i32_15 = arith.constant 0 : i32
    %17 = arith.cmpi eq, %arg2, %c0_i32_15 : i32
    %18 = arith.extui %17 : i1 to i32
    %c0_i32_16 = arith.constant 0 : i32
    %19 = arith.cmpi ne, %18, %c0_i32_16 : i32
    scf.if %19 {
      %c0_17 = arith.constant 0 : index
      %c0_18 = arith.constant 0 : index
      %20 = vector.load %arg11[%c0_17, %c0_18] : memref<8x32xf32, #tpu.memory_space<vmem>>, vector<8x32xf32>
      %c0_19 = arith.constant 0 : index
      %c0_20 = arith.constant 0 : index
      %21 = vector.load %arg7[%c0_19, %c0_20] : memref<1x32xf32, #tpu.memory_space<vmem>>, vector<1x32xf32>
      %22 = vector.broadcast %21 : vector<1x32xf32> to vector<8x32xf32>
      %23 = arith.addf %20, %22 : vector<8x32xf32>
      %24 = arith.addf %23, %4 : vector<8x32xf32>
      %cst_21 = arith.constant dense<0.000000e+00> : vector<8xf32>
      %25 = vector.multi_reduction <add>, %24, %cst_21 [1] : vector<8x32xf32> to vector<8xf32>
      %26 = vector.shape_cast %25 : vector<8xf32> to vector<8x1xf32>
      %cst_22 = arith.constant 3.200000e+01 : f32
      %27 = vector.broadcast %cst_22 : f32 to vector<8x1xf32>
      %28 = arith.divf %26, %27 : vector<8x1xf32>
      %29 = vector.broadcast %28 : vector<8x1xf32> to vector<8x32xf32>
      %30 = arith.subf %24, %29 : vector<8x32xf32>
      %31 = arith.mulf %30, %30 : vector<8x32xf32>
      %cst_23 = arith.constant dense<0.000000e+00> : vector<8xf32>
      %32 = vector.multi_reduction <add>, %31, %cst_23 [1] : vector<8x32xf32> to vector<8xf32>
      %33 = vector.shape_cast %32 : vector<8xf32> to vector<8x1xf32>
      %cst_24 = arith.constant 3.200000e+01 : f32
      %34 = vector.broadcast %cst_24 : f32 to vector<8x1xf32>
      %35 = arith.divf %33, %34 : vector<8x1xf32>
      %cst_25 = arith.constant 9.99999974E-6 : f32
      %36 = vector.broadcast %cst_25 : f32 to vector<8x1xf32>
      %37 = arith.addf %35, %36 : vector<8x1xf32>
      %38 = math.rsqrt %37 : vector<8x1xf32>
      %39 = vector.broadcast %38 : vector<8x1xf32> to vector<8x32xf32>
      %40 = arith.mulf %30, %39 : vector<8x32xf32>
      %c0_26 = arith.constant 0 : index
      %c0_27 = arith.constant 0 : index
      %41 = vector.load %arg8[%c0_26, %c0_27] : memref<1x32xf32, #tpu.memory_space<vmem>>, vector<1x32xf32>
      %42 = vector.broadcast %41 : vector<1x32xf32> to vector<8x32xf32>
      %43 = arith.mulf %40, %42 : vector<8x32xf32>
      %c0_28 = arith.constant 0 : index
      %c0_29 = arith.constant 0 : index
      %44 = vector.load %arg9[%c0_28, %c0_29] : memref<1x32xf32, #tpu.memory_space<vmem>>, vector<1x32xf32>
      %45 = vector.broadcast %44 : vector<1x32xf32> to vector<8x32xf32>
      %46 = arith.addf %43, %45 : vector<8x32xf32>
      %c0_30 = arith.constant 0 : index
      %c0_31 = arith.constant 0 : index
      %c0_32 = arith.constant 0 : index
      %47 = vector.load %arg10[%c0_30, %c0_31, %c0_32] : memref<1x8x32xf32, #tpu.memory_space<vmem>>, vector<1x8x32xf32>
      %48 = vector.shape_cast %47 : vector<1x8x32xf32> to vector<8x32xf32>
      %49 = vector.shape_cast %46 : vector<8x32xf32> to vector<1x8x32xf32>
      tpu.vector_store %arg10[%c0_30, %c0_31, %c0_32], %49 {strides = array<i32>} : memref<1x8x32xf32, #tpu.memory_space<vmem>>, vector<1x8x32xf32>,
    } else {
    }
    return
  }
  func.func @transform_0(%arg0: i32, %arg1: i32, %arg2: i32) -> (i32, i32, i32) {
    %c0_i32 = arith.constant 0 : i32
    %c0_i32_0 = arith.constant 0 : i32
    return %arg0, %arg1, %c0_i32 : i32, i32, i32
  }
  func.func @transform_1(%arg0: i32, %arg1: i32, %arg2: i32) -> (i32, i32) {
    %c0_i32 = arith.constant 0 : i32
    %c0_i32_0 = arith.constant 0 : i32
    return %c0_i32, %arg2 : i32, i32
  }
  func.func @transform_2(%arg0: i32, %arg1: i32, %arg2: i32) -> (i32, i32) {
    %c0_i32 = arith.constant 0 : i32
    %c0_i32_0 = arith.constant 0 : i32
    return %c0_i32, %arg2 : i32, i32
  }
  func.func @transform_3(%arg0: i32, %arg1: i32, %arg2: i32) -> (i32, i32) {
    %c0_i32 = arith.constant 0 : i32
    %c0_i32_0 = arith.constant 0 : i32
    return %arg2, %c0_i32 : i32, i32
  }
  func.func @transform_4(%arg0: i32, %arg1: i32, %arg2: i32) -> (i32, i32) {
    %c0_i32 = arith.constant 0 : i32
    %c0_i32_0 = arith.constant 0 : i32
    %c0_i32_1 = arith.constant 0 : i32
    return %c0_i32, %c0_i32_0 : i32, i32
  }
  func.func @transform_5(%arg0: i32, %arg1: i32, %arg2: i32) -> (i32, i32) {
    %c0_i32 = arith.constant 0 : i32
    %c0_i32_0 = arith.constant 0 : i32
    %c0_i32_1 = arith.constant 0 : i32
    return %c0_i32, %c0_i32_0 : i32, i32
  }
  func.func @transform_6(%arg0: i32, %arg1: i32, %arg2: i32) -> (i32, i32) {
    %c0_i32 = arith.constant 0 : i32
    %c0_i32_0 = arith.constant 0 : i32
    %c0_i32_1 = arith.constant 0 : i32
    return %c0_i32, %c0_i32_0 : i32, i32
  }
  func.func @transform_7(%arg0: i32, %arg1: i32, %arg2: i32) -> (i32, i32, i32) {
    %c0_i32 = arith.constant 0 : i32
    %c0_i32_0 = arith.constant 0 : i32
    return %arg0, %arg1, %c0_i32 : i32, i32, i32
  }
}

</mosaic_0001>

<bundles_post_ra>
// kernel: tpu_custom_call.1
= control target key start
LH: loop header
LB: loop body
LE: loop exit
PB: predicated region body
PF: predicated region fallthrough
CT: control target
= control target key end

     0   :  { %7 = vsyncpa [#allocation3], 0  ;;  %s635_s0 = inlined_call_operand.hbm [shape: f32[8,128], index: 0, kind: input, shape index: {}]   ;;  %s636_s1 = inlined_call_operand.hbm [shape: f32[16,128], index: 1, kind: input, shape index: {}]   ;;  %s637_s2 = inlined_call_operand.hbm [shape: f32[16,128], index: 2, kind: output, shape index: {}]  }
   0x1   :  { %8 = vsyncpa [#allocation6], 0 }
   0x2   :  { %10 = vsyncpa [#allocation6 + $0x1], 0 }
   0x3   :  { %11 = vsyncpa [#allocation4], 0 }
   0x4   :  { %13 = vsyncpa [#allocation4 + $0x1], 0  ;;  %s497_s9 = smov 0   ;;  %s499_s10 = smov 0  }
   0x5   :  { %s501_s11 = smov 0   ;;  %s503_s12 = smov 0  }
   0x6 LB: > { %s518_s13 = sadd.s32 4294967295, %s479_s12   ;;  %s278_s14 = sadd.s32 4294967294, %s479_s12   ;;  %s479_s12 = sphi %s503_s12, %s647_s12   ;;  %s475_s11 = sphi %s501_s11, %s646_s11   ;;  %s471_s10 = sphi %s499_s10, %s645_s10   ;;  %s467_s9 = sphi %s497_s9, %s644_s9  }
   0x7   : > { %p60_p0 = scmp.ne.s32.totalorder %s471_s10, %s467_s9  ;;  %p61_p1 = scmp.eq.s32.totalorder %s518_s13, 0 }
   0x8   : > { %p84_p2 = scmp.eq.s32.totalorder %s518_s13, 1  ;;  %p90_p3 = scmp.eq.s32.totalorder %s278_s14, 1 }
   0x9   : > { %p527_p4 = por %p61_p1, %p60_p0  ;;  %p279_p5 = scmp.ge.s32.totalorder %s479_s12, 1 }
   0xa   : > { %p532_p6 = por %p90_p3, %p60_p0  ;;  %p97_p7 = scmp.lt.s32.totalorder %s479_s12, 3 }
   0xb   : > { %s109_s19 = sshll.u32 %s635_s0, 4  ;;  %s481_s21 = smov [#allocation2]   ;;  %s110_s19 = int_to_ptr.hbm [resolvable:$true] %s109_s19 }
   0xc   : > { %p540_p8 = pnand %p279_p5, %p97_p7  ;;  %s111_s22 = sshll.u32 %s481_s21, 4  ;;  %s112_s22 = int_to_ptr.vmem [resolvable:$true] %s111_s22 }
   0xd   : > { %s550_s23 = sadd.s32 1, %s479_s12   ;;  %s47_s24 = sadd.s32 1, %s475_s11 }
   0xe   : > { %p300_p10 = pneg %p540_p8  ;;  %s44_s25 = ssub.s32 %s479_s12, %s550_s23 }
   0xf   : > { %p45_p12 = scmp.eq.s32.totalorder %s44_s25, 0  ;;  %p54_p13 = scmp.ne.s32.totalorder %s475_s11, %s471_s10 }
  0x10   : > { %p301_p11 = pnand %p300_p10, %p61_p1  ;;  %p55_p0 = scmp.eq.s32.totalorder %s479_s12, 0 }
  0x11   : > { %s559_s26 = scalar_select %p45_p12, %s475_s11, %s47_s24  }
  0x12   : > { %303 = dma.hbm_to_vmem [thread:$0]  (!%p301_p11), %s110_s19, 128, %s112_s22, [#allocation3]  }
  0x13   : > { %p563_p3 = por %p84_p2, %p54_p13  ;;  %p313_p5 = scmp.lt.s32.totalorder %s479_s12, 2 }
  0x14   : > { %s122_s28 = sand.u32 1, %s475_s11   ;;  %s283_s29 = sshll.u32 %s479_s12, 3 }
  0x15   : > { %p56_p7 = por %p55_p0, %p54_p13  ;;  %s282_s30 = sshll.u32 %s122_s28, 3 }
  0x16   : > { %s130_s5 = scalar_lea.hbm %s636_s1, %s283_s29  ;;  %s126_s7 = scalar_lea.vmem [#allocation5], %s282_s30 }
  0x17   : > { %s132_s6 = sshll.u32 %s130_s5, 4  ;;  %s134_s8 = sshll.u32 %s126_s7, 4  ;;  %s133_s6 = int_to_ptr.hbm [resolvable:$true] %s132_s6  ;;  %s135_s8 = int_to_ptr.vmem [resolvable:$true] %s134_s8 }
  0x18   : > { %p573_p10 = pnand %p313_p5, %p56_p7  ;;  %s123_s17 = scalar_lea.sflag [#allocation6], %s122_s28 }
  0x19   : > { %s379_s18 = sshra.s32 %s133_s6, 4  ;;  %s386_s24 = scalar_lea.hbm %s636_s1, 16  ;;  %s380_s18 = int_to_ptr.hbm [resolvable:$true] %s379_s18 }
  0x1a   : > { %s381_s19 = scalar_lea.hbm %s380_s18, 8  ;;  %p383_p11 = pneg %p573_p10 }
  0x1b   : > { %p382_p2 = scmp.ne.s32.totalorder %s380_s18, %s381_s19  ;;  %p387_p0 = scmp.lt.s32.totalorder %s380_s18, %s636_s1 }
  0x1c   : > { %p388_p5 = scmp.lt.s32.totalorder %s386_s24, %s381_s19 }
  0x1d   : > { %p384_p12 = pnand %p383_p11, %p382_p2 }
  0x1e   : > { %p389_p7 = por %p388_p5, %p387_p0 }
  0x1f   : > { %p385_p13 = pneg %p384_p12 }
  0x21   : > { %p390_p9 = pnand %p389_p7, %p385_p13 }
  0x23   : > { %393 = shalt.err (!%p390_p9)
}
  0x24   : > { %307 = dma.hbm_to_vmem [thread:$0]  (!%p573_p10), %s133_s6, 128, %s135_s8, %s123_s17  }
  0x25   : > { %143 = sbr.rel (%p540_p8) target bundleno = 62 (0x3e), region = 28 }
  0x2a   : > { %454 = dma.done.wait (%p61_p1), [#allocation3], 128  }
  0x2b   : > { %456 = vsyncadd (%p61_p1), [#allocation3], 4294967168  ;;  %s594_s28 = sand.u32 1, %s471_s10  }
  0x2c   : > { %s286_s30 = sshll.u32 %s594_s28, 3  ;;  %s151_s3 = scalar_lea.sflag [#allocation6], %s594_s28 }
  0x2d   : > { %s154_s4 = scalar_lea.vmem [#allocation5], %s286_s30 }
  0x2e   : > { %458 = dma.done.wait (%p527_p4), %s151_s3, 128  }
  0x2f   : > { %460 = vsyncadd (%p527_p4), %s151_s3, 4294967168  ;;  %s289_s20 = sshll.u32 %s518_s13, 3  ;;  %s175_s8 = scalar_lea.vmem [#allocation7], %s286_s30  ;;  %v176_v0 = vld [vmem:[%s154_s4] sm:$0xff]  ;;  %v177_v1 = vld [vmem:[#allocation2] sm:$0xff] }
  0x30   : > { %s191_s7 = scalar_lea.hbm %s637_s2, %s289_s20  ;;  %s193_s14 = sshll.u32 %s175_s8, 4  ;;  %v178_v2 = vadd.f32 %v177_v1, %v176_v0  ;;  %s194_s14 = int_to_ptr.vmem [resolvable:$true] %s193_s14 }
  0x31   : > { %s195_s17 = sshll.u32 %s191_s7, 4  ;;  %s181_s18 = scalar_lea.sflag [#allocation4], %s594_s28  ;;  %s196_s17 = int_to_ptr.hbm [resolvable:$true] %s195_s17 }
  0x32   : > { %179 = vst [vmem:[%s175_s8] sm:$0xff] %v178_v2  ;;  %s423_s15 = sshra.s32 %s196_s17, 4  ;;  %s429_s22 = scalar_lea.hbm %s637_s2, 16  ;;  %s424_s15 = int_to_ptr.hbm [resolvable:$true] %s423_s15 }
  0x33   : > { %s425_s19 = scalar_lea.hbm %s424_s15, 8  ;;  %p430_p9 = scmp.lt.s32.totalorder %s424_s15, %s637_s2 }
  0x34   : > { %p426_p1 = scmp.ne.s32.totalorder %s424_s15, %s425_s19  ;;  %p431_p10 = scmp.lt.s32.totalorder %s429_s22, %s425_s19 }
  0x36   : > { %p427_p4 = pnand %p426_p1, %p563_p3  ;;  %p432_p2 = por %p431_p10, %p430_p9 }
  0x38   : > { %p428_p8 = pneg %p427_p4 }
  0x3a   : > { %p433_p11 = pnand %p432_p2, %p428_p8 }
  0x3c   : > { %436 = shalt.err (!%p433_p11)
}
  0x3d   : > { %298 = dma.vmem_to_hbm [thread:$0]  (%p563_p3), %s194_s14, 128, %s196_s17, %s181_s18  }
  0x3e PF: > { %s207_s29 = sand.u32 1, %s467_s9   ;;  %p643_p12 = scmp.ge.s32.totalorder %s479_s12, 2 }
  0x3f   : > { %s208_s28 = scalar_lea.sflag [#allocation4], %s207_s29 }
  0x40   : > { %p309_p13 = pnand %p643_p12, %p532_p6 }
  0x42   : > { %p310_p0 = pneg %p309_p13 }
  0x44   : > { %462 = dma.done.wait (%p310_p0), %s208_s28, 128  }
  0x45   : > { %464 = vsyncadd (%p310_p0), %s208_s28, 4294967168  ;;  %p16_p5 = scmp.ge.s32.totalorder %s550_s23, 4   ;;  %s644_s9 = smov %s471_s10 }
  0x46   : > { %s645_s10 = smov %s475_s11  ;;  %s646_s11 = smov %s559_s26 }
  0x47   : > { %s647_s12 = smov %s550_s23  ;;  %18 = sbr.rel (!%p16_p5) target bundleno = 6 (0x6), region = 78 }
  0x4c   :  { %214 = vsyncpa [#allocation3], 1 }
  0x4d   :  { %216 = vsyncpa [#allocation3 + $0x1], 1 }
  0x4e   :  { %217 = vsyncpa [#allocation6], 1 }
  0x4f   :  { %219 = vsyncpa [#allocation6 + $0x1], 1 }
  0x50   :  { %220 = vsyncpa [#allocation4], 1 }
  0x51   :  { %222 = vsyncpa [#allocation4 + $0x1], 1 }

// kernel: decoder_block_forward.5
= control target key start
LH: loop header
LB: loop body
LE: loop exit
PB: predicated region body
PF: predicated region fallthrough
CT: control target
= control target key end

     0   :  { %12 = vsyncpa [#allocation4], 0  ;;  %s998_s0 = inlined_call_operand.vmem [shape: f32[2,8,32], index: 0, kind: input, shape index: {}]   ;;  %s999_s1 = inlined_call_operand.vmem [shape: f32[32,128], index: 1, kind: input, shape index: {}]   ;;  %s1000_s2 = inlined_call_operand.vmem [shape: f32[1,128], index: 2, kind: input, shape index: {}]   ;;  %s1001_s3 = inlined_call_operand.vmem [shape: f32[128,32], index: 3, kind: input, shape index: {}]   ;;  %s1002_s4 = inlined_call_operand.vmem [shape: f32[1,32], index: 4, kind: input, shape index: {}]   ;;  %s1003_s5 = inlined_call_operand.vmem [shape: f32[1,32], index: 5, kind: input, shape index: {}]   ;;  %s1004_s6 = inlined_call_operand.vmem [shape: f32[1,32], index: 6, kind: input, shape index: {}]   ;;  %s1005_s7 = inlined_call_operand.hbm [shape: f32[2,8,32], index: 7, kind: output, shape index: {}]  }
   0x1   :  { %14 = vsyncpa [#allocation4 + $0x1], 0  ;;  %s823_s24 = smov 0   ;;  %s825_s25 = smov 0  }
   0x2   :  { %s827_s26 = smov 0   ;;  %s829_s27 = smov 0  }
   0x3   :  { %s831_s28 = smov 0   ;;  %s833_s29 = smov 0  }
   0x4 LB: > { %s621_s30 = sadd.s32 4294967295, %s779_s29   ;;  %s622_s8 = sadd.s32 4294967294, %s779_s29   ;;  %s779_s29 = sphi %s833_s29, %s20_s29   ;;  %s775_s28 = sphi %s831_s28, %s1012_s28   ;;  %s771_s27 = sphi %s829_s27, %s1011_s27   ;;  %s767_s26 = sphi %s827_s26, %s1010_s26   ;;  %s763_s25 = sphi %s825_s25, %s1009_s25   ;;  %s759_s24 = sphi %s823_s24, %s1008_s24  }
   0x5   : > { %s39_s9 = sadd.s32 1, %s775_s28  ;;  %s217_s10 = sadd.s32 1, %s767_s26 }
   0x6   : > { %p41_p0 = scmp.ge.s32.totalorder %s39_s9, 2  ;;  %p227_p1 = scmp.ne.s32.totalorder %s767_s26, %s763_s25 }
   0x7   : > { %p228_p2 = scmp.eq.s32.totalorder %s621_s30, 1  ;;  %p233_p3 = scmp.ne.s32.totalorder %s763_s25, %s759_s24 }
   0x8   : > { %s1014_s9 = smov (%p41_p0, %s39_s9), 0  ;;  %p234_p5 = scmp.eq.s32.totalorder %s622_s8, 1 }
   0x9   : > { %p863_p4 = por %p228_p2, %p227_p1  ;;  %s212_s12 = ssub.s32 %s775_s28, %s1014_s9 }
   0xa   : > { %p628_p6 = scmp.ge.s32.totalorder %s779_s29, 1  ;;  %p215_p7 = scmp.eq.s32.totalorder %s212_s12, 0 }
   0xb   : > { %p870_p8 = por %p234_p5, %p233_p3  ;;  %p293_p9 = scmp.lt.s32.totalorder %s779_s29, 3 }
   0xc   : > { %s876_s14 = scalar_select %p215_p7, %s767_s26, %s217_s10  }
   0xd   : > { %p294_p10 = pnand %p628_p6, %p293_p9 }
   0xe   : > { %p339_p11 = scmp.lt.s32.totalorder (!%p294_p10), %s771_s27, 1  ;;  %s633_s12 = sshll.u32 (!%p294_p10), %s771_s27, 3 }
   0xf   : > { %297 = sbr.rel (%p294_p10) target bundleno = 569 (0x239), region = 48  ;;  %s500_s19 = scalar_lea.hbm (!%p294_p10), %s1005_s7, %s633_s12 }
  0x10   : > { %s504_s23 = sshll.u32 (!%p294_p10), %s500_s19, 4  ;;  %s505_s23 = int_to_ptr.hbm [resolvable:$true] %s504_s23 }
  0x11   : > { %s715_s15 = sshra.s32 (!%p294_p10), %s505_s23, 4  ;;  %s716_s15 = int_to_ptr.hbm [resolvable:$true] %s715_s15 }
  0x12   : > { %s717_s12 = scalar_lea.hbm (!%p294_p10), %s716_s15, 8  ;;  %p722_p1 = scmp.lt.s32.totalorder (!%p294_p10), %s716_s15, %s1005_s7 }
  0x13   : > { %p718_p12 = scmp.ne.s32.totalorder (!%p294_p10), %s716_s15, %s717_s12 }
  0x14   : > { %v369_v0 = vld [vmem:[%s999_s1 + $0x18] sm:$0xff]  ;;  %v368_v1 = vld [vmem:[%s999_s1 + $0x10] sm:$0xff]  ;;  %v367_v4 = vld [vmem:[%s999_s1 + $0x8] sm:$0xff]  ;;  %s340_s8 = scalar_select %p339_p11, %s771_s27, 1  ;;  %vm363_vm0 = vcmask 261120   ;;  %v781_v21 = vmov 0.0  }
  0x15   : > { %390 = vmatpush.msra.mxu0 %v369_v0  ;;  %v415_v2 = vld [vmem:[%s1001_s3 + $0x78] sm:$0xff]  ;;  %v414_v3 = vld [vmem:[%s1001_s3 + $0x70] sm:$0xff]  ;;  %v413_v5 = vld [vmem:[%s1001_s3 + $0x68] sm:$0xff]  ;;  %364 = vst.msk [vmem:[#allocation2] sm:$0xff] %vm363_vm0, %v781_v21  ;;  %v782_v34 = vmov 32.0   ;;  %p719_p13 = pnand %p718_p12, %p863_p4 }
  0x16   : > { %416 = vmatpush.msra.mxu1 %v415_v2  ;;  %v366_v6 = vld [vmem:[%s999_s1] sm:$0xff]  ;;  %s630_s17 = sshll.u32 %s340_s8, 3  ;;  %v411_v9 = vld [vmem:[%s1001_s3 + $0x58] sm:$0xff]  ;;  %v410_v10 = vld [vmem:[%s1001_s3 + $0x50] sm:$0xff]  ;;  %697 = vrcp.f32 %v782_v34  ;;  %s336_s8 = sand.u32 1, %s763_s25  }
  0x17   : > { %391 = vmatpush.msra.mxu0 %v368_v1  ;;  %s345_s20 = scalar_lea.vmem %s998_s0, %s630_s17  ;;  %v412_v7 = vld [vmem:[%s1001_s3 + $0x60] sm:$0xff]  ;;  %v409_v11 = vld [vmem:[%s1001_s3 + $0x48] sm:$0xff]  ;;  %v407_v13 = vld [vmem:[%s1001_s3 + $0x38] sm:$0xff]  ;;  %s629_s10 = sshll.u32 %s336_s8, 3 }
  0x18   : > { %417 = vmatpush.msra.mxu1 %v414_v3  ;;  %v365_v8 = vld [vmem:[%s345_s20] sm:$0xff]  ;;  %v406_v14 = vld [vmem:[%s1001_s3 + $0x30] sm:$0xff]  ;;  %v405_v15 = vld [vmem:[%s1001_s3 + $0x28] sm:$0xff]  ;;  %s338_s22 = scalar_lea.vmem [#allocation3], %s629_s10  ;;  %s489_s30 = scalar_lea.sflag [#allocation4], %s336_s8 }
  0x19   : > { %392 = vmatpush.msra.mxu0 %v367_v4  ;;  %v408_v12 = vld [vmem:[%s1001_s3 + $0x40] sm:$0xff]  ;;  %v403_v17 = vld [vmem:[%s1001_s3 + $0x18] sm:$0xff]  ;;  %v402_v18 = vld [vmem:[%s1001_s3 + $0x10] sm:$0xff]  ;;  %s502_s27 = sshll.u32 %s338_s22, 4  ;;  %p720_p0 = pneg %p719_p13  ;;  %s503_s27 = int_to_ptr.vmem [resolvable:$true] %s502_s27 }
  0x1a   : > { %418 = vmatpush.msra.mxu1 %v413_v5  ;;  %v404_v16 = vld [vmem:[%s1001_s3 + $0x20] sm:$0xff]  ;;  %v401_v19 = vld [vmem:[%s1001_s3 + $0x8] sm:$0xff]  ;;  %s721_s10 = scalar_lea.hbm %s1005_s7, 16 }
  0x1b   : > { %393 = vmatpush.msra.mxu0 %v366_v6  ;;  %v400_v20 = vld [vmem:[%s1001_s3] sm:$0xff]  ;;  %p723_p2 = scmp.lt.s32.totalorder %s721_s10, %s717_s12 }
  0x1c   : > { %631 = vmatmul.msk.f32.vlgmr.msra.gmra.mxu0 %vm363_vm0, %v365_v8  ;;  %419 = vmatpush.msra.mxu1 %v412_v7  ;;  %v693_v22 = vld [vmem:[%s1000_s2] ss:$0 sm:$0xff]  ;;  %v698_v35 = vpop.eup %697 }
  0x1d   : > { %v399_v26 = vld [vmem:[#allocation2] sm:$0xff]  ;;  %v452_v36 = vmul.f32 32.0, %v698_v35  ;;  %vm456_vm1 = vweird.f32 %v698_v35  ;;  %p724_p3 = por %p723_p2, %p722_p1 }
  0x1e   : > { %420 = vmatpush.msra.mxu1 %v411_v9  ;;  %v694_v29 = vld [vmem:[%s1002_s4] ss:$0 sm:$0xff] }
  0x1f   : > { %v453_v37 = vsub.f32 1.0, %v452_v36  ;;  %v695_v55 = vld [vmem:[%s1003_s5] ss:$0 sm:$0xff]  ;;  %p725_p5 = pnand %p724_p3, %p720_p0 }
  0x20   : > { %421 = vmatpush.msra.mxu1 %v410_v10  ;;  %v696_v58 = vld [vmem:[%s1004_s6] ss:$0 sm:$0xff] }
  0x21   : > { %v454_v38 = vmul.f32 %v698_v35, %v453_v37 }
  0x22   : > { %422 = vmatpush.msra.mxu1 %v409_v11 }
  0x23   : > { %v455_v39 = vadd.f32 %v698_v35, %v454_v38 }
  0x24   : > { %423 = vmatpush.msra.mxu1 %v408_v12 }
  0x25   : > { %v457_v40 = vsel %vm456_vm1, %v698_v35, %v455_v39 }
  0x26   : > { %424 = vmatpush.msra.mxu1 %v407_v13 }
  0x28   : > { %425 = vmatpush.msra.mxu1 %v406_v14 }
  0x2a   : > { %426 = vmatpush.msra.mxu1 %v405_v15 }
  0x2c   : > { %427 = vmatpush.msra.mxu1 %v404_v16 }
  0x2e   : > { %428 = vmatpush.msra.mxu1 %v403_v17 }
  0x30   : > { %429 = vmatpush.msra.mxu1 %v402_v18 }
  0x32   : > { %430 = vmatpush.msra.mxu1 %v401_v19 }
  0x34   : > { %431 = vmatpush.msra.mxu1 %v400_v20 }
  0x99   : > { %v395_v23 = vpop.f32.mrf.mxu0 }
  0x9a   : > { %v396_v24 = vadd.f32 %v693_v22, %v395_v23 }
  0x9c   : > { %v398_v25 = vmax.f32 %v396_v24, 0.0 }
  0x9e   : > { %432 = vmatmul.f32.vlgmr.msra.gmra.mxu1 %v398_v25 }
 0x11b   : > { %v433_v27 = vpop.f32.mrf.mxu1 }
 0x11c   : > { %v436_v28 = vadd.f32 %v433_v27, %v399_v26 }
 0x11e   : > { %437 = vst.msk [vmem:[#allocation2] sm:$0xff] %vm363_vm0, %v436_v28 }
 0x125   : > { %v441_v30 = vld [vmem:[#allocation2] sm:$0xff] }
 0x126   : > { %v446_v31 = vadd.f32 %v694_v29, %v441_v30 }
 0x128   : > { %v447_v32 = vadd.f32 %v446_v31, %v365_v8 }
 0x12a   : > { %v448_v33 = vsel %vm363_vm0, %v447_v32, 0.0 }
 0x12b   : > { %449 = vadd.xlane.f32.xlu0 %v448_v33 }
 0x19e   : > { %v450_v41 = vpop.xlane.xlu0 %449 }
 0x19f   : > { %v458_v42 = vmul.f32 %v457_v40, %v450_v41 }
 0x1a1   : > { %v459_v43 = vsub.f32 %v447_v32, %v458_v42 }
 0x1a3   : > { %v460_v44 = vmul.f32 %v459_v43, %v459_v43 }
 0x1a5   : > { %v461_v45 = vsel %vm363_vm0, %v460_v44, 0.0 }
 0x1a6   : > { %462 = vadd.xlane.f32.xlu0 %v461_v45 }
 0x219   : > { %v463_v46 = vpop.xlane.xlu0 %462 }
 0x21a   : > { %v464_v47 = vmul.f32 %v463_v46, %v457_v40 }
 0x21c   : > { %v465_v48 = vadd.f32 1e-05, %v464_v47 }
 0x21e   : > { %699 = vrsqrt.f32 %v465_v48  ;;  %vm472_vm3 = vweird.f32 %v465_v48 }
 0x224   : > { %v700_v49 = vpop.eup %699 }
 0x225   : > { %v467_v50 = vmul.f32 %v700_v49, %v465_v48  ;;  %vm473_vm2 = vweird.f32 %v700_v49 }
 0x226   : > { %vm474_vm4 = vmor %vm472_vm3, %vm473_vm2 }
 0x227   : > { %v468_v51 = vmul.f32 %v700_v49, %v467_v50 }
 0x229   : > { %v469_v52 = vmul.f32 0.5, %v468_v51 }
 0x22b   : > { %v470_v53 = vsub.f32 1.5, %v469_v52 }
 0x22d   : > { %v471_v54 = vmul.f32 %v700_v49, %v470_v53 }
 0x22f   : > { %v475_v56 = vsel %vm474_vm4, %v700_v49, %v471_v54 }
 0x230   : > { %v476_v57 = vmul.f32 %v475_v56, %v459_v43 }
 0x232   : > { %v481_v59 = vmul.f32 %v695_v55, %v476_v57 }
 0x234   : > { %v486_v60 = vadd.f32 %v696_v58, %v481_v59 }
 0x236   : > { %487 = vst.msk [vmem:[%s338_s22] sm:$0xff] %vm363_vm0, %v486_v60 }
 0x237   : > { %728 = shalt.err (!%p725_p5)
}
 0x238   : > { %636 = dma.vmem_to_hbm [thread:$0]  (%p863_p4), %s503_s27, 128, %s505_s23, %s489_s30  }
 0x239 PF: > { %p642_p6 = scmp.ge.s32.totalorder %s779_s29, 2  ;;  %s516_s8 = sand.u32 1, %s759_s24  }
 0x23a   : > { %s517_s20 = scalar_lea.sflag [#allocation4], %s516_s8 }
 0x23b   : > { %p639_p7 = pnand %p642_p6, %p870_p8 }
 0x23d   : > { %p640_p9 = pneg %p639_p7 }
 0x23f   : > { %754 = dma.done.wait (%p640_p9), %s517_s20, 128  }
 0x240   : > { %756 = vsyncadd (%p640_p9), %s517_s20, 4294967168  ;;  %s20_s29 = sadd.s32 1, %s779_s29   ;;  %s1008_s24 = smov %s763_s25 }
 0x241   : > { %p17_p10 = scmp.ge.s32.totalorder %s20_s29, 4   ;;  %s1009_s25 = smov %s767_s26 }
 0x242   : > { %s1010_s26 = smov %s876_s14  ;;  %s1011_s27 = smov %s775_s28 }
 0x243   : > { %s1012_s28 = smov %s1014_s9  ;;  %19 = sbr.rel (!%p17_p10) target bundleno = 4 (0x4), region = 100 }
 0x248   :  { %523 = vsyncpa [#allocation4], 1 }
 0x249   :  { %525 = vsyncpa [#allocation4 + $0x1], 1 }

// kernel: decoder_block_forward.4
= control target key start
LH: loop header
LB: loop body
LE: loop exit
PB: predicated region body
PF: predicated region fallthrough
CT: control target
= control target key end

     0   :  { %s1652_s17 = smov 0   ;;  %s1654_s18 = smov 0   ;;  %s1860_s0 = inlined_call_operand.vmem [shape: f32[2,8,32], index: 0, kind: input, shape index: {}]   ;;  %s1861_s1 = inlined_call_operand.vmem [shape: f32[2,8,32], index: 1, kind: input, shape index: {}]   ;;  %s1862_s2 = inlined_call_operand.vmem [shape: f32[2,8,32], index: 2, kind: input, shape index: {}]   ;;  %s1863_s3 = inlined_call_operand.vmem [shape: s8[2,8,8], index: 3, kind: input, shape index: {}]   ;;  %s1864_s4 = inlined_call_operand.vmem [shape: f32[8,8], index: 4, kind: input, shape index: {}]   ;;  %s1865_s5 = inlined_call_operand.vmem [shape: f32[8,8], index: 5, kind: input, shape index: {}]   ;;  %s1866_s6 = inlined_call_operand.vmem [shape: f32[8,8], index: 6, kind: input, shape index: {}]   ;;  %s1867_s7 = inlined_call_operand.vmem [shape: f32[32,32], index: 7, kind: input, shape index: {}]   ;;  %s1868_s8 = inlined_call_operand.vmem [shape: f32[1,32], index: 8, kind: input, shape index: {}]   ;;  %s1869_s9 = inlined_call_operand.vmem [shape: f32[1,32], index: 9, kind: input, shape index: {}]   ;;  %s1870_s10 = inlined_call_operand.vmem [shape: f32[1,32], index: 10, kind: input, shape index: {}]   ;;  %s1871_s11 = inlined_call_operand.vmem [shape: f32[2,8,32], index: 11, kind: output, shape index: {}]  }
   0x1   :  { %s1656_s19 = smov 0  }
   0x2 LB: > { %s40_s20 = sadd.s32 1, %s1572_s18  ;;  %p1448_p0 = scmp.ge.s32.totalorder %s1576_s19, 1  ;;  %s1576_s19 = sphi %s1656_s19, %s21_s19   ;;  %s1572_s18 = sphi %s1654_s18, %s1873_s18   ;;  %s1568_s17 = sphi %s1652_s17, %s1872_s17  }
   0x3   : > { %p42_p1 = scmp.ge.s32.totalorder %s40_s20, 2  ;;  %p409_p2 = scmp.lt.s32.totalorder %s1576_s19, 3 }
   0x5   : > { %s1875_s20 = smov (%p42_p1, %s40_s20), 0  ;;  %p410_p3 = pnand %p1448_p0, %p409_p2 }
   0x6   : > { %p477_p4 = scmp.lt.s32.totalorder (!%p410_p3), %s1568_s17, 1  ;;  %s1578_s27 = smov (!%p410_p3), 112  }
   0x7   : > { %413 = sbr.rel (%p410_p3) target bundleno = 1604 (0x644), region = 64  ;;  %s1579_s28 = smov (!%p410_p3), 120  }
   0x8   : > { %s1580_s29 = smov (!%p410_p3), 104   ;;  %s1581_s16 = smov (!%p410_p3), 8  }
   0x9   : > { %s1582_s21 = smov (!%p410_p3), 16   ;;  %s1583_s22 = smov (!%p410_p3), 24  }
   0xc   : > { %v584_v0 = vld [vmem:[%s1864_s4] sm:$0xff]  ;;  %s1877_s17 = smov (!%p477_p4, %s1568_s17), 1  ;;  %vm526_vm0 = vcmask 64512   ;;  %vm582_vm1 = vcmask 130112   ;;  %vm614_vm2 = vcmask 195712   ;;  %vm646_vm3 = vcmask 261312  }
   0xd   : > { %604 = vmatpush.msra.mxu2 %v584_v0  ;;  %572 = vmatpush.msra.mxu1 %v584_v0  ;;  %s1676_s23 = sshll.u32 %s1877_s17, 3  ;;  %v654_v3 = vld [vmem:[%s1865_s5] sm:$0xff]  ;;  %s1452_s30 = sshll.u32 %s1877_s17, 1  ;;  %v1584_v31 = vmov -1e+20   ;;  %vm519_vm5 = vcmask 31744  }
   0xe   : > { %636 = vmatpush.msra.mxu3 %v584_v0  ;;  %545 = vmatpush.msra.mxu0 %v584_v0  ;;  %s483_s26 = scalar_lea.vmem %s1860_s0, %s1676_s23  ;;  %s490_s13 = scalar_lea.vmem %s1861_s1, %s1676_s23  ;;  %v1585_v37 = vmov -inf   ;;  %v679_v38 = vld [vmem:[%s1866_s6] sm:$0xff]  ;;  %v1586_v39 = vmov 0   ;;  %v1587_v40 = vmov 0.0   ;;  %vm752_vm6 = vcmask 7168  }
   0xf   : > { %v1682_v1 = vld [vmem:[%s483_s26] sm:$0xff]  ;;  %s497_s26 = scalar_lea.vmem %s1862_s2, %s1676_s23  ;;  %520 = vst.msk [vmem:[#allocation3] sm:$0xff] %vm519_vm5, %v1585_v37  ;;  %698 = vmatpush.msrb.mxu1 %v679_v38  ;;  %1519 = vset.pattern.permute.xlu0 %v1586_v39  ;;  %v1588_v57 = vmov 1   ;;  %v1589_v58 = vmov 2   ;;  %vm888_vm7 = vcmask 15368   ;;  %vm1029_vm8 = vcmask 23568   ;;  %s514_s14 = scalar_lea.vmem %s1871_s11, %s1676_s23 }
  0x10   : > { %585 = vrot.lane.b32.xlu0 %v1682_v1, %s1578_s27  ;;  %553 = vrot.lane.b32.xlu1 %v1682_v1, %s1579_s28  ;;  %v648_v2 = vld [vmem:[%s490_s13] sm:$0xff]  ;;  %521 = vst.msk [vmem:[#allocation4] sm:$0xff] %vm519_vm5, %v1587_v40  ;;  %vm1170_vm9 = vcmask 31768   ;;  %vm522_vm10 = vcmask 261120  }
  0x11   : > { %1454 = vmatmul.msk.f32.vlgmr.msra.gmra.mxu0 %vm526_vm0, %v1682_v1  ;;  %929 = vrot.lane.b32.xlu2 %v648_v2, %s1578_s27  ;;  %v649_v24 = vld [vmem:[%s497_s26] sm:$0xff]  ;;  %523 = vst.msk [vmem:[#allocation5] sm:$0xff] %vm522_vm10, %v1587_v40 }
  0x12   : > { %674 = vmatpush.msrb.mxu0 %v654_v3  ;;  %1520 = vset.pattern.permute.xlu1 %v1588_v57 }
  0x13   : > { %1521 = vset.pattern.permute.xlu2 %v1589_v58 }
  0x14   : > { %807 = vmatpush.msra.mxu0 %v654_v3 }
  0x16   : > { %v1750_v46 = vld [vmem:[#allocation3] sm:$0xff] }
  0x18   : > { %617 = vrot.lane.b32.xlu0 %v1682_v1, %s1580_s29  ;;  %788 = vrot.lane.b32.xlu1 %v648_v2, %s1579_s28 }
  0x19   : > { %1458 = vmatmul.msk.f32.vlgmr.msrb.gmra.mxu0 %vm526_vm0, %v648_v2  ;;  %1070 = vrot.lane.b32.xlu2 %v648_v2, %s1580_s29 }
  0x1a   : > { %948 = vmatpush.msrb.mxu0 %v654_v3 }
  0x6b   : > { %v930_v10 = vpop.permute.xlu2 %929 }
  0x73   : > { %v1071_v11 = vpop.permute.xlu2 %1070 }
  0x82   : > { %v586_v4 = vpop.permute.xlu0 %585  ;;  %v554_v5 = vpop.permute.xlu1 %553 }
  0x83   : > { %1456 = vmatmul.msk.f32.vlgmr.msra.gmra.mxu2 %vm526_vm0, %v586_v4  ;;  %1455 = vmatmul.msk.f32.vlgmr.msra.gmra.mxu1 %vm526_vm0, %v554_v5 }
  0x84   : > { %832 = vmatpush.msra.mxu1 %v679_v38 }
  0x8a   : > { %v618_v6 = vpop.permute.xlu0 %617  ;;  %v789_v7 = vpop.permute.xlu1 %788 }
  0x8b   : > { %1457 = vmatmul.msk.f32.vlgmr.msra.gmra.mxu3 %vm526_vm0, %v618_v6  ;;  %1463 = vmatmul.msk.f32.vlgmr.msra.gmra.mxu0 %vm526_vm0, %v789_v7  ;;  %v1590_v7 = vmov 3  }
  0x8c   : > { %1089 = vmatpush.msra.mxu0 %v654_v3  ;;  %1459 = vmatmul.msk.f32.vlgmr.msrb.gmra.mxu1 %vm526_vm0, %v649_v24 }
  0x8d   : > { %973 = vmatpush.msrb.mxu1 %v679_v38 }
  0x8e   : > { %v547_v8 = vpop.f32.mrf.mxu0 }
  0x8f   : > { %v550_v9 = vmul.f32 0.17677669, %v547_v8 }
  0x91   : > { %551 = vst.msk [vmem:[#allocation2] sm:$0xff] %vm526_vm0, %v550_v9 }
  0x93   : > { %1468 = vmatmul.msk.f32.vlgmr.msrb.gmra.mxu0 %vm526_vm0, %v930_v10 }
  0x96   : > { %v676_v18 = vpop.f32.mrf.mxu0 }
  0x97   : > { %1460 = vmatpush.xpose.msk.msrb.mxu2 %vm526_vm0, %v676_v18 }
  0x9b   : > { %1473 = vmatmul.msk.f32.vlgmr.msra.gmra.mxu0 %vm526_vm0, %v1071_v11 }
 0x100   : > { %v574_v12 = vpop.f32.mrf.mxu1 }
 0x101   : > { %v577_v13 = vmul.f32 0.17677669, %v574_v12 }
 0x103   : > { %579 = vrot.lane.b32.xlu0 %v577_v13, %s1581_s16 }
 0x106   : > { %v606_v14 = vpop.f32.mrf.mxu2 }
 0x107   : > { %v609_v15 = vmul.f32 0.17677669, %v606_v14 }
 0x108   : > { %v809_v23 = vpop.f32.mrf.mxu0 }
 0x109   : > { %611 = vrot.lane.b32.xlu1 %v609_v15, %s1582_s21  ;;  %1465 = vmatpush.xpose.msk.msra.mxu2 %vm526_vm0, %v809_v23  ;;  %v700_v59 = vpop.f32.mrf.mxu1 }
 0x10a   : > { %779 = vmatpush.msrb.mxu3 %v700_v59 }
 0x10e   : > { %v638_v16 = vpop.f32.mrf.mxu3 }
 0x10f   : > { %v641_v17 = vmul.f32 0.17677669, %v638_v16 }
 0x110   : > { %v950_v25 = vpop.f32.mrf.mxu0 }
 0x111   : > { %643 = vrot.lane.b32.xlu2 %v641_v17, %s1583_s22 }
 0x118   : > { %v1091_v27 = vpop.f32.mrf.mxu0 }
 0x16b   : > { %v644_v20 = vpop.permute.xlu2 %643 }
 0x175   : > { %v580_v19 = vpop.permute.xlu0 %579 }
 0x176   : > { %583 = vst.msk [vmem:[#allocation2] sm:$0xff] %vm582_vm1, %v580_v19 }
 0x17b   : > { %v612_v21 = vpop.permute.xlu1 %611 }
 0x17c   : > { %615 = vst.msk [vmem:[#allocation2] sm:$0xff] %vm614_vm2, %v612_v21 }
 0x17d   : > { %647 = vst.msk [vmem:[#allocation2] sm:$0xff] %vm646_vm3, %v644_v20 }
 0x184   : > { %v1119_v22 = vld [vmem:[#allocation2] sm:$0xff] }
 0x185   : > { %1121 = vrot.lane.b32.xlu2 %v1119_v22, %s1580_s29  ;;  %980 = vrot.lane.b32.xlu1 %v1119_v22, %s1578_s27 }
 0x186   : > { %839 = vrot.lane.b32.xlu0 %v1119_v22, %s1579_s28  ;;  %1461 = vmatmul.msk.f32.vlgmr.msrb.gmra.mxu2 %vm526_vm0, %v1119_v22 }
 0x187   : > { %1470 = vmatpush.xpose.msk.msrb.mxu2 %vm526_vm0, %v950_v25 }
 0x18d   : > { %954 = vrot.lane.b32.xlu1 %v649_v24, %s1578_s27  ;;  %1095 = vrot.lane.b32.xlu2 %v649_v24, %s1580_s29 }
 0x18e   : > { %813 = vrot.lane.b32.xlu0 %v649_v24, %s1579_s28  ;;  %s507_s28 = scalar_lea.vmem %s1863_s3, %s1452_s30 }
 0x18f   : > { %v650_v28 = vld [vmem:[%s507_s28] sm:$0x3] }
 0x190   : > { %v651_v30 = vunpack.c.0.s8 %v650_v28 }
 0x192   : > { %vm652_vm4 = vcmp.ne.s32.totalorder %v651_v30, 0 }
 0x193   : > { %v653_v32 = vsel %vm652_vm4, 0.0, %v1584_v31 }
 0x1df   : > { %v1122_v33 = vpop.permute.xlu2 %1121 }
 0x1e7   : > { %v1096_v43 = vpop.permute.xlu2 %1095 }
 0x1f7   : > { %v981_v29 = vpop.permute.xlu1 %980 }
 0x1f8   : > { %v840_v26 = vpop.permute.xlu0 %839 }
 0x1f9   : > { %1466 = vmatmul.msk.f32.vlgmr.msra.gmra.mxu2 %vm526_vm0, %v840_v26 }
 0x1fa   : > { %1475 = vmatpush.xpose.msk.msra.mxu2 %vm526_vm0, %v1091_v27 }
 0x1ff   : > { %v955_v42 = vpop.permute.xlu1 %954 }
 0x200   : > { %v814_v41 = vpop.permute.xlu0 %813 }
 0x201   : > { %1471 = vmatmul.msk.f32.vlgmr.msrb.gmra.mxu2 %vm526_vm0, %v981_v29  ;;  %1464 = vmatmul.msk.f32.vlgmr.msra.gmra.mxu1 %vm526_vm0, %v814_v41 }
 0x202   : > { %1114 = vmatpush.msra.mxu1 %v679_v38  ;;  %v746_v38 = vld [vmem:[#allocation4] sm:$0xff] }
 0x209   : > { %v727_v34 = vpop.f32.mrf.mxu2  ;;  %1476 = vmatmul.msk.f32.vlgmr.msra.gmra.mxu2 %vm526_vm0, %v1122_v33  ;;  %1469 = vmatmul.msk.f32.vlgmr.msrb.gmra.mxu1 %vm526_vm0, %v955_v42 }
 0x20a   : > { %v728_v35 = vadd.f32 %v727_v34, %v653_v32 }
 0x20c   : > { %v731_v36 = vsel %vm526_vm0, %v728_v35, -inf }
 0x20d   : > { %732 = vmax.xlane.f32.xlu0 %v731_v36 }
 0x211   : > { %1474 = vmatmul.msk.f32.vlgmr.msra.gmra.mxu1 %vm526_vm0, %v1096_v43 }
 0x27c   : > { %v863_v44 = vpop.f32.mrf.mxu2 }
 0x27d   : > { %v1748_v45 = vadd.f32 %v863_v44, %v653_v32 }
 0x27e   : > { %v834_v13 = vpop.f32.mrf.mxu1 }
 0x27f   : > { %v867_v47 = vsel %vm526_vm0, %v1748_v45, -inf  ;;  %915 = vmatpush.msra.mxu3 %v834_v13 }
 0x280   : > { %868 = vmax.xlane.f32.xlu1 %v867_v47  ;;  %v733_v48 = vpop.xlane.xlu0 %732 }
 0x281   : > { %v1755_v49 = vmax.f32 %v1750_v46, %v733_v48 }
 0x283   : > { %v735_v50 = vsub.f32 %v1750_v46, %v1755_v49  ;;  %786 = vst.msk [vmem:[#allocation3] sm:$0xff] %vm752_vm6, %v1755_v49  ;;  %740 = vperm.xlu0 %1519, %v1755_v49  }
 0x284   : > { %v1004_v51 = vpop.f32.mrf.mxu2 }
 0x285   : > { %v1005_v52 = vadd.f32 %v1004_v51, %v653_v32  ;;  %v736_v31 = vmul.f32 1.442695, %v735_v50 }
 0x286   : > { %v975_v15 = vpop.f32.mrf.mxu1 }
 0x287   : > { %v1008_v53 = vsel %vm526_vm0, %v1005_v52, -inf }
 0x288   : > { %1009 = vmax.xlane.f32.xlu2 %v1008_v53 }
 0x28a   : > { %v1769_v61 = vld [vmem:[#allocation3] sm:$0xff] }
 0x28c   : > { %v1145_v54 = vpop.f32.mrf.mxu2 }
 0x28d   : > { %v1763_v55 = vadd.f32 %v1145_v54, %v653_v32 }
 0x28e   : > { %v1116_v26 = vpop.f32.mrf.mxu1 }
 0x28f   : > { %v1149_v56 = vsel %vm526_vm0, %v1763_v55, -inf }
 0x290   : > { %1150 = vmax.xlane.f32.xlu2 %v1149_v56 }
 0x2f3   : > { %v869_v60 = vpop.xlane.xlu1 %868 }
 0x2f4   : > { %v1772_v62 = vmax.f32 %v1769_v61, %v869_v60 }
 0x2f5   : > { %v741_v63 = vpop.permute.xlu0 %740 }
 0x2f6   : > { %v871_v0 = vsub.f32 %v1769_v61, %v1772_v62  ;;  %927 = vst.msk [vmem:[#allocation3] sm:$0xff] %vm888_vm7, %v1772_v62  ;;  %v743_v2 = vsub.f32 %v728_v35, %v741_v63  ;;  %876 = vperm.xlu1 %1520, %v1772_v62  }
 0x2f8   : > { %v744_v3 = vmul.f32 1.442695, %v743_v2  ;;  %v872_v37 = vmul.f32 1.442695, %v871_v0 }
 0x2fa   : > { %1532 = vpow2.f32 %v744_v3 }
 0x2fb   : > { %v1010_v4 = vpop.xlane.xlu2 %1009 }
 0x2fd   : > { %v1007_v5 = vld [vmem:[#allocation3] sm:$0xff] }
 0x2fe   : > { %v1011_v6 = vmax.f32 %v1007_v5, %v1010_v4  ;;  %1522 = vset.pattern.permute.xlu1 %v1590_v7 }
 0x300   : > { %v1012_v8 = vsub.f32 %v1007_v5, %v1011_v6  ;;  %1068 = vst.msk [vmem:[#allocation3] sm:$0xff] %vm1029_vm8, %v1011_v6  ;;  %1017 = vperm.xlu2 %1521, %v1011_v6   ;;  %v1533_v9 = vpop.eup %1532 }
 0x301   : > { %1462 = vmatmul.msk.f32.vlgmr.msrb.gmra.mxu3 %vm526_vm0, %v1533_v9  ;;  %v748_v16 = vsel %vm526_vm0, %v1533_v9, 0.0 }
 0x302   : > { %1056 = vmatpush.msrb.mxu3 %v975_v15  ;;  %v1013_v34 = vmul.f32 1.442695, %v1012_v8 }
 0x303   : > { %v1151_v10 = vpop.xlane.xlu2 %1150 }
 0x307   : > { %v1148_v11 = vld [vmem:[#allocation3] sm:$0xff] }
 0x308   : > { %v1152_v12 = vmax.f32 %v1148_v11, %v1151_v10  ;;  %1524 = vset.pattern.permute.xlu2 %v1588_v57 }
 0x30a   : > { %v1153_v14 = vsub.f32 %v1148_v11, %v1152_v12  ;;  %1209 = vst.msk [vmem:[#allocation3] sm:$0xff] %vm1170_vm9, %v1152_v12  ;;  %1158 = vperm.xlu1 %1522, %v1152_v12  }
 0x30c   : > { %v1154_v43 = vmul.f32 1.442695, %v1153_v14 }
 0x312   : > { %1523 = vset.pattern.permute.xlu1 %v1586_v39 }
 0x329   : > { %749 = vadd.xlane.f32.xlu2 %v748_v16 }
 0x35a   : > { %v1018_v17 = vpop.permute.xlu2 %1017 }
 0x35b   : > { %v1020_v18 = vsub.f32 %v1005_v52, %v1018_v17 }
 0x35d   : > { %v1021_v19 = vmul.f32 1.442695, %v1020_v18 }
 0x35f   : > { %1534 = vpow2.f32 %v1021_v19 }
 0x365   : > { %v1535_v20 = vpop.eup %1534 }
 0x366   : > { %v1025_v21 = vsel %vm526_vm0, %v1535_v20, 0.0 }
 0x367   : > { %1026 = vadd.xlane.f32.xlu0 %v1025_v21 }
 0x368   : > { %v877_v22 = vpop.permute.xlu1 %876 }
 0x369   : > { %v879_v23 = vsub.f32 %v1748_v45, %v877_v22  ;;  %v1248_v22 = vld [vmem:[%s1867_s7 + $0x18] sm:$0xff] }
 0x36a   : > { %1269 = vmatpush.msrb.mxu0 %v1248_v22 }
 0x36b   : > { %v880_v24 = vmul.f32 1.442695, %v879_v23  ;;  %v1247_v23 = vld [vmem:[%s1867_s7 + $0x10] sm:$0xff] }
 0x36c   : > { %1270 = vmatpush.msrb.mxu0 %v1247_v23 }
 0x36d   : > { %1536 = vpow2.f32 %v880_v24  ;;  %v1246_v24 = vld [vmem:[%s1867_s7 + $0x8] sm:$0xff] }
 0x36e   : > { %1271 = vmatpush.msrb.mxu0 %v1246_v24 }
 0x373   : > { %v1537_v25 = vpop.eup %1536 }
 0x374   : > { %1467 = vmatmul.msk.f32.vlgmr.msra.gmra.mxu3 %vm526_vm0, %v1537_v25  ;;  %v884_v27 = vsel %vm526_vm0, %v1537_v25, 0.0  ;;  %v1245_v25 = vld [vmem:[%s1867_s7] sm:$0xff] }
 0x375   : > { %1197 = vmatpush.msra.mxu3 %v1116_v26  ;;  %885 = vadd.xlane.f32.xlu1 %v884_v27 }
 0x376   : > { %1272 = vmatpush.msrb.mxu0 %v1245_v25 }
 0x37c   : > { %1472 = vmatmul.msk.f32.vlgmr.msrb.gmra.mxu3 %vm526_vm0, %v1535_v20  ;;  %v1159_v28 = vpop.permute.xlu1 %1158 }
 0x37d   : > { %v1161_v29 = vsub.f32 %v1763_v55, %v1159_v28 }
 0x37f   : > { %v1162_v30 = vmul.f32 1.442695, %v1161_v29 }
 0x381   : > { %1538 = vpow2.f32 %v1162_v30 }
 0x382   : > { %1540 = vpow2.f32 %v736_v31 }
 0x383   : > { %1542 = vpow2.f32 %v1013_v34 }
 0x384   : > { %1544 = vpow2.f32 %v872_v37  ;;  %v781_v50 = vpop.f32.mrf.mxu3 }
 0x385   : > { %1546 = vpow2.f32 %v1154_v43 }
 0x387   : > { %v1539_v32 = vpop.eup %1538 }
 0x388   : > { %1477 = vmatmul.msk.f32.vlgmr.msra.gmra.mxu3 %vm526_vm0, %v1539_v32  ;;  %v1166_v33 = vsel %vm526_vm0, %v1539_v32, 0.0  ;;  %v1541_v35 = vpop.eup %1540 }
 0x389   : > { %1167 = vadd.xlane.f32.xlu2 %v1166_v33  ;;  %v1543_v36 = vpop.eup %1542  ;;  %v747_v39 = vmul.f32 %v1541_v35, %v746_v38 }
 0x38a   : > { %v1545_v44 = vpop.eup %1544 }
 0x38b   : > { %v1547_v45 = vpop.eup %1546 }
 0x38e   : > { %757 = vperm.xlu1 %1523, %v1541_v35  }
 0x396   : > { %1525 = vset.pattern.permute.xlu1 %v1589_v58 }
 0x397   : > { %1034 = vperm.xlu1 %1525, %v1543_v36  }
 0x39c   : > { %v750_v41 = vpop.xlane.xlu2 %749 }
 0x39d   : > { %v751_v42 = vadd.f32 %v750_v41, %v747_v39 }
 0x39f   : > { %753 = vst.msk [vmem:[#allocation4] sm:$0xff] %vm752_vm6, %v751_v42  ;;  %v1591_v42 = vmov 32.0  }
 0x3a1   : > { %893 = vperm.xlu2 %1524, %v1545_v44  }
 0x3a6   : > { %v882_v46 = vld [vmem:[#allocation4] sm:$0xff] }
 0x3a7   : > { %v883_v47 = vmul.f32 %v1545_v44, %v882_v46 }
 0x3a9   : > { %1526 = vset.pattern.permute.xlu2 %v1590_v7 }
 0x3aa   : > { %1175 = vperm.xlu2 %1526, %v1547_v45  }
 0x3b2   : > { %1527 = vset.pattern.permute.xlu2 %v1588_v57  ;;  %v754_v57 = vld [vmem:[#allocation5] sm:$0xff] }
 0x3da   : > { %v1027_v53 = vpop.xlane.xlu0 %1026 }
 0x3e8   : > { %v886_v48 = vpop.xlane.xlu1 %885 }
 0x3e9   : > { %v887_v49 = vadd.f32 %v886_v48, %v883_v47 }
 0x3eb   : > { %889 = vst.msk [vmem:[#allocation4] sm:$0xff] %vm888_vm7, %v887_v49 }
 0x3f2   : > { %v1023_v51 = vld [vmem:[#allocation4] sm:$0xff] }
 0x3f3   : > { %v1024_v52 = vmul.f32 %v1543_v36, %v1023_v51  ;;  %v1529_v36 = vld [vmem:[%s1868_s8] ss:$0 sm:$0xff] }
 0x3f5   : > { %v1028_v54 = vadd.f32 %v1027_v53, %v1024_v52 }
 0x3f7   : > { %v917_v55 = vpop.f32.mrf.mxu3  ;;  %1030 = vst.msk [vmem:[#allocation4] sm:$0xff] %vm1029_vm8, %v1028_v54 }
 0x3f8   : > { %921 = vrot.lane.b32.xlu0 %v917_v55, %s1581_s16 }
 0x3fc   : > { %v1168_v59 = vpop.xlane.xlu2 %1167 }
 0x3fe   : > { %v1164_v56 = vld [vmem:[#allocation4] sm:$0xff] }
 0x3ff   : > { %v1165_v58 = vmul.f32 %v1547_v45, %v1164_v56  ;;  %v1058_v40 = vpop.f32.mrf.mxu3 }
 0x400   : > { %1062 = vrot.lane.b32.xlu0 %v1058_v40, %s1582_s21  ;;  %v758_v60 = vpop.permute.xlu1 %757 }
 0x401   : > { %v1169_v61 = vadd.f32 %v1168_v59, %v1165_v58  ;;  %v760_v62 = vmul.f32 %v758_v60, %v754_v57 }
 0x403   : > { %1171 = vst.msk [vmem:[#allocation4] sm:$0xff] %vm1170_vm9, %v1169_v61  ;;  %v784_v63 = vadd.f32 %v781_v50, %v760_v62  ;;  %v1530_v61 = vld [vmem:[%s1869_s9] ss:$0 sm:$0xff] }
 0x404   : > { %v894_v5 = vpop.permute.xlu2 %893 }
 0x405   : > { %785 = vst.msk [vmem:[#allocation5] sm:$0xff] %vm526_vm0, %v784_v63  ;;  %v1531_v63 = vld [vmem:[%s1870_s10] ss:$0 sm:$0xff] }
 0x409   : > { %v1035_v10 = vpop.permute.xlu1 %1034 }
 0x40a   : > { %v1213_v0 = vld [vmem:[#allocation4] sm:$0xff] }
 0x40b   : > { %v1199_v2 = vpop.f32.mrf.mxu3  ;;  %1548 = vrcp.f32 %v1213_v0 }
 0x40c   : > { %1203 = vrot.lane.b32.xlu1 %v1199_v2, %s1583_s22  ;;  %v890_v4 = vld [vmem:[#allocation5] sm:$0xff]  ;;  %v1176_v15 = vpop.permute.xlu2 %1175  ;;  %1550 = vrcp.f32 %v1591_v42 }
 0x40d   : > { %v896_v6 = vmul.f32 %v894_v5, %v890_v4 }
 0x411   : > { %v1549_v3 = vpop.eup %1548 }
 0x412   : > { %1225 = vperm.xlu2 %1527, %v1549_v3   ;;  %1218 = vperm.xlu0 %1519, %v1549_v3   ;;  %v1551_v43 = vpop.eup %1550 }
 0x413   : > { %v1283_v44 = vmul.f32 32.0, %v1551_v43  ;;  %vm1287_vm11 = vweird.f32 %v1551_v43 }
 0x414   : > { %1232 = vperm.xlu1 %1525, %v1549_v3  }
 0x415   : > { %v1284_v45 = vsub.f32 1.0, %v1283_v44 }
 0x417   : > { %v1285_v46 = vmul.f32 %v1551_v43, %v1284_v45 }
 0x419   : > { %v1286_v47 = vadd.f32 %v1551_v43, %v1285_v46 }
 0x41a   : > { %1528 = vset.pattern.permute.xlu0 %v1590_v7 }
 0x41b   : > { %1239 = vperm.xlu0 %1528, %v1549_v3   ;;  %v1288_v48 = vsel %vm1287_vm11, %v1551_v43, %v1286_v47 }
 0x46a   : > { %v922_v8 = vpop.permute.xlu0 %921 }
 0x46b   : > { %v924_v9 = vadd.f32 %v922_v8, %v896_v6 }
 0x46c   : > { %v1226_v26 = vpop.permute.xlu2 %1225 }
 0x46d   : > { %926 = vst.msk [vmem:[#allocation5] sm:$0xff] %vm582_vm1, %v924_v9 }
 0x472   : > { %v1063_v13 = vpop.permute.xlu0 %1062 }
 0x474   : > { %v1031_v11 = vld [vmem:[#allocation5] sm:$0xff] }
 0x475   : > { %v1037_v12 = vmul.f32 %v1035_v10, %v1031_v11 }
 0x477   : > { %v1065_v14 = vadd.f32 %v1063_v13, %v1037_v12 }
 0x479   : > { %1067 = vst.msk [vmem:[#allocation5] sm:$0xff] %vm614_vm2, %v1065_v14 }
 0x47e   : > { %v1204_v18 = vpop.permute.xlu1 %1203 }
 0x480   : > { %v1172_v16 = vld [vmem:[#allocation5] sm:$0xff] }
 0x481   : > { %v1178_v17 = vmul.f32 %v1176_v15, %v1172_v16 }
 0x483   : > { %v1206_v7 = vadd.f32 %v1204_v18, %v1178_v17 }
 0x484   : > { %v1219_v20 = vpop.permute.xlu0 %1218 }
 0x485   : > { %1208 = vst.msk [vmem:[#allocation5] sm:$0xff] %vm646_vm3, %v1206_v7 }
 0x486   : > { %v1233_v29 = vpop.permute.xlu1 %1232 }
 0x48c   : > { %v1215_v19 = vld [vmem:[#allocation5] sm:$0xff] }
 0x48d   : > { %v1221_v21 = vmul.f32 %v1219_v20, %v1215_v19  ;;  %v1240_v33 = vpop.permute.xlu0 %1239 }
 0x48f   : > { %1222 = vst.msk [vmem:[#allocation5] sm:$0xff] %vm526_vm0, %v1221_v21 }
 0x496   : > { %v1223_v27 = vld [vmem:[#allocation5] sm:$0xff] }
 0x497   : > { %v1228_v28 = vmul.f32 %v1226_v26, %v1223_v27 }
 0x499   : > { %1229 = vst.msk [vmem:[#allocation5] sm:$0xff] %vm582_vm1, %v1228_v28 }
 0x4a0   : > { %v1230_v30 = vld [vmem:[#allocation5] sm:$0xff] }
 0x4a1   : > { %v1235_v31 = vmul.f32 %v1233_v29, %v1230_v30 }
 0x4a3   : > { %1236 = vst.msk [vmem:[#allocation5] sm:$0xff] %vm614_vm2, %v1235_v31 }
 0x4aa   : > { %v1237_v32 = vld [vmem:[#allocation5] sm:$0xff] }
 0x4ab   : > { %v1242_v34 = vmul.f32 %v1240_v33, %v1237_v32 }
 0x4ad   : > { %1243 = vst.msk [vmem:[#allocation5] sm:$0xff] %vm646_vm3, %v1242_v34 }
 0x4b4   : > { %v1244_v35 = vld [vmem:[#allocation5] sm:$0xff] }
 0x4b5   : > { %1478 = vmatmul.msk.f32.vlgmr.msrb.gmra.mxu0 %vm522_vm10, %v1244_v35 }
 0x532   : > { %v1274_v37 = vpop.f32.mrf.mxu0 }
 0x533   : > { %v1275_v38 = vadd.f32 %v1529_v36, %v1274_v37 }
 0x535   : > { %v1278_v39 = vadd.f32 %v1275_v38, %v1682_v1 }
 0x537   : > { %v1279_v41 = vsel %vm522_vm10, %v1278_v39, 0.0 }
 0x538   : > { %1280 = vadd.xlane.f32.xlu2 %v1279_v41 }
 0x5ab   : > { %v1281_v49 = vpop.xlane.xlu2 %1280 }
 0x5ac   : > { %v1289_v50 = vmul.f32 %v1288_v48, %v1281_v49 }
 0x5ae   : > { %v1290_v51 = vsub.f32 %v1278_v39, %v1289_v50 }
 0x5b0   : > { %v1291_v52 = vmul.f32 %v1290_v51, %v1290_v51 }
 0x5b2   : > { %v1292_v53 = vsel %vm522_vm10, %v1291_v52, 0.0 }
 0x5b3   : > { %1293 = vadd.xlane.f32.xlu1 %v1292_v53 }
 0x626   : > { %v1294_v1 = vpop.xlane.xlu1 %1293 }
 0x627   : > { %v1295_v54 = vmul.f32 %v1294_v1, %v1288_v48 }
 0x629   : > { %v1296_v55 = vadd.f32 1e-05, %v1295_v54 }
 0x62b   : > { %1552 = vrsqrt.f32 %v1296_v55  ;;  %vm1303_vm13 = vweird.f32 %v1296_v55 }
 0x631   : > { %v1553_v56 = vpop.eup %1552 }
 0x632   : > { %v1298_v57 = vmul.f32 %v1553_v56, %v1296_v55  ;;  %vm1304_vm12 = vweird.f32 %v1553_v56 }
 0x633   : > { %vm1305_vm14 = vmor %vm1303_vm13, %vm1304_vm12 }
 0x634   : > { %v1299_v58 = vmul.f32 %v1553_v56, %v1298_v57 }
 0x636   : > { %v1300_v40 = vmul.f32 0.5, %v1299_v58 }
 0x638   : > { %v1301_v59 = vsub.f32 1.5, %v1300_v40 }
 0x63a   : > { %v1302_v60 = vmul.f32 %v1553_v56, %v1301_v59 }
 0x63c   : > { %v1306_v62 = vsel %vm1305_vm14, %v1553_v56, %v1302_v60 }
 0x63d   : > { %v1307_v0 = vmul.f32 %v1306_v62, %v1290_v51 }
 0x63f   : > { %v1312_v2 = vmul.f32 %v1530_v61, %v1307_v0 }
 0x641   : > { %v1317_v3 = vadd.f32 %v1531_v63, %v1312_v2 }
 0x643   : > { %1318 = vst.msk [vmem:[%s514_s14] sm:$0xff] %vm522_vm10, %v1317_v3 }
 0x644 PF: > { %s21_s19 = sadd.s32 1, %s1576_s19   ;;  %s1872_s17 = smov %s1572_s18 }
 0x645   : > { %p18_p5 = scmp.ge.s32.totalorder %s21_s19, 4   ;;  %s1873_s18 = smov %s1875_s20 }
 0x647   :  { %20 = sbr.rel (!%p18_p5) target bundleno = 2 (0x2), region = 111 }

// kernel: decoder_block_forward.3
= control target key start
LH: loop header
LB: loop body
LE: loop exit
PB: predicated region body
PF: predicated region fallthrough
CT: control target
= control target key end

     0   :  { %s1560_s13 = smov 0   ;;  %s1562_s14 = smov 0   ;;  %s1752_s0 = inlined_call_operand.vmem [shape: f32[2,8,32], index: 0, kind: input, shape index: {}, may-alias: {0,1}]   ;;  %s1753_s1 = inlined_call_operand.vmem [shape: f32[2,8,32], index: 1, kind: input, shape index: {}, may-alias: {0,1}]   ;;  %s1754_s2 = inlined_call_operand.vmem [shape: s8[2,8,8], index: 2, kind: input, shape index: {}]   ;;  %s1755_s3 = inlined_call_operand.vmem [shape: f32[8,8], index: 3, kind: input, shape index: {}]   ;;  %s1756_s4 = inlined_call_operand.vmem [shape: f32[8,8], index: 4, kind: input, shape index: {}]   ;;  %s1757_s5 = inlined_call_operand.vmem [shape: f32[8,8], index: 5, kind: input, shape index: {}]   ;;  %s1758_s6 = inlined_call_operand.vmem [shape: f32[32,32], index: 6, kind: input, shape index: {}]   ;;  %s1759_s7 = inlined_call_operand.vmem [shape: f32[1,32], index: 7, kind: input, shape index: {}]   ;;  %s1760_s8 = inlined_call_operand.vmem [shape: f32[1,32], index: 8, kind: input, shape index: {}]   ;;  %s1761_s9 = inlined_call_operand.vmem [shape: f32[1,32], index: 9, kind: input, shape index: {}]   ;;  %s1762_s10 = inlined_call_operand.vmem [shape: f32[2,8,32], index: 10, kind: output, shape index: {}]  }
   0x1   :  { %s1564_s15 = smov 0  }
   0x2 LB: > { %s39_s16 = sadd.s32 1, %s1485_s14  ;;  %p1362_p0 = scmp.ge.s32.totalorder %s1489_s15, 1  ;;  %s1489_s15 = sphi %s1564_s15, %s20_s15   ;;  %s1485_s14 = sphi %s1562_s14, %s1764_s14   ;;  %s1481_s13 = sphi %s1560_s13, %s1763_s13  }
   0x3   : > { %p41_p1 = scmp.ge.s32.totalorder %s39_s16, 2  ;;  %p370_p2 = scmp.lt.s32.totalorder %s1489_s15, 3 }
   0x5   : > { %s1766_s16 = smov (%p41_p1, %s39_s16), 0  ;;  %p371_p3 = pnand %p1362_p0, %p370_p2 }
   0x6   : > { %p429_p4 = scmp.lt.s32.totalorder (!%p371_p3), %s1481_s13, 1  ;;  %s1491_s23 = smov (!%p371_p3), 112  }
   0x7   : > { %374 = sbr.rel (%p371_p3) target bundleno = 1604 (0x644), region = 60  ;;  %s1492_s24 = smov (!%p371_p3), 120  }
   0x8   : > { %s1493_s25 = smov (!%p371_p3), 104   ;;  %s1494_s17 = smov (!%p371_p3), 8  }
   0x9   : > { %s1495_s18 = smov (!%p371_p3), 16   ;;  %s1496_s20 = smov (!%p371_p3), 24  }
   0xc   : > { %v529_v0 = vld [vmem:[%s1755_s3] sm:$0xff]  ;;  %s1768_s13 = smov (!%p429_p4, %s1481_s13), 1  ;;  %vm471_vm0 = vcmask 64512   ;;  %vm527_vm1 = vcmask 130112   ;;  %vm559_vm2 = vcmask 195712   ;;  %vm591_vm3 = vcmask 261312  }
   0xd   : > { %549 = vmatpush.msra.mxu2 %v529_v0  ;;  %517 = vmatpush.msra.mxu1 %v529_v0  ;;  %s1584_s19 = sshll.u32 %s1768_s13, 3  ;;  %v598_v3 = vld [vmem:[%s1756_s4] sm:$0xff]  ;;  %s1365_s21 = sshll.u32 %s1768_s13, 1  ;;  %v1497_v33 = vmov -1e+20   ;;  %vm464_vm5 = vcmask 31744  }
   0xe   : > { %581 = vmatpush.msra.mxu3 %v529_v0  ;;  %490 = vmatpush.msra.mxu0 %v529_v0  ;;  %s435_s22 = scalar_lea.vmem %s1752_s0, %s1584_s19  ;;  %s442_s28 = scalar_lea.vmem %s1753_s1, %s1584_s19  ;;  %v623_v7 = vld [vmem:[%s1757_s5] sm:$0xff]  ;;  %v1498_v39 = vmov -inf   ;;  %v1499_v40 = vmov 0   ;;  %v1500_v41 = vmov 0.0   ;;  %vm693_vm6 = vcmask 7168  }
   0xf   : > { %v1590_v1 = vld [vmem:[%s435_s22] sm:$0xff]  ;;  %639 = vmatpush.msrb.mxu1 %v623_v7  ;;  %465 = vst.msk [vmem:[#allocation3] sm:$0xff] %vm464_vm5, %v1498_v39  ;;  %1432 = vset.pattern.permute.xlu0 %v1499_v40  ;;  %v1501_v55 = vmov 1   ;;  %v1502_v56 = vmov 2   ;;  %vm825_vm7 = vcmask 15368   ;;  %vm962_vm8 = vcmask 23568   ;;  %s459_s13 = scalar_lea.vmem %s1762_s10, %s1584_s19 }
  0x10   : > { %530 = vrot.lane.b32.xlu0 %v1590_v1, %s1491_s23  ;;  %498 = vrot.lane.b32.xlu1 %v1590_v1, %s1492_s24  ;;  %v593_v2 = vld [vmem:[%s442_s28] sm:$0xff]  ;;  %466 = vst.msk [vmem:[#allocation4] sm:$0xff] %vm464_vm5, %v1500_v41  ;;  %vm1099_vm9 = vcmask 31768   ;;  %vm467_vm10 = vcmask 261120  }
  0x11   : > { %1367 = vmatmul.msk.f32.vlgmr.msra.gmra.mxu0 %vm471_vm0, %v1590_v1  ;;  %866 = vrot.lane.b32.xlu2 %v593_v2, %s1491_s23  ;;  %468 = vst.msk [vmem:[#allocation5] sm:$0xff] %vm467_vm10, %v1500_v41 }
  0x12   : > { %618 = vmatpush.msrb.mxu0 %v598_v3  ;;  %1433 = vset.pattern.permute.xlu1 %v1501_v55 }
  0x13   : > { %1434 = vset.pattern.permute.xlu2 %v1502_v56 }
  0x14   : > { %748 = vmatpush.msra.mxu0 %v598_v3 }
  0x16   : > { %v1650_v44 = vld [vmem:[#allocation3] sm:$0xff] }
  0x18   : > { %562 = vrot.lane.b32.xlu0 %v1590_v1, %s1493_s25  ;;  %729 = vrot.lane.b32.xlu1 %v593_v2, %s1492_s24 }
  0x19   : > { %1371 = vmatmul.msk.f32.vlgmr.msrb.gmra.mxu0 %vm471_vm0, %v593_v2  ;;  %1003 = vrot.lane.b32.xlu2 %v593_v2, %s1493_s25 }
  0x1a   : > { %885 = vmatpush.msrb.mxu0 %v598_v3 }
  0x6b   : > { %v867_v11 = vpop.permute.xlu2 %866 }
  0x73   : > { %v1004_v12 = vpop.permute.xlu2 %1003 }
  0x82   : > { %v531_v4 = vpop.permute.xlu0 %530  ;;  %v499_v5 = vpop.permute.xlu1 %498 }
  0x83   : > { %1369 = vmatmul.msk.f32.vlgmr.msra.gmra.mxu2 %vm471_vm0, %v531_v4  ;;  %1368 = vmatmul.msk.f32.vlgmr.msra.gmra.mxu1 %vm471_vm0, %v499_v5  ;;  %v1503_v4 = vmov 3  }
  0x84   : > { %769 = vmatpush.msra.mxu1 %v623_v7 }
  0x8a   : > { %v563_v6 = vpop.permute.xlu0 %562  ;;  %v730_v8 = vpop.permute.xlu1 %729 }
  0x8b   : > { %1370 = vmatmul.msk.f32.vlgmr.msra.gmra.mxu3 %vm471_vm0, %v563_v6  ;;  %1376 = vmatmul.msk.f32.vlgmr.msra.gmra.mxu0 %vm471_vm0, %v730_v8 }
  0x8c   : > { %1372 = vmatmul.msk.f32.vlgmr.msrb.gmra.mxu1 %vm471_vm0, %v593_v2  ;;  %1022 = vmatpush.msra.mxu0 %v598_v3 }
  0x8d   : > { %906 = vmatpush.msrb.mxu1 %v623_v7 }
  0x8e   : > { %v492_v9 = vpop.f32.mrf.mxu0 }
  0x8f   : > { %v495_v10 = vmul.f32 0.17677669, %v492_v9 }
  0x91   : > { %496 = vst.msk [vmem:[#allocation2] sm:$0xff] %vm471_vm0, %v495_v10 }
  0x93   : > { %1381 = vmatmul.msk.f32.vlgmr.msrb.gmra.mxu0 %vm471_vm0, %v867_v11 }
  0x94   : > { %1377 = vmatmul.msk.f32.vlgmr.msra.gmra.mxu1 %vm471_vm0, %v730_v8 }
  0x95   : > { %1043 = vmatpush.msra.mxu1 %v623_v7 }
  0x96   : > { %v620_v19 = vpop.f32.mrf.mxu0 }
  0x97   : > { %1373 = vmatpush.xpose.msk.msrb.mxu2 %vm471_vm0, %v620_v19 }
  0x9b   : > { %1386 = vmatmul.msk.f32.vlgmr.msra.gmra.mxu0 %vm471_vm0, %v1004_v12 }
  0x9c   : > { %1382 = vmatmul.msk.f32.vlgmr.msrb.gmra.mxu1 %vm471_vm0, %v867_v11 }
  0xa4   : > { %1387 = vmatmul.msk.f32.vlgmr.msra.gmra.mxu1 %vm471_vm0, %v1004_v12 }
 0x100   : > { %v519_v13 = vpop.f32.mrf.mxu1 }
 0x101   : > { %v522_v14 = vmul.f32 0.17677669, %v519_v13 }
 0x103   : > { %524 = vrot.lane.b32.xlu0 %v522_v14, %s1494_s17 }
 0x106   : > { %v551_v15 = vpop.f32.mrf.mxu2 }
 0x107   : > { %v554_v16 = vmul.f32 0.17677669, %v551_v15 }
 0x108   : > { %v750_v25 = vpop.f32.mrf.mxu0 }
 0x109   : > { %556 = vrot.lane.b32.xlu1 %v554_v16, %s1495_s18  ;;  %v641_v20 = vpop.f32.mrf.mxu1  ;;  %1378 = vmatpush.xpose.msk.msra.mxu2 %vm471_vm0, %v750_v25 }
 0x10a   : > { %720 = vmatpush.msrb.mxu3 %v641_v20 }
 0x10e   : > { %v583_v17 = vpop.f32.mrf.mxu3 }
 0x10f   : > { %v586_v18 = vmul.f32 0.17677669, %v583_v17 }
 0x110   : > { %v887_v27 = vpop.f32.mrf.mxu0 }
 0x111   : > { %588 = vrot.lane.b32.xlu2 %v586_v18, %s1496_s20  ;;  %v771_v26 = vpop.f32.mrf.mxu1 }
 0x112   : > { %852 = vmatpush.msra.mxu3 %v771_v26 }
 0x118   : > { %v1024_v29 = vpop.f32.mrf.mxu0 }
 0x119   : > { %v908_v7 = vpop.f32.mrf.mxu1 }
 0x16b   : > { %v589_v22 = vpop.permute.xlu2 %588 }
 0x175   : > { %v525_v21 = vpop.permute.xlu0 %524 }
 0x176   : > { %528 = vst.msk [vmem:[#allocation2] sm:$0xff] %vm527_vm1, %v525_v21 }
 0x17b   : > { %v557_v23 = vpop.permute.xlu1 %556 }
 0x17c   : > { %560 = vst.msk [vmem:[#allocation2] sm:$0xff] %vm559_vm2, %v557_v23 }
 0x17d   : > { %592 = vst.msk [vmem:[#allocation2] sm:$0xff] %vm591_vm3, %v589_v22  ;;  %v1045_v22 = vpop.f32.mrf.mxu1 }
 0x184   : > { %v1048_v24 = vld [vmem:[#allocation2] sm:$0xff] }
 0x185   : > { %1050 = vrot.lane.b32.xlu2 %v1048_v24, %s1493_s25  ;;  %913 = vrot.lane.b32.xlu1 %v1048_v24, %s1491_s23 }
 0x186   : > { %776 = vrot.lane.b32.xlu0 %v1048_v24, %s1492_s24  ;;  %1374 = vmatmul.msk.f32.vlgmr.msrb.gmra.mxu2 %vm471_vm0, %v1048_v24  ;;  %s452_s24 = scalar_lea.vmem %s1754_s2, %s1365_s21 }
 0x187   : > { %1383 = vmatpush.xpose.msk.msrb.mxu2 %vm471_vm0, %v887_v27  ;;  %v594_v30 = vld [vmem:[%s452_s24] sm:$0x3] }
 0x188   : > { %v595_v32 = vunpack.c.0.s8 %v594_v30 }
 0x18a   : > { %vm596_vm4 = vcmp.ne.s32.totalorder %v595_v32, 0 }
 0x18b   : > { %v597_v34 = vsel %vm596_vm4, 0.0, %v1497_v33 }
 0x1df   : > { %v1051_v35 = vpop.permute.xlu2 %1050 }
 0x1f7   : > { %v914_v31 = vpop.permute.xlu1 %913 }
 0x1f8   : > { %v777_v28 = vpop.permute.xlu0 %776 }
 0x1f9   : > { %1379 = vmatmul.msk.f32.vlgmr.msra.gmra.mxu2 %vm471_vm0, %v777_v28 }
 0x1fa   : > { %1388 = vmatpush.xpose.msk.msra.mxu2 %vm471_vm0, %v1024_v29 }
 0x201   : > { %1384 = vmatmul.msk.f32.vlgmr.msrb.gmra.mxu2 %vm471_vm0, %v914_v31 }
 0x209   : > { %v668_v36 = vpop.f32.mrf.mxu2  ;;  %1389 = vmatmul.msk.f32.vlgmr.msra.gmra.mxu2 %vm471_vm0, %v1051_v35 }
 0x20a   : > { %v669_v37 = vadd.f32 %v668_v36, %v597_v34 }
 0x20c   : > { %v672_v38 = vsel %vm471_vm0, %v669_v37, -inf }
 0x20d   : > { %673 = vmax.xlane.f32.xlu0 %v672_v38 }
 0x27c   : > { %v800_v42 = vpop.f32.mrf.mxu2 }
 0x27d   : > { %v1648_v43 = vadd.f32 %v800_v42, %v597_v34 }
 0x27f   : > { %v804_v45 = vsel %vm471_vm0, %v1648_v43, -inf }
 0x280   : > { %805 = vmax.xlane.f32.xlu1 %v804_v45  ;;  %v674_v46 = vpop.xlane.xlu0 %673 }
 0x281   : > { %v1655_v47 = vmax.f32 %v1650_v44, %v674_v46 }
 0x283   : > { %v676_v48 = vsub.f32 %v1650_v44, %v1655_v47  ;;  %727 = vst.msk [vmem:[#allocation3] sm:$0xff] %vm693_vm6, %v1655_v47  ;;  %681 = vperm.xlu0 %1432, %v1655_v47  }
 0x284   : > { %v937_v49 = vpop.f32.mrf.mxu2 }
 0x285   : > { %v938_v50 = vadd.f32 %v937_v49, %v597_v34  ;;  %v677_v27 = vmul.f32 1.442695, %v676_v48 }
 0x287   : > { %v941_v51 = vsel %vm471_vm0, %v938_v50, -inf }
 0x288   : > { %942 = vmax.xlane.f32.xlu2 %v941_v51 }
 0x28a   : > { %v1666_v58 = vld [vmem:[#allocation3] sm:$0xff] }
 0x28c   : > { %v1074_v52 = vpop.f32.mrf.mxu2 }
 0x28d   : > { %v1075_v53 = vadd.f32 %v1074_v52, %v597_v34  ;;  %v687_v34 = vld [vmem:[#allocation4] sm:$0xff] }
 0x28f   : > { %v1078_v54 = vsel %vm471_vm0, %v1075_v53, -inf }
 0x290   : > { %1079 = vmax.xlane.f32.xlu2 %v1078_v54 }
 0x2f3   : > { %v806_v57 = vpop.xlane.xlu1 %805 }
 0x2f4   : > { %v1669_v59 = vmax.f32 %v1666_v58, %v806_v57 }
 0x2f5   : > { %v682_v60 = vpop.permute.xlu0 %681 }
 0x2f6   : > { %v808_v61 = vsub.f32 %v1666_v58, %v1669_v59  ;;  %864 = vst.msk [vmem:[#allocation3] sm:$0xff] %vm825_vm7, %v1669_v59  ;;  %v684_v62 = vsub.f32 %v669_v37, %v682_v60  ;;  %813 = vperm.xlu1 %1433, %v1669_v59  }
 0x2f8   : > { %v685_v63 = vmul.f32 1.442695, %v684_v62  ;;  %v809_v33 = vmul.f32 1.442695, %v808_v61 }
 0x2fa   : > { %1445 = vpow2.f32 %v685_v63 }
 0x2fb   : > { %v943_v0 = vpop.xlane.xlu2 %942 }
 0x2fd   : > { %v940_v2 = vld [vmem:[#allocation3] sm:$0xff] }
 0x2fe   : > { %v944_v3 = vmax.f32 %v940_v2, %v943_v0  ;;  %1435 = vset.pattern.permute.xlu1 %v1503_v4 }
 0x300   : > { %v945_v5 = vsub.f32 %v940_v2, %v944_v3  ;;  %1001 = vst.msk [vmem:[#allocation3] sm:$0xff] %vm962_vm8, %v944_v3  ;;  %950 = vperm.xlu2 %1434, %v944_v3   ;;  %v1446_v6 = vpop.eup %1445 }
 0x301   : > { %1375 = vmatmul.msk.f32.vlgmr.msrb.gmra.mxu3 %vm471_vm0, %v1446_v6  ;;  %v689_v12 = vsel %vm471_vm0, %v1446_v6, 0.0 }
 0x302   : > { %989 = vmatpush.msrb.mxu3 %v908_v7  ;;  %v946_v30 = vmul.f32 1.442695, %v945_v5 }
 0x303   : > { %v1080_v8 = vpop.xlane.xlu2 %1079 }
 0x307   : > { %v1077_v9 = vld [vmem:[#allocation3] sm:$0xff] }
 0x308   : > { %v1081_v10 = vmax.f32 %v1077_v9, %v1080_v8  ;;  %1437 = vset.pattern.permute.xlu2 %v1501_v55 }
 0x30a   : > { %v1082_v11 = vsub.f32 %v1077_v9, %v1081_v10  ;;  %1138 = vst.msk [vmem:[#allocation3] sm:$0xff] %vm1099_vm9, %v1081_v10  ;;  %1087 = vperm.xlu1 %1435, %v1081_v10  }
 0x30c   : > { %v1083_v38 = vmul.f32 1.442695, %v1082_v11 }
 0x312   : > { %1436 = vset.pattern.permute.xlu1 %v1499_v40 }
 0x329   : > { %690 = vadd.xlane.f32.xlu2 %v689_v12 }
 0x35a   : > { %v951_v13 = vpop.permute.xlu2 %950 }
 0x35b   : > { %v953_v14 = vsub.f32 %v938_v50, %v951_v13 }
 0x35d   : > { %v954_v15 = vmul.f32 1.442695, %v953_v14 }
 0x35f   : > { %1447 = vpow2.f32 %v954_v15 }
 0x365   : > { %v1448_v16 = vpop.eup %1447 }
 0x366   : > { %v958_v17 = vsel %vm471_vm0, %v1448_v16, 0.0 }
 0x367   : > { %959 = vadd.xlane.f32.xlu0 %v958_v17 }
 0x368   : > { %v814_v18 = vpop.permute.xlu1 %813 }
 0x369   : > { %v816_v19 = vsub.f32 %v1648_v43, %v814_v18  ;;  %v1177_v18 = vld [vmem:[%s1758_s6 + $0x18] sm:$0xff] }
 0x36a   : > { %1198 = vmatpush.msrb.mxu0 %v1177_v18 }
 0x36b   : > { %v817_v20 = vmul.f32 1.442695, %v816_v19  ;;  %v1176_v19 = vld [vmem:[%s1758_s6 + $0x10] sm:$0xff] }
 0x36c   : > { %1199 = vmatpush.msrb.mxu0 %v1176_v19 }
 0x36d   : > { %1449 = vpow2.f32 %v817_v20  ;;  %v1175_v20 = vld [vmem:[%s1758_s6 + $0x8] sm:$0xff] }
 0x36e   : > { %1200 = vmatpush.msrb.mxu0 %v1175_v20 }
 0x373   : > { %v1450_v21 = vpop.eup %1449 }
 0x374   : > { %1380 = vmatmul.msk.f32.vlgmr.msra.gmra.mxu3 %vm471_vm0, %v1450_v21  ;;  %v821_v23 = vsel %vm471_vm0, %v1450_v21, 0.0  ;;  %v1174_v21 = vld [vmem:[%s1758_s6] sm:$0xff] }
 0x375   : > { %1126 = vmatpush.msra.mxu3 %v1045_v22  ;;  %822 = vadd.xlane.f32.xlu1 %v821_v23 }
 0x376   : > { %1201 = vmatpush.msrb.mxu0 %v1174_v21 }
 0x37c   : > { %1385 = vmatmul.msk.f32.vlgmr.msrb.gmra.mxu3 %vm471_vm0, %v1448_v16  ;;  %v1088_v24 = vpop.permute.xlu1 %1087 }
 0x37d   : > { %v1090_v25 = vsub.f32 %v1075_v53, %v1088_v24  ;;  %v695_v53 = vld [vmem:[#allocation5] sm:$0xff] }
 0x37f   : > { %v1091_v26 = vmul.f32 1.442695, %v1090_v25 }
 0x381   : > { %1451 = vpow2.f32 %v1091_v26 }
 0x382   : > { %1453 = vpow2.f32 %v677_v27 }
 0x383   : > { %1455 = vpow2.f32 %v946_v30 }
 0x384   : > { %1457 = vpow2.f32 %v809_v33  ;;  %v722_v46 = vpop.f32.mrf.mxu3 }
 0x385   : > { %1459 = vpow2.f32 %v1083_v38 }
 0x387   : > { %v1452_v28 = vpop.eup %1451 }
 0x388   : > { %1390 = vmatmul.msk.f32.vlgmr.msra.gmra.mxu3 %vm471_vm0, %v1452_v28  ;;  %v1095_v29 = vsel %vm471_vm0, %v1452_v28, 0.0  ;;  %v1454_v31 = vpop.eup %1453 }
 0x389   : > { %1096 = vadd.xlane.f32.xlu2 %v1095_v29  ;;  %v1456_v32 = vpop.eup %1455  ;;  %v688_v35 = vmul.f32 %v1454_v31, %v687_v34 }
 0x38a   : > { %v1458_v39 = vpop.eup %1457 }
 0x38b   : > { %v1460_v40 = vpop.eup %1459 }
 0x38e   : > { %698 = vperm.xlu1 %1436, %v1454_v31  }
 0x396   : > { %1438 = vset.pattern.permute.xlu1 %v1502_v56 }
 0x397   : > { %967 = vperm.xlu1 %1438, %v1456_v32  }
 0x39c   : > { %v691_v36 = vpop.xlane.xlu2 %690 }
 0x39d   : > { %v692_v37 = vadd.f32 %v691_v36, %v688_v35 }
 0x39f   : > { %694 = vst.msk [vmem:[#allocation4] sm:$0xff] %vm693_vm6, %v692_v37  ;;  %v1504_v37 = vmov 32.0  }
 0x3a1   : > { %830 = vperm.xlu2 %1437, %v1458_v39  }
 0x3a6   : > { %v819_v42 = vld [vmem:[#allocation4] sm:$0xff] }
 0x3a7   : > { %v820_v43 = vmul.f32 %v1458_v39, %v819_v42 }
 0x3a9   : > { %1439 = vset.pattern.permute.xlu2 %v1503_v4 }
 0x3aa   : > { %1104 = vperm.xlu2 %1439, %v1460_v40  }
 0x3b2   : > { %1440 = vset.pattern.permute.xlu2 %v1501_v55 }
 0x3da   : > { %v960_v49 = vpop.xlane.xlu0 %959 }
 0x3e8   : > { %v823_v44 = vpop.xlane.xlu1 %822 }
 0x3e9   : > { %v824_v45 = vadd.f32 %v823_v44, %v820_v43 }
 0x3eb   : > { %826 = vst.msk [vmem:[#allocation4] sm:$0xff] %vm825_vm7, %v824_v45 }
 0x3f2   : > { %v956_v47 = vld [vmem:[#allocation4] sm:$0xff] }
 0x3f3   : > { %v957_v48 = vmul.f32 %v1456_v32, %v956_v47  ;;  %v1442_v32 = vld [vmem:[%s1759_s7] ss:$0 sm:$0xff] }
 0x3f5   : > { %v961_v50 = vadd.f32 %v960_v49, %v957_v48 }
 0x3f7   : > { %v854_v51 = vpop.f32.mrf.mxu3  ;;  %963 = vst.msk [vmem:[#allocation4] sm:$0xff] %vm962_vm8, %v961_v50 }
 0x3f8   : > { %858 = vrot.lane.b32.xlu0 %v854_v51, %s1494_s17 }
 0x3fc   : > { %v1097_v55 = vpop.xlane.xlu2 %1096 }
 0x3fe   : > { %v1093_v52 = vld [vmem:[#allocation4] sm:$0xff] }
 0x3ff   : > { %v1094_v54 = vmul.f32 %v1460_v40, %v1093_v52  ;;  %v991_v41 = vpop.f32.mrf.mxu3 }
 0x400   : > { %995 = vrot.lane.b32.xlu0 %v991_v41, %s1495_s18  ;;  %v699_v56 = vpop.permute.xlu1 %698 }
 0x401   : > { %v1098_v57 = vadd.f32 %v1097_v55, %v1094_v54  ;;  %v701_v58 = vmul.f32 %v699_v56, %v695_v53 }
 0x403   : > { %1100 = vst.msk [vmem:[#allocation4] sm:$0xff] %vm1099_vm9, %v1098_v57  ;;  %v725_v59 = vadd.f32 %v722_v46, %v701_v58  ;;  %v1443_v57 = vld [vmem:[%s1760_s8] ss:$0 sm:$0xff] }
 0x404   : > { %v831_v0 = vpop.permute.xlu2 %830 }
 0x405   : > { %726 = vst.msk [vmem:[#allocation5] sm:$0xff] %vm471_vm0, %v725_v59  ;;  %v1444_v59 = vld [vmem:[%s1761_s9] ss:$0 sm:$0xff] }
 0x409   : > { %v968_v6 = vpop.permute.xlu1 %967 }
 0x40a   : > { %v1142_v60 = vld [vmem:[#allocation4] sm:$0xff] }
 0x40b   : > { %v1128_v61 = vpop.f32.mrf.mxu3  ;;  %1461 = vrcp.f32 %v1142_v60 }
 0x40c   : > { %1132 = vrot.lane.b32.xlu1 %v1128_v61, %s1496_s20  ;;  %v827_v63 = vld [vmem:[#allocation5] sm:$0xff]  ;;  %v1105_v11 = vpop.permute.xlu2 %1104  ;;  %1463 = vrcp.f32 %v1504_v37 }
 0x40d   : > { %v833_v2 = vmul.f32 %v831_v0, %v827_v63 }
 0x411   : > { %v1462_v62 = vpop.eup %1461 }
 0x412   : > { %1154 = vperm.xlu2 %1440, %v1462_v62   ;;  %1147 = vperm.xlu0 %1432, %v1462_v62   ;;  %v1464_v38 = vpop.eup %1463 }
 0x413   : > { %v1212_v39 = vmul.f32 32.0, %v1464_v38  ;;  %vm1216_vm11 = vweird.f32 %v1464_v38 }
 0x414   : > { %1161 = vperm.xlu1 %1438, %v1462_v62  }
 0x415   : > { %v1213_v40 = vsub.f32 1.0, %v1212_v39 }
 0x417   : > { %v1214_v42 = vmul.f32 %v1464_v38, %v1213_v40 }
 0x419   : > { %v1215_v43 = vadd.f32 %v1464_v38, %v1214_v42 }
 0x41a   : > { %1441 = vset.pattern.permute.xlu0 %v1503_v4 }
 0x41b   : > { %1168 = vperm.xlu0 %1441, %v1462_v62   ;;  %v1217_v44 = vsel %vm1216_vm11, %v1464_v38, %v1215_v43 }
 0x46a   : > { %v859_v3 = vpop.permute.xlu0 %858 }
 0x46b   : > { %v861_v5 = vadd.f32 %v859_v3, %v833_v2 }
 0x46c   : > { %v1155_v22 = vpop.permute.xlu2 %1154 }
 0x46d   : > { %863 = vst.msk [vmem:[#allocation5] sm:$0xff] %vm527_vm1, %v861_v5 }
 0x472   : > { %v996_v9 = vpop.permute.xlu0 %995 }
 0x474   : > { %v964_v7 = vld [vmem:[#allocation5] sm:$0xff] }
 0x475   : > { %v970_v8 = vmul.f32 %v968_v6, %v964_v7 }
 0x477   : > { %v998_v10 = vadd.f32 %v996_v9, %v970_v8 }
 0x479   : > { %1000 = vst.msk [vmem:[#allocation5] sm:$0xff] %vm559_vm2, %v998_v10 }
 0x47e   : > { %v1133_v14 = vpop.permute.xlu1 %1132 }
 0x480   : > { %v1101_v12 = vld [vmem:[#allocation5] sm:$0xff] }
 0x481   : > { %v1107_v13 = vmul.f32 %v1105_v11, %v1101_v12 }
 0x483   : > { %v1135_v4 = vadd.f32 %v1133_v14, %v1107_v13 }
 0x484   : > { %v1148_v16 = vpop.permute.xlu0 %1147 }
 0x485   : > { %1137 = vst.msk [vmem:[#allocation5] sm:$0xff] %vm591_vm3, %v1135_v4 }
 0x486   : > { %v1162_v25 = vpop.permute.xlu1 %1161 }
 0x48c   : > { %v1144_v15 = vld [vmem:[#allocation5] sm:$0xff] }
 0x48d   : > { %v1150_v17 = vmul.f32 %v1148_v16, %v1144_v15  ;;  %v1169_v29 = vpop.permute.xlu0 %1168 }
 0x48f   : > { %1151 = vst.msk [vmem:[#allocation5] sm:$0xff] %vm471_vm0, %v1150_v17 }
 0x496   : > { %v1152_v23 = vld [vmem:[#allocation5] sm:$0xff] }
 0x497   : > { %v1157_v24 = vmul.f32 %v1155_v22, %v1152_v23 }
 0x499   : > { %1158 = vst.msk [vmem:[#allocation5] sm:$0xff] %vm527_vm1, %v1157_v24 }
 0x4a0   : > { %v1159_v26 = vld [vmem:[#allocation5] sm:$0xff] }
 0x4a1   : > { %v1164_v27 = vmul.f32 %v1162_v25, %v1159_v26 }
 0x4a3   : > { %1165 = vst.msk [vmem:[#allocation5] sm:$0xff] %vm559_vm2, %v1164_v27 }
 0x4aa   : > { %v1166_v28 = vld [vmem:[#allocation5] sm:$0xff] }
 0x4ab   : > { %v1171_v30 = vmul.f32 %v1169_v29, %v1166_v28 }
 0x4ad   : > { %1172 = vst.msk [vmem:[#allocation5] sm:$0xff] %vm591_vm3, %v1171_v30 }
 0x4b4   : > { %v1173_v31 = vld [vmem:[#allocation5] sm:$0xff] }
 0x4b5   : > { %1391 = vmatmul.msk.f32.vlgmr.msrb.gmra.mxu0 %vm467_vm10, %v1173_v31 }
 0x532   : > { %v1203_v33 = vpop.f32.mrf.mxu0 }
 0x533   : > { %v1204_v34 = vadd.f32 %v1442_v32, %v1203_v33 }
 0x535   : > { %v1207_v35 = vadd.f32 %v1204_v34, %v1590_v1 }
 0x537   : > { %v1208_v36 = vsel %vm467_vm10, %v1207_v35, 0.0 }
 0x538   : > { %1209 = vadd.xlane.f32.xlu2 %v1208_v36 }
 0x5ab   : > { %v1210_v45 = vpop.xlane.xlu2 %1209 }
 0x5ac   : > { %v1218_v46 = vmul.f32 %v1217_v44, %v1210_v45 }
 0x5ae   : > { %v1219_v47 = vsub.f32 %v1207_v35, %v1218_v46 }
 0x5b0   : > { %v1220_v48 = vmul.f32 %v1219_v47, %v1219_v47 }
 0x5b2   : > { %v1221_v49 = vsel %vm467_vm10, %v1220_v48, 0.0 }
 0x5b3   : > { %1222 = vadd.xlane.f32.xlu1 %v1221_v49 }
 0x626   : > { %v1223_v1 = vpop.xlane.xlu1 %1222 }
 0x627   : > { %v1224_v50 = vmul.f32 %v1223_v1, %v1217_v44 }
 0x629   : > { %v1225_v51 = vadd.f32 1e-05, %v1224_v50 }
 0x62b   : > { %1465 = vrsqrt.f32 %v1225_v51  ;;  %vm1232_vm13 = vweird.f32 %v1225_v51 }
 0x631   : > { %v1466_v52 = vpop.eup %1465 }
 0x632   : > { %v1227_v53 = vmul.f32 %v1466_v52, %v1225_v51  ;;  %vm1233_vm12 = vweird.f32 %v1466_v52 }
 0x633   : > { %vm1234_vm14 = vmor %vm1232_vm13, %vm1233_vm12 }
 0x634   : > { %v1228_v54 = vmul.f32 %v1466_v52, %v1227_v53 }
 0x636   : > { %v1229_v41 = vmul.f32 0.5, %v1228_v54 }
 0x638   : > { %v1230_v55 = vsub.f32 1.5, %v1229_v41 }
 0x63a   : > { %v1231_v56 = vmul.f32 %v1466_v52, %v1230_v55 }
 0x63c   : > { %v1235_v58 = vsel %vm1234_vm14, %v1466_v52, %v1231_v56 }
 0x63d   : > { %v1236_v60 = vmul.f32 %v1235_v58, %v1219_v47 }
 0x63f   : > { %v1241_v61 = vmul.f32 %v1443_v57, %v1236_v60 }
 0x641   : > { %v1246_v62 = vadd.f32 %v1444_v59, %v1241_v61 }
 0x643   : > { %1247 = vst.msk [vmem:[%s459_s13] sm:$0xff] %vm467_vm10, %v1246_v62 }
 0x644 PF: > { %s20_s15 = sadd.s32 1, %s1489_s15   ;;  %s1763_s13 = smov %s1485_s14 }
 0x645   : > { %p17_p5 = scmp.ge.s32.totalorder %s20_s15, 4   ;;  %s1764_s14 = smov %s1766_s16 }
 0x647   :  { %19 = sbr.rel (!%p17_p5) target bundleno = 2 (0x2), region = 104 }

</bundles_post_ra>
